<compile_context>
chip_gen: v7x
topology: tpu7x:2x2x1
jax: 0.10.0
libtpu: 0.0.40
codegen_flags: <defaults>
</compile_context>

<pallas_src>
import functools

import numpy as np

import jax
import jax.numpy as jnp
from jax.experimental import pallas as pl
from jax.experimental.pallas import tpu as pltpu

BN_EPS = 1e-5
HALO = 4                       # >= 3 frames needed for three stacked k=3 convs
TF_MAX = 256                   # frame-tile width (multiple of 128) when F > TF_MAX
VMEM_LIMIT_BYTES = 64 * 1024 * 1024   # <= physical VMEM on v5e/v6e/v7x


# ----------------------------- fused Pallas kernel -----------------------------


def _fused_kernel(x_ref, xh_ref, in_s_ref, in_t_ref,
                  w1_ref, bn1s_ref, bn1t_ref,
                  convw_ref, convs_ref, convt_ref,
                  w2_ref, bn2s_ref, bn2t_ref,
                  w3_ref, out_s_ref, out_t_ref,
                  o_ref, *, nb_frames, halo):
    ftile = x_ref.shape[2]                      # frames in this tile (lane axis)
    w0 = ftile + 2 * halo                       # conv window incl. halo
    g0 = pl.program_id(1) * ftile               # first global frame of the tile

    xm = x_ref[0]                               # (CBp, TF) bf16 -- also "mix"
    xh = xh_ref[0, 0]                           # (CBp, 2*halo) bf16
    in_s = in_s_ref[...]                        # (CBp, 1) f32
    in_t = in_t_ref[...]

    # input affine: (x + mean) * scale  ==  x*scale + mean*scale
    xc_m = xm.astype(jnp.float32) * in_s + in_t
    xc_h = xh.astype(jnp.float32) * in_s + in_t

    # fc1 -> bn1 -> tanh for the tile and for the halo frames (cheap recompute)
    w1 = w1_ref[...]                            # (HP, CBp) bf16
    bn1s = bn1s_ref[...]
    bn1t = bn1t_ref[...]
    h_m = jnp.tanh(jnp.dot(w1, xc_m.astype(jnp.bfloat16),
                           preferred_element_type=jnp.float32) * bn1s + bn1t)
    h_h = jnp.tanh(jnp.dot(w1, xc_h.astype(jnp.bfloat16),
                           preferred_element_type=jnp.float32) * bn1s + bn1t)

    # h window with halo frames on both sides (frames on the lane axis).
    y = jnp.concatenate([h_h[:, :halo], h_m, h_h[:, halo:]], axis=1)  # (HP, W0)

    # Global frame index of every window column -- built ONCE, (1, W0) i32.
    gcol = jax.lax.broadcasted_iota(jnp.int32, (1, w0), 1) + (g0 - halo)

    # Conv1d(k=3, pad=1) + BN + ReLU  x3, as "valid" convs on a shrinking
    # window.  Zero padding at the TRUE sequence boundaries is emulated by
    # masking the prev/next contributions where global frame == 0 / F-1.
    for l in range(3):
        wl = y.shape[1]
        out_g = gcol[:, l + 1: l + 1 + (wl - 2)]             # (1, wl-2)
        y_prev = jnp.where(out_g == 0, 0.0, y[:, :wl - 2])
        y_cur = y[:, 1:wl - 1]
        y_next = jnp.where(out_g == nb_frames - 1, 0.0, y[:, 2:])
        # three K=H dots accumulated in f32 (no (F, 3H) concat copies)
        z = (jnp.dot(convw_ref[l, 0], y_prev.astype(jnp.bfloat16),
                     preferred_element_type=jnp.float32)
             + jnp.dot(convw_ref[l, 1], y_cur.astype(jnp.bfloat16),
                       preferred_element_type=jnp.float32)
             + jnp.dot(convw_ref[l, 2], y_next.astype(jnp.bfloat16),
                       preferred_element_type=jnp.float32))
        y = jnp.maximum(z * convs_ref[l] + convt_ref[l], 0.0)

    cnn = y[:, 1:1 + ftile]                     # valid region: frames [g0, g0+TF)

    # head: fc2 on concat([h, cnn]) as ONE K=2*H contraction -> bn2 -> relu
    cat = jnp.concatenate([h_m, cnn], axis=0).astype(jnp.bfloat16)   # (2*HP, TF)
    z = jnp.dot(w2_ref[...], cat, preferred_element_type=jnp.float32)
    z = jnp.maximum(z * bn2s_ref[...] + bn2t_ref[...], 0.0)

    # fc3 -> bn3 -> output affine -> relu -> * mix
    o = jnp.dot(w3_ref[...], z.astype(jnp.bfloat16),
                preferred_element_type=jnp.float32)                  # (CBp, TF)
    o = o * out_s_ref[...] + out_t_ref[...]
    o_ref[0] = jnp.maximum(o, 0.0) * xm.astype(jnp.float32)


# ----------------------------- parameter preparation -----------------------------


def bn_fold(gamma, beta, rm, rv):
    s = gamma / jnp.sqrt(rv + BN_EPS)
    return s, beta - rm * s


def _pad2(a, rows, cols):
    return jnp.pad(a, ((0, rows - a.shape[0]), (0, cols - a.shape[1])))


def _padcol(v, n):
    return jnp.pad(v, (0, n - v.shape[0]))[:, None]        # (n, 1)


def _prepare_params(p, C, B, H, hp, cbp):
    bf = jnp.bfloat16

    in_scale = jnp.tile(p["input_scale"], C)
    in_mean = jnp.tile(p["input_mean"], C)
    in_s = _padcol(in_scale, cbp)
    in_t = _padcol(in_mean * in_scale, cbp)

    w1 = _pad2(p["w1"], hp, cbp).astype(bf)                 # (HP, CBp)
    s, t = bn_fold(*p["bn1"])
    bn1_s = _padcol(s, hp)
    bn1_t = _padcol(t, hp)                                  # pad=0 -> tanh(0)=0

    convw, convs, convt = [], [], []
    for l in range(3):
        W = p[f"conv{l}_w"]                                 # (H_out, H_in, 3)
        b = p[f"conv{l}_b"]
        s, t = bn_fold(*p[f"cbn{l}"])
        t = b * s + t                                       # fold conv bias
        convw.append(jnp.stack([_pad2(W[:, :, k], hp, hp) for k in range(3)]))
        convs.append(_padcol(s, hp))
        convt.append(_padcol(t, hp))                        # pad=0 -> relu(0)=0
    convw = jnp.stack(convw).astype(bf)                     # (3, 3, HP, HP)
    convs = jnp.stack(convs)                                # (3, HP, 1)
    convt = jnp.stack(convt)

    w2 = p["w2"]                                            # (H, 2H)
    w2cat = jnp.concatenate([_pad2(w2[:, :H], hp, hp),
                             _pad2(w2[:, H:], hp, hp)], axis=1).astype(bf)
    s, t = bn_fold(*p["bn2"])
    bn2_s = _padcol(s, hp)
    bn2_t = _padcol(t, hp)

    w3 = _pad2(p["w3"], cbp, hp).astype(bf)                 # (CBp, HP)
    bn3_s, bn3_t = bn_fold(*p["bn3"])
    osc = jnp.tile(p["output_scale"], C)
    omn = jnp.tile(p["output_mean"], C)
    out_s = _padcol(bn3_s * osc, cbp)
    out_t = _padcol(bn3_t * osc + omn, cbp)

    return (in_s, in_t, w1, bn1_s, bn1_t, convw, convs, convt,
            w2cat, bn2_s, bn2_t, w3, out_s, out_t)


# ----------------------------- model wrapper -----------------------------


def openunmix_cnn_forward(x, p):
    """x: (nb_samples, nb_channels, nb_bins, nb_frames) -> same shape."""
    S, C, B, F = x.shape
    H = p["w1"].shape[0]
    cb = C * B
    hp = ((H + 127) // 128) * 128              # hidden padded to lane width
    cbp = ((cb + 7) // 8) * 8                  # C*B padded to sublane width

    # frame tiling
    if F <= TF_MAX:
        tf, fp, nf = F, F, 1
    else:
        tf = TF_MAX
        nf = (F + tf - 1) // tf
        fp = nf * tf

    # (S, C*B, F) is a pure reshape of the PyTorch layout -> no transposes.
    x3 = x.reshape(S, cb, F).astype(jnp.bfloat16)
    x3 = jnp.pad(x3, ((0, 0), (0, cbp - cb), (0, fp - F)))

    # Gather the halo frames for every tile into a small side array so the
    # kernel never needs a manual DMA.  Clamped/out-of-range halo frames are
    # garbage by construction and are masked out inside the kernel.
    idx = np.empty((nf, 2 * HALO), np.int32)
    for fi in range(nf):
        g0 = fi * tf
        idx[fi, :HALO] = np.clip(np.arange(g0 - HALO, g0), 0, fp - 1)
        idx[fi, HALO:] = np.clip(np.arange(g0 + tf, g0 + tf + HALO), 0, fp - 1)
    xh = jnp.take(x3, jnp.asarray(idx.reshape(-1)), axis=2)      # (S, CBp, nf*2H)
    xh = xh.reshape(S, cbp, nf, 2 * HALO).transpose(0, 2, 1, 3)  # (S, nf, CBp, 2H)

    ops = _prepare_params(p, C, B, H, hp, cbp)

    def const(shape):
        nd = len(shape)
        return pl.BlockSpec(shape, lambda s, fi, _nd=nd: (0,) * _nd,
                            pipeline_mode=pl.Buffered(1))

    in_specs = [
        pl.BlockSpec((1, cbp, tf), lambda s, fi: (s, 0, fi)),        # x / mix
        pl.BlockSpec((1, 1, cbp, 2 * HALO), lambda s, fi: (s, fi, 0, 0)),  # halo
        const((cbp, 1)), const((cbp, 1)),                            # input affine
        const((hp, cbp)), const((hp, 1)), const((hp, 1)),            # fc1 / bn1
        const((3, 3, hp, hp)), const((3, hp, 1)), const((3, hp, 1)),  # convs
        const((hp, 2 * hp)), const((hp, 1)), const((hp, 1)),         # fc2 / bn2
        const((cbp, hp)), const((cbp, 1)), const((cbp, 1)),          # fc3 / out
    ]

    kernel = functools.partial(_fused_kernel, nb_frames=F, halo=HALO)

    out = pl.pallas_call(
        kernel,
        out_shape=jax.ShapeDtypeStruct((S, cbp, fp), jnp.float32),
        grid=(S, nf),
        in_specs=in_specs,
        out_specs=pl.BlockSpec((1, cbp, tf), lambda s, fi: (s, 0, fi)),
        compiler_params=pltpu.CompilerParams(
            dimension_semantics=("parallel", "parallel"),
            vmem_limit_bytes=VMEM_LIMIT_BYTES),
    )(x3, xh, *ops)

    return out[:, :cb, :F].reshape(S, C, B, F)


# ----------------------------- pure-JAX reference -----------------------------


def reference_forward(x, p):
    S, C, B, F = x.shape
    H = p["w1"].shape[0]
    xp = jnp.transpose(x, (3, 0, 1, 2))
    mix = xp
    xc = (xp + p["input_mean"]) * p["input_scale"]
    h = xc.reshape(F * S, C * B) @ p["w1"].T
    g, be, rm, rv = p["bn1"]
    h = (h - rm) / jnp.sqrt(rv + BN_EPS) * g + be
    h = jnp.tanh(h).reshape(F, S, H)

    y = jnp.transpose(h, (1, 2, 0))                   # (S, H, F)
    for l in range(3):
        W, b = p[f"conv{l}_w"], p[f"conv{l}_b"]
        y = jax.lax.conv_general_dilated(
            y, W, window_strides=(1,), padding=[(1, 1)],
            dimension_numbers=("NCH", "OIH", "NCH")) + b[None, :, None]
        g, be, rm, rv = p[f"cbn{l}"]
        y = (y - rm[None, :, None]) / jnp.sqrt(rv[None, :, None] + BN_EPS) \
            * g[None, :, None] + be[None, :, None]
        y = jnp.maximum(y, 0.0)
    cnn_out = jnp.transpose(y, (2, 0, 1))             # (F, S, H)

    z = jnp.concatenate([h, cnn_out], -1).reshape(F * S, 2 * H) @ p["w2"].T
    g, be, rm, rv = p["bn2"]
    z = (z - rm) / jnp.sqrt(rv + BN_EPS) * g + be
    z = jnp.maximum(z, 0.0)
    o = z @ p["w3"].T
    g, be, rm, rv = p["bn3"]
    o = (o - rm) / jnp.sqrt(rv + BN_EPS) * g + be
    o = o.reshape(F, S, C, B)
    o = p["output_scale"] * o + p["output_mean"]
    o = jnp.maximum(o, 0.0) * mix
    return jnp.transpose(o, (1, 2, 3, 0))


# ----------------------------- main -----------------------------

if __name__ == "__main__":
    key = jax.random.PRNGKey(0)

    def make_params(C, B, H, k):
        ks = iter(jax.random.split(k, 64))

        def rnd(shape, scale=0.05):
            return scale * jax.random.normal(next(ks), shape, dtype=jnp.float32)

        def bn_params(dim):
            return (1.0 + rnd((dim,), 0.1),
                    rnd((dim,), 0.1),
                    rnd((dim,), 0.1),
                    0.5 + jax.random.uniform(next(ks), (dim,), dtype=jnp.float32))

        params = {
            "w1": rnd((H, C * B)),
            "bn1": bn_params(H),
            "w2": rnd((H, 2 * H)),
            "bn2": bn_params(H),
            "w3": rnd((C * B, H)),
            "bn3": bn_params(C * B),
            "input_mean": rnd((B,), 0.1),
            "input_scale": 1.0 + rnd((B,), 0.1),
            "output_scale": 1.0 + rnd((B,), 0.1),
            "output_mean": 1.0 + rnd((B,), 0.1),
        }
        for l in range(3):
            params[f"conv{l}_w"] = rnd((H, H, 3), 0.1)
            params[f"conv{l}_b"] = rnd((H,), 0.1)
            params[f"cbn{l}"] = bn_params(H)
        return params

    fwd = jax.jit(openunmix_cnn_forward)

    # (S, C, B, F, H): small shapes consistent with the module.
    cases = [
        (2, 2, 64, 8, 32),     # tiny, single frame tile
        (1, 2, 64, 384, 32),   # multi-tile frames (exercises halo + F padding)
        (1, 2, 3, 5, 32),      # C*B and F requiring zero-padding paths
    ]
    for i, (S, C, B, F, H) in enumerate(cases):
        kp, kx = jax.random.split(jax.random.fold_in(key, i))
        params = make_params(C, B, H, kp)
        x = jax.random.normal(kx, (S, C, B, F), dtype=jnp.float32)

        out = jax.block_until_ready(fwd(x, params))
        ref = jax.block_until_ready(reference_forward(x, params))

        assert out.shape == (S, C, B, F), out.shape
        assert bool(jnp.all(jnp.isfinite(out)))
        err = float(jnp.max(jnp.abs(out - ref)))
        assert bool(jnp.allclose(out, ref, rtol=3e-2, atol=3e-2)), (i, err)

    print("KERNEL_OK")
</pallas_src>

<mosaic_0001>
module attributes {stable_mosaic.version = 11 : i64} {
  func.func @_fused_kernel(%arg0: i32, %arg1: i32, %arg2: memref<1x128x8xbf16, #tpu.memory_space<vmem>>, %arg3: memref<1x1x128x8xbf16, #tpu.memory_space<vmem>>, %arg4: memref<128x1xf32, #tpu.memory_space<vmem>>, %arg5: memref<128x1xf32, #tpu.memory_space<vmem>>, %arg6: memref<128x128xbf16, #tpu.memory_space<vmem>>, %arg7: memref<128x1xf32, #tpu.memory_space<vmem>>, %arg8: memref<128x1xf32, #tpu.memory_space<vmem>>, %arg9: memref<3x3x128x128xbf16, #tpu.memory_space<vmem>>, %arg10: memref<3x128x1xf32, #tpu.memory_space<vmem>>, %arg11: memref<3x128x1xf32, #tpu.memory_space<vmem>>, %arg12: memref<128x256xbf16, #tpu.memory_space<vmem>>, %arg13: memref<128x1xf32, #tpu.memory_space<vmem>>, %arg14: memref<128x1xf32, #tpu.memory_space<vmem>>, %arg15: memref<128x128xbf16, #tpu.memory_space<vmem>>, %arg16: memref<128x1xf32, #tpu.memory_space<vmem>>, %arg17: memref<128x1xf32, #tpu.memory_space<vmem>>, %arg18: memref<1x128x8xf32, #tpu.memory_space<vmem>>) attributes {dimension_semantics = [#tpu.dimension_semantics<parallel>, #tpu.dimension_semantics<parallel>], iteration_bounds = array<i64: 2, 1>, scalar_prefetch = 0 : i64, scratch_operands = 0 : i64, tpu.core_type = #tpu.core_type<tc>, window_params = [{transform_indices = @transform_0, window_bounds = array<i64: 1, 128, 8>}, {transform_indices = @transform_1, window_bounds = array<i64: 1, 1, 128, 8>}, {pipeline_mode = #tpu.pipeline_mode<synchronous>, transform_indices = @transform_2, window_bounds = array<i64: 128, 1>}, {pipeline_mode = #tpu.pipeline_mode<synchronous>, transform_indices = @transform_3, window_bounds = array<i64: 128, 1>}, {pipeline_mode = #tpu.pipeline_mode<synchronous>, transform_indices = @transform_4, window_bounds = array<i64: 128, 128>}, {pipeline_mode = #tpu.pipeline_mode<synchronous>, transform_indices = @transform_5, window_bounds = array<i64: 128, 1>}, {pipeline_mode = #tpu.pipeline_mode<synchronous>, transform_indices = @transform_6, window_bounds = array<i64: 128, 1>}, {pipeline_mode = #tpu.pipeline_mode<synchronous>, transform_indices = @transform_7, window_bounds = array<i64: 3, 3, 128, 128>}, {pipeline_mode = #tpu.pipeline_mode<synchronous>, transform_indices = @transform_8, window_bounds = array<i64: 3, 128, 1>}, {pipeline_mode = #tpu.pipeline_mode<synchronous>, transform_indices = @transform_9, window_bounds = array<i64: 3, 128, 1>}, {pipeline_mode = #tpu.pipeline_mode<synchronous>, transform_indices = @transform_10, window_bounds = array<i64: 128, 256>}, {pipeline_mode = #tpu.pipeline_mode<synchronous>, transform_indices = @transform_11, window_bounds = array<i64: 128, 1>}, {pipeline_mode = #tpu.pipeline_mode<synchronous>, transform_indices = @transform_12, window_bounds = array<i64: 128, 1>}, {pipeline_mode = #tpu.pipeline_mode<synchronous>, transform_indices = @transform_13, window_bounds = array<i64: 128, 128>}, {pipeline_mode = #tpu.pipeline_mode<synchronous>, transform_indices = @transform_14, window_bounds = array<i64: 128, 1>}, {pipeline_mode = #tpu.pipeline_mode<synchronous>, transform_indices = @transform_15, window_bounds = array<i64: 128, 1>}, {transform_indices = @transform_16, window_bounds = array<i64: 1, 128, 8>}]} {
    %c8_i32 = arith.constant 8 : i32
    %0 = arith.muli %arg1, %c8_i32 : i32
    %c0 = arith.constant 0 : index
    %c0_0 = arith.constant 0 : index
    %c0_1 = arith.constant 0 : index
    %1 = vector.load %arg2[%c0, %c0_0, %c0_1] : memref<1x128x8xbf16, #tpu.memory_space<vmem>>, vector<1x128x8xbf16>
    %2 = vector.shape_cast %1 : vector<1x128x8xbf16> to vector<128x8xbf16>
    %c0_2 = arith.constant 0 : index
    %c0_3 = arith.constant 0 : index
    %c0_4 = arith.constant 0 : index
    %c0_5 = arith.constant 0 : index
    %3 = vector.load %arg3[%c0_2, %c0_3, %c0_4, %c0_5] : memref<1x1x128x8xbf16, #tpu.memory_space<vmem>>, vector<1x1x128x8xbf16>
    %4 = vector.shape_cast %3 : vector<1x1x128x8xbf16> to vector<128x8xbf16>
    %c0_6 = arith.constant 0 : index
    %c0_7 = arith.constant 0 : index
    %5 = vector.load %arg4[%c0_6, %c0_7] : memref<128x1xf32, #tpu.memory_space<vmem>>, vector<128x1xf32>
    %c0_8 = arith.constant 0 : index
    %c0_9 = arith.constant 0 : index
    %6 = vector.load %arg5[%c0_8, %c0_9] : memref<128x1xf32, #tpu.memory_space<vmem>>, vector<128x1xf32>
    %7 = arith.extf %2 : vector<128x8xbf16> to vector<128x8xf32>
    %8 = vector.broadcast %5 : vector<128x1xf32> to vector<128x8xf32>
    %9 = arith.mulf %7, %8 : vector<128x8xf32>
    %10 = vector.broadcast %6 : vector<128x1xf32> to vector<128x8xf32>
    %11 = arith.addf %9, %10 : vector<128x8xf32>
    %12 = arith.extf %4 : vector<128x8xbf16> to vector<128x8xf32>
    %13 = vector.broadcast %5 : vector<128x1xf32> to vector<128x8xf32>
    %14 = arith.mulf %12, %13 : vector<128x8xf32>
    %15 = vector.broadcast %6 : vector<128x1xf32> to vector<128x8xf32>
    %16 = arith.addf %14, %15 : vector<128x8xf32>
    %c0_10 = arith.constant 0 : index
    %c0_11 = arith.constant 0 : index
    %17 = vector.load %arg6[%c0_10, %c0_11] : memref<128x128xbf16, #tpu.memory_space<vmem>>, vector<128x128xbf16>
    %c0_12 = arith.constant 0 : index
    %c0_13 = arith.constant 0 : index
    %18 = vector.load %arg7[%c0_12, %c0_13] : memref<128x1xf32, #tpu.memory_space<vmem>>, vector<128x1xf32>
    %c0_14 = arith.constant 0 : index
    %c0_15 = arith.constant 0 : index
    %19 = vector.load %arg8[%c0_14, %c0_15] : memref<128x1xf32, #tpu.memory_space<vmem>>, vector<128x1xf32>
    %20 = arith.truncf %11 : vector<128x8xf32> to vector<128x8xbf16>
    %cst = arith.constant dense<0.000000e+00> : vector<128x8xf32>
    %21 = tpu.matmul %17, %20, %cst {dimension_numbers = #tpu.dot_dimension_numbers<[1], [0], [0], [1], [0, 0, 1, 1], [], []>} : vector<128x128xbf16>, vector<128x8xbf16>, vector<128x8xf32> -> vector<128x8xf32>
    %22 = vector.broadcast %18 : vector<128x1xf32> to vector<128x8xf32>
    %23 = arith.mulf %21, %22 : vector<128x8xf32>
    %24 = vector.broadcast %19 : vector<128x1xf32> to vector<128x8xf32>
    %25 = arith.addf %23, %24 : vector<128x8xf32>
    %26 = math.tanh %25 : vector<128x8xf32>
    %27 = arith.truncf %16 : vector<128x8xf32> to vector<128x8xbf16>
    %cst_16 = arith.constant dense<0.000000e+00> : vector<128x8xf32>
    %28 = tpu.matmul %17, %27, %cst_16 {dimension_numbers = #tpu.dot_dimension_numbers<[1], [0], [0], [1], [0, 0, 1, 1], [], []>} : vector<128x128xbf16>, vector<128x8xbf16>, vector<128x8xf32> -> vector<128x8xf32>
    %29 = vector.broadcast %18 : vector<128x1xf32> to vector<128x8xf32>
    %30 = arith.mulf %28, %29 : vector<128x8xf32>
    %31 = vector.broadcast %19 : vector<128x1xf32> to vector<128x8xf32>
    %32 = arith.addf %30, %31 : vector<128x8xf32>
    %33 = math.tanh %32 : vector<128x8xf32>
    %34 = vector.extract_strided_slice %33 {offsets = [0, 0], sizes = [128, 4], strides = [1, 1]} : vector<128x8xf32> to vector<128x4xf32>
    %35 = vector.extract_strided_slice %33 {offsets = [0, 4], sizes = [128, 4], strides = [1, 1]} : vector<128x8xf32> to vector<128x4xf32>
    %36 = tpu.concatenate %34, %26, %35 in 1 : vector<128x4xf32>, vector<128x8xf32>, vector<128x4xf32> -> vector<128x16xf32>
    %37 = tpu.iota {dimensions = array<i32: 1>} : vector<1x16xi32>
    %c4_i32 = arith.constant 4 : i32
    %38 = arith.subi %0, %c4_i32 : i32
    %39 = vector.broadcast %38 : i32 to vector<1x16xi32>
    %40 = arith.addi %37, %39 : vector<1x16xi32>
    %41 = vector.extract_strided_slice %40 {offsets = [0, 1], sizes = [1, 14], strides = [1, 1]} : vector<1x16xi32> to vector<1x14xi32>
    %c0_i32 = arith.constant 0 : i32
    %42 = vector.broadcast %c0_i32 : i32 to vector<1x14xi32>
    %43 = arith.cmpi eq, %41, %42 : vector<1x14xi32>
    %44 = vector.extract_strided_slice %36 {offsets = [0, 0], sizes = [128, 14], strides = [1, 1]} : vector<128x16xf32> to vector<128x14xf32>
    %cst_17 = arith.constant 0.000000e+00 : f32
    %45 = vector.shape_cast %43 : vector<1x14xi1> to vector<1x14xi1>
    %46 = vector.broadcast %45 : vector<1x14xi1> to vector<128x14xi1>
    %47 = vector.broadcast %cst_17 : f32 to vector<128x14xf32>
    %48 = arith.select %46, %47, %44 : vector<128x14xi1>, vector<128x14xf32>
    %49 = vector.extract_strided_slice %36 {offsets = [0, 1], sizes = [128, 14], strides = [1, 1]} : vector<128x16xf32> to vector<128x14xf32>
    %c7_i32 = arith.constant 7 : i32
    %50 = vector.broadcast %c7_i32 : i32 to vector<1x14xi32>
    %51 = arith.cmpi eq, %41, %50 : vector<1x14xi32>
    %52 = vector.extract_strided_slice %36 {offsets = [0, 2], sizes = [128, 14], strides = [1, 1]} : vector<128x16xf32> to vector<128x14xf32>
    %cst_18 = arith.constant 0.000000e+00 : f32
    %53 = vector.shape_cast %51 : vector<1x14xi1> to vector<1x14xi1>
    %54 = vector.broadcast %53 : vector<1x14xi1> to vector<128x14xi1>
    %55 = vector.broadcast %cst_18 : f32 to vector<128x14xf32>
    %56 = arith.select %54, %55, %52 : vector<128x14xi1>, vector<128x14xf32>
    %c0_19 = arith.constant 0 : index
    %c0_20 = arith.constant 0 : index
    %c0_21 = arith.constant 0 : index
    %c0_22 = arith.constant 0 : index
    %57 = vector.load %arg9[%c0_19, %c0_20, %c0_21, %c0_22] : memref<3x3x128x128xbf16, #tpu.memory_space<vmem>>, vector<1x1x128x128xbf16>
    %58 = vector.shape_cast %57 : vector<1x1x128x128xbf16> to vector<128x128xbf16>
    %59 = arith.truncf %48 : vector<128x14xf32> to vector<128x14xbf16>
    %cst_23 = arith.constant dense<0.000000e+00> : vector<128x14xf32>
    %60 = tpu.matmul %58, %59, %cst_23 {dimension_numbers = #tpu.dot_dimension_numbers<[1], [0], [0], [1], [0, 0, 1, 1], [], []>} : vector<128x128xbf16>, vector<128x14xbf16>, vector<128x14xf32> -> vector<128x14xf32>
    %c0_24 = arith.constant 0 : index
    %c1 = arith.constant 1 : index
    %c0_25 = arith.constant 0 : index
    %c0_26 = arith.constant 0 : index
    %61 = vector.load %arg9[%c0_24, %c1, %c0_25, %c0_26] : memref<3x3x128x128xbf16, #tpu.memory_space<vmem>>, vector<1x1x128x128xbf16>
    %62 = vector.shape_cast %61 : vector<1x1x128x128xbf16> to vector<128x128xbf16>
    %63 = arith.truncf %49 : vector<128x14xf32> to vector<128x14xbf16>
    %cst_27 = arith.constant dense<0.000000e+00> : vector<128x14xf32>
    %64 = tpu.matmul %62, %63, %cst_27 {dimension_numbers = #tpu.dot_dimension_numbers<[1], [0], [0], [1], [0, 0, 1, 1], [], []>} : vector<128x128xbf16>, vector<128x14xbf16>, vector<128x14xf32> -> vector<128x14xf32>
    %65 = arith.addf %60, %64 : vector<128x14xf32>
    %c0_28 = arith.constant 0 : index
    %c2 = arith.constant 2 : index
    %c0_29 = arith.constant 0 : index
    %c0_30 = arith.constant 0 : index
    %66 = vector.load %arg9[%c0_28, %c2, %c0_29, %c0_30] : memref<3x3x128x128xbf16, #tpu.memory_space<vmem>>, vector<1x1x128x128xbf16>
    %67 = vector.shape_cast %66 : vector<1x1x128x128xbf16> to vector<128x128xbf16>
    %68 = arith.truncf %56 : vector<128x14xf32> to vector<128x14xbf16>
    %cst_31 = arith.constant dense<0.000000e+00> : vector<128x14xf32>
    %69 = tpu.matmul %67, %68, %cst_31 {dimension_numbers = #tpu.dot_dimension_numbers<[1], [0], [0], [1], [0, 0, 1, 1], [], []>} : vector<128x128xbf16>, vector<128x14xbf16>, vector<128x14xf32> -> vector<128x14xf32>
    %70 = arith.addf %65, %69 : vector<128x14xf32>
    %c0_32 = arith.constant 0 : index
    %c0_33 = arith.constant 0 : index
    %c0_34 = arith.constant 0 : index
    %71 = vector.load %arg10[%c0_32, %c0_33, %c0_34] : memref<3x128x1xf32, #tpu.memory_space<vmem>>, vector<1x128x1xf32>
    %72 = vector.shape_cast %71 : vector<1x128x1xf32> to vector<128x1xf32>
    %73 = vector.broadcast %72 : vector<128x1xf32> to vector<128x14xf32>
    %74 = arith.mulf %70, %73 : vector<128x14xf32>
    %c0_35 = arith.constant 0 : index
    %c0_36 = arith.constant 0 : index
    %c0_37 = arith.constant 0 : index
    %75 = vector.load %arg11[%c0_35, %c0_36, %c0_37] : memref<3x128x1xf32, #tpu.memory_space<vmem>>, vector<1x128x1xf32>
    %76 = vector.shape_cast %75 : vector<1x128x1xf32> to vector<128x1xf32>
    %77 = vector.broadcast %76 : vector<128x1xf32> to vector<128x14xf32>
    %78 = arith.addf %74, %77 : vector<128x14xf32>
    %cst_38 = arith.constant 0.000000e+00 : f32
    %79 = vector.broadcast %cst_38 : f32 to vector<128x14xf32>
    %80 = arith.maximumf %78, %79 : vector<128x14xf32>
    %81 = vector.extract_strided_slice %40 {offsets = [0, 2], sizes = [1, 12], strides = [1, 1]} : vector<1x16xi32> to vector<1x12xi32>
    %c0_i32_39 = arith.constant 0 : i32
    %82 = vector.broadcast %c0_i32_39 : i32 to vector<1x12xi32>
    %83 = arith.cmpi eq, %81, %82 : vector<1x12xi32>
    %84 = vector.extract_strided_slice %80 {offsets = [0, 0], sizes = [128, 12], strides = [1, 1]} : vector<128x14xf32> to vector<128x12xf32>
    %cst_40 = arith.constant 0.000000e+00 : f32
    %85 = vector.shape_cast %83 : vector<1x12xi1> to vector<1x12xi1>
    %86 = vector.broadcast %85 : vector<1x12xi1> to vector<128x12xi1>
    %87 = vector.broadcast %cst_40 : f32 to vector<128x12xf32>
    %88 = arith.select %86, %87, %84 : vector<128x12xi1>, vector<128x12xf32>
    %89 = vector.extract_strided_slice %80 {offsets = [0, 1], sizes = [128, 12], strides = [1, 1]} : vector<128x14xf32> to vector<128x12xf32>
    %c7_i32_41 = arith.constant 7 : i32
    %90 = vector.broadcast %c7_i32_41 : i32 to vector<1x12xi32>
    %91 = arith.cmpi eq, %81, %90 : vector<1x12xi32>
    %92 = vector.extract_strided_slice %80 {offsets = [0, 2], sizes = [128, 12], strides = [1, 1]} : vector<128x14xf32> to vector<128x12xf32>
    %cst_42 = arith.constant 0.000000e+00 : f32
    %93 = vector.shape_cast %91 : vector<1x12xi1> to vector<1x12xi1>
    %94 = vector.broadcast %93 : vector<1x12xi1> to vector<128x12xi1>
    %95 = vector.broadcast %cst_42 : f32 to vector<128x12xf32>
    %96 = arith.select %94, %95, %92 : vector<128x12xi1>, vector<128x12xf32>
    %c1_43 = arith.constant 1 : index
    %c0_44 = arith.constant 0 : index
    %c0_45 = arith.constant 0 : index
    %c0_46 = arith.constant 0 : index
    %97 = vector.load %arg9[%c1_43, %c0_44, %c0_45, %c0_46] : memref<3x3x128x128xbf16, #tpu.memory_space<vmem>>, vector<1x1x128x128xbf16>
    %98 = vector.shape_cast %97 : vector<1x1x128x128xbf16> to vector<128x128xbf16>
    %99 = arith.truncf %88 : vector<128x12xf32> to vector<128x12xbf16>
    %cst_47 = arith.constant dense<0.000000e+00> : vector<128x12xf32>
    %100 = tpu.matmul %98, %99, %cst_47 {dimension_numbers = #tpu.dot_dimension_numbers<[1], [0], [0], [1], [0, 0, 1, 1], [], []>} : vector<128x128xbf16>, vector<128x12xbf16>, vector<128x12xf32> -> vector<128x12xf32>
    %c1_48 = arith.constant 1 : index
    %c1_49 = arith.constant 1 : index
    %c0_50 = arith.constant 0 : index
    %c0_51 = arith.constant 0 : index
    %101 = vector.load %arg9[%c1_48, %c1_49, %c0_50, %c0_51] : memref<3x3x128x128xbf16, #tpu.memory_space<vmem>>, vector<1x1x128x128xbf16>
    %102 = vector.shape_cast %101 : vector<1x1x128x128xbf16> to vector<128x128xbf16>
    %103 = arith.truncf %89 : vector<128x12xf32> to vector<128x12xbf16>
    %cst_52 = arith.constant dense<0.000000e+00> : vector<128x12xf32>
    %104 = tpu.matmul %102, %103, %cst_52 {dimension_numbers = #tpu.dot_dimension_numbers<[1], [0], [0], [1], [0, 0, 1, 1], [], []>} : vector<128x128xbf16>, vector<128x12xbf16>, vector<128x12xf32> -> vector<128x12xf32>
    %105 = arith.addf %100, %104 : vector<128x12xf32>
    %c1_53 = arith.constant 1 : index
    %c2_54 = arith.constant 2 : index
    %c0_55 = arith.constant 0 : index
    %c0_56 = arith.constant 0 : index
    %106 = vector.load %arg9[%c1_53, %c2_54, %c0_55, %c0_56] : memref<3x3x128x128xbf16, #tpu.memory_space<vmem>>, vector<1x1x128x128xbf16>
    %107 = vector.shape_cast %106 : vector<1x1x128x128xbf16> to vector<128x128xbf16>
    %108 = arith.truncf %96 : vector<128x12xf32> to vector<128x12xbf16>
    %cst_57 = arith.constant dense<0.000000e+00> : vector<128x12xf32>
    %109 = tpu.matmul %107, %108, %cst_57 {dimension_numbers = #tpu.dot_dimension_numbers<[1], [0], [0], [1], [0, 0, 1, 1], [], []>} : vector<128x128xbf16>, vector<128x12xbf16>, vector<128x12xf32> -> vector<128x12xf32>
    %110 = arith.addf %105, %109 : vector<128x12xf32>
    %c1_58 = arith.constant 1 : index
    %c0_59 = arith.constant 0 : index
    %c0_60 = arith.constant 0 : index
    %111 = vector.load %arg10[%c1_58, %c0_59, %c0_60] : memref<3x128x1xf32, #tpu.memory_space<vmem>>, vector<1x128x1xf32>
    %112 = vector.shape_cast %111 : vector<1x128x1xf32> to vector<128x1xf32>
    %113 = vector.broadcast %112 : vector<128x1xf32> to vector<128x12xf32>
    %114 = arith.mulf %110, %113 : vector<128x12xf32>
    %c1_61 = arith.constant 1 : index
    %c0_62 = arith.constant 0 : index
    %c0_63 = arith.constant 0 : index
    %115 = vector.load %arg11[%c1_61, %c0_62, %c0_63] : memref<3x128x1xf32, #tpu.memory_space<vmem>>, vector<1x128x1xf32>
    %116 = vector.shape_cast %115 : vector<1x128x1xf32> to vector<128x1xf32>
    %117 = vector.broadcast %116 : vector<128x1xf32> to vector<128x12xf32>
    %118 = arith.addf %114, %117 : vector<128x12xf32>
    %cst_64 = arith.constant 0.000000e+00 : f32
    %119 = vector.broadcast %cst_64 : f32 to vector<128x12xf32>
    %120 = arith.maximumf %118, %119 : vector<128x12xf32>
    %121 = vector.extract_strided_slice %40 {offsets = [0, 3], sizes = [1, 10], strides = [1, 1]} : vector<1x16xi32> to vector<1x10xi32>
    %c0_i32_65 = arith.constant 0 : i32
    %122 = vector.broadcast %c0_i32_65 : i32 to vector<1x10xi32>
    %123 = arith.cmpi eq, %121, %122 : vector<1x10xi32>
    %124 = vector.extract_strided_slice %120 {offsets = [0, 0], sizes = [128, 10], strides = [1, 1]} : vector<128x12xf32> to vector<128x10xf32>
    %cst_66 = arith.constant 0.000000e+00 : f32
    %125 = vector.shape_cast %123 : vector<1x10xi1> to vector<1x10xi1>
    %126 = vector.broadcast %125 : vector<1x10xi1> to vector<128x10xi1>
    %127 = vector.broadcast %cst_66 : f32 to vector<128x10xf32>
    %128 = arith.select %126, %127, %124 : vector<128x10xi1>, vector<128x10xf32>
    %129 = vector.extract_strided_slice %120 {offsets = [0, 1], sizes = [128, 10], strides = [1, 1]} : vector<128x12xf32> to vector<128x10xf32>
    %c7_i32_67 = arith.constant 7 : i32
    %130 = vector.broadcast %c7_i32_67 : i32 to vector<1x10xi32>
    %131 = arith.cmpi eq, %121, %130 : vector<1x10xi32>
    %132 = vector.extract_strided_slice %120 {offsets = [0, 2], sizes = [128, 10], strides = [1, 1]} : vector<128x12xf32> to vector<128x10xf32>
    %cst_68 = arith.constant 0.000000e+00 : f32
    %133 = vector.shape_cast %131 : vector<1x10xi1> to vector<1x10xi1>
    %134 = vector.broadcast %133 : vector<1x10xi1> to vector<128x10xi1>
    %135 = vector.broadcast %cst_68 : f32 to vector<128x10xf32>
    %136 = arith.select %134, %135, %132 : vector<128x10xi1>, vector<128x10xf32>
    %c2_69 = arith.constant 2 : index
    %c0_70 = arith.constant 0 : index
    %c0_71 = arith.constant 0 : index
    %c0_72 = arith.constant 0 : index
    %137 = vector.load %arg9[%c2_69, %c0_70, %c0_71, %c0_72] : memref<3x3x128x128xbf16, #tpu.memory_space<vmem>>, vector<1x1x128x128xbf16>
    %138 = vector.shape_cast %137 : vector<1x1x128x128xbf16> to vector<128x128xbf16>
    %139 = arith.truncf %128 : vector<128x10xf32> to vector<128x10xbf16>
    %cst_73 = arith.constant dense<0.000000e+00> : vector<128x10xf32>
    %140 = tpu.matmul %138, %139, %cst_73 {dimension_numbers = #tpu.dot_dimension_numbers<[1], [0], [0], [1], [0, 0, 1, 1], [], []>} : vector<128x128xbf16>, vector<128x10xbf16>, vector<128x10xf32> -> vector<128x10xf32>
    %c2_74 = arith.constant 2 : index
    %c1_75 = arith.constant 1 : index
    %c0_76 = arith.constant 0 : index
    %c0_77 = arith.constant 0 : index
    %141 = vector.load %arg9[%c2_74, %c1_75, %c0_76, %c0_77] : memref<3x3x128x128xbf16, #tpu.memory_space<vmem>>, vector<1x1x128x128xbf16>
    %142 = vector.shape_cast %141 : vector<1x1x128x128xbf16> to vector<128x128xbf16>
    %143 = arith.truncf %129 : vector<128x10xf32> to vector<128x10xbf16>
    %cst_78 = arith.constant dense<0.000000e+00> : vector<128x10xf32>
    %144 = tpu.matmul %142, %143, %cst_78 {dimension_numbers = #tpu.dot_dimension_numbers<[1], [0], [0], [1], [0, 0, 1, 1], [], []>} : vector<128x128xbf16>, vector<128x10xbf16>, vector<128x10xf32> -> vector<128x10xf32>
    %145 = arith.addf %140, %144 : vector<128x10xf32>
    %c2_79 = arith.constant 2 : index
    %c2_80 = arith.constant 2 : index
    %c0_81 = arith.constant 0 : index
    %c0_82 = arith.constant 0 : index
    %146 = vector.load %arg9[%c2_79, %c2_80, %c0_81, %c0_82] : memref<3x3x128x128xbf16, #tpu.memory_space<vmem>>, vector<1x1x128x128xbf16>
    %147 = vector.shape_cast %146 : vector<1x1x128x128xbf16> to vector<128x128xbf16>
    %148 = arith.truncf %136 : vector<128x10xf32> to vector<128x10xbf16>
    %cst_83 = arith.constant dense<0.000000e+00> : vector<128x10xf32>
    %149 = tpu.matmul %147, %148, %cst_83 {dimension_numbers = #tpu.dot_dimension_numbers<[1], [0], [0], [1], [0, 0, 1, 1], [], []>} : vector<128x128xbf16>, vector<128x10xbf16>, vector<128x10xf32> -> vector<128x10xf32>
    %150 = arith.addf %145, %149 : vector<128x10xf32>
    %c2_84 = arith.constant 2 : index
    %c0_85 = arith.constant 0 : index
    %c0_86 = arith.constant 0 : index
    %151 = vector.load %arg10[%c2_84, %c0_85, %c0_86] : memref<3x128x1xf32, #tpu.memory_space<vmem>>, vector<1x128x1xf32>
    %152 = vector.shape_cast %151 : vector<1x128x1xf32> to vector<128x1xf32>
    %153 = vector.broadcast %152 : vector<128x1xf32> to vector<128x10xf32>
    %154 = arith.mulf %150, %153 : vector<128x10xf32>
    %c2_87 = arith.constant 2 : index
    %c0_88 = arith.constant 0 : index
    %c0_89 = arith.constant 0 : index
    %155 = vector.load %arg11[%c2_87, %c0_88, %c0_89] : memref<3x128x1xf32, #tpu.memory_space<vmem>>, vector<1x128x1xf32>
    %156 = vector.shape_cast %155 : vector<1x128x1xf32> to vector<128x1xf32>
    %157 = vector.broadcast %156 : vector<128x1xf32> to vector<128x10xf32>
    %158 = arith.addf %154, %157 : vector<128x10xf32>
    %cst_90 = arith.constant 0.000000e+00 : f32
    %159 = vector.broadcast %cst_90 : f32 to vector<128x10xf32>
    %160 = arith.maximumf %158, %159 : vector<128x10xf32>
    %161 = vector.extract_strided_slice %160 {offsets = [0, 1], sizes = [128, 8], strides = [1, 1]} : vector<128x10xf32> to vector<128x8xf32>
    %162 = tpu.concatenate %26, %161 in 0 : vector<128x8xf32>, vector<128x8xf32> -> vector<256x8xf32>
    %163 = arith.truncf %162 : vector<256x8xf32> to vector<256x8xbf16>
    %c0_91 = arith.constant 0 : index
    %c0_92 = arith.constant 0 : index
    %164 = vector.load %arg12[%c0_91, %c0_92] : memref<128x256xbf16, #tpu.memory_space<vmem>>, vector<128x256xbf16>
    %cst_93 = arith.constant dense<0.000000e+00> : vector<128x8xf32>
    %165 = tpu.matmul %164, %163, %cst_93 {dimension_numbers = #tpu.dot_dimension_numbers<[1], [0], [0], [1], [0, 0, 1, 1], [], []>} : vector<128x256xbf16>, vector<256x8xbf16>, vector<128x8xf32> -> vector<128x8xf32>
    %c0_94 = arith.constant 0 : index
    %c0_95 = arith.constant 0 : index
    %166 = vector.load %arg13[%c0_94, %c0_95] : memref<128x1xf32, #tpu.memory_space<vmem>>, vector<128x1xf32>
    %167 = vector.broadcast %166 : vector<128x1xf32> to vector<128x8xf32>
    %168 = arith.mulf %165, %167 : vector<128x8xf32>
    %c0_96 = arith.constant 0 : index
    %c0_97 = arith.constant 0 : index
    %169 = vector.load %arg14[%c0_96, %c0_97] : memref<128x1xf32, #tpu.memory_space<vmem>>, vector<128x1xf32>
    %170 = vector.broadcast %169 : vector<128x1xf32> to vector<128x8xf32>
    %171 = arith.addf %168, %170 : vector<128x8xf32>
    %cst_98 = arith.constant 0.000000e+00 : f32
    %172 = vector.broadcast %cst_98 : f32 to vector<128x8xf32>
    %173 = arith.maximumf %171, %172 : vector<128x8xf32>
    %c0_99 = arith.constant 0 : index
    %c0_100 = arith.constant 0 : index
    %174 = vector.load %arg15[%c0_99, %c0_100] : memref<128x128xbf16, #tpu.memory_space<vmem>>, vector<128x128xbf16>
    %175 = arith.truncf %173 : vector<128x8xf32> to vector<128x8xbf16>
    %cst_101 = arith.constant dense<0.000000e+00> : vector<128x8xf32>
    %176 = tpu.matmul %174, %175, %cst_101 {dimension_numbers = #tpu.dot_dimension_numbers<[1], [0], [0], [1], [0, 0, 1, 1], [], []>} : vector<128x128xbf16>, vector<128x8xbf16>, vector<128x8xf32> -> vector<128x8xf32>
    %c0_102 = arith.constant 0 : index
    %c0_103 = arith.constant 0 : index
    %177 = vector.load %arg16[%c0_102, %c0_103] : memref<128x1xf32, #tpu.memory_space<vmem>>, vector<128x1xf32>
    %178 = vector.broadcast %177 : vector<128x1xf32> to vector<128x8xf32>
    %179 = arith.mulf %176, %178 : vector<128x8xf32>
    %c0_104 = arith.constant 0 : index
    %c0_105 = arith.constant 0 : index
    %180 = vector.load %arg17[%c0_104, %c0_105] : memref<128x1xf32, #tpu.memory_space<vmem>>, vector<128x1xf32>
    %181 = vector.broadcast %180 : vector<128x1xf32> to vector<128x8xf32>
    %182 = arith.addf %179, %181 : vector<128x8xf32>
    %cst_106 = arith.constant 0.000000e+00 : f32
    %183 = vector.broadcast %cst_106 : f32 to vector<128x8xf32>
    %184 = arith.maximumf %182, %183 : vector<128x8xf32>
    %185 = arith.extf %2 : vector<128x8xbf16> to vector<128x8xf32>
    %186 = arith.mulf %184, %185 : vector<128x8xf32>
    %c0_107 = arith.constant 0 : index
    %c0_108 = arith.constant 0 : index
    %c0_109 = arith.constant 0 : index
    %187 = vector.load %arg18[%c0_107, %c0_108, %c0_109] : memref<1x128x8xf32, #tpu.memory_space<vmem>>, vector<1x128x8xf32>
    %188 = vector.shape_cast %187 : vector<1x128x8xf32> to vector<128x8xf32>
    %189 = vector.shape_cast %186 : vector<128x8xf32> to vector<1x128x8xf32>
    tpu.vector_store %arg18[%c0_107, %c0_108, %c0_109], %189 {strides = array<i32>} : memref<1x128x8xf32, #tpu.memory_space<vmem>>, vector<1x128x8xf32>,
    return
  }
  func.func @transform_0(%arg0: i32, %arg1: i32) -> (i32, i32, i32) {
    %c0_i32 = arith.constant 0 : i32
    %c0_i32_0 = arith.constant 0 : i32
    return %arg0, %c0_i32, %arg1 : i32, i32, i32
  }
  func.func @transform_1(%arg0: i32, %arg1: i32) -> (i32, i32, i32, i32) {
    %c0_i32 = arith.constant 0 : i32
    %c0_i32_0 = arith.constant 0 : i32
    %c0_i32_1 = arith.constant 0 : i32
    return %arg0, %arg1, %c0_i32, %c0_i32_0 : i32, i32, i32, i32
  }
  func.func @transform_2(%arg0: i32, %arg1: i32) -> (i32, i32) {
    %c0_i32 = arith.constant 0 : i32
    %c0_i32_0 = arith.constant 0 : i32
    %c0_i32_1 = arith.constant 0 : i32
    return %c0_i32, %c0_i32_0 : i32, i32
  }
  func.func @transform_3(%arg0: i32, %arg1: i32) -> (i32, i32) {
    %c0_i32 = arith.constant 0 : i32
    %c0_i32_0 = arith.constant 0 : i32
    %c0_i32_1 = arith.constant 0 : i32
    return %c0_i32, %c0_i32_0 : i32, i32
  }
  func.func @transform_4(%arg0: i32, %arg1: i32) -> (i32, i32) {
    %c0_i32 = arith.constant 0 : i32
    %c0_i32_0 = arith.constant 0 : i32
    %c0_i32_1 = arith.constant 0 : i32
    return %c0_i32, %c0_i32_0 : i32, i32
  }
  func.func @transform_5(%arg0: i32, %arg1: i32) -> (i32, i32) {
    %c0_i32 = arith.constant 0 : i32
    %c0_i32_0 = arith.constant 0 : i32
    %c0_i32_1 = arith.constant 0 : i32
    return %c0_i32, %c0_i32_0 : i32, i32
  }
  func.func @transform_6(%arg0: i32, %arg1: i32) -> (i32, i32) {
    %c0_i32 = arith.constant 0 : i32
    %c0_i32_0 = arith.constant 0 : i32
    %c0_i32_1 = arith.constant 0 : i32
    return %c0_i32, %c0_i32_0 : i32, i32
  }
  func.func @transform_7(%arg0: i32, %arg1: i32) -> (i32, i32, i32, i32) {
    %c0_i32 = arith.constant 0 : i32
    %c0_i32_0 = arith.constant 0 : i32
    %c0_i32_1 = arith.constant 0 : i32
    %c0_i32_2 = arith.constant 0 : i32
    %c0_i32_3 = arith.constant 0 : i32
    return %c0_i32, %c0_i32_0, %c0_i32_1, %c0_i32_2 : i32, i32, i32, i32
  }
  func.func @transform_8(%arg0: i32, %arg1: i32) -> (i32, i32, i32) {
    %c0_i32 = arith.constant 0 : i32
    %c0_i32_0 = arith.constant 0 : i32
    %c0_i32_1 = arith.constant 0 : i32
    %c0_i32_2 = arith.constant 0 : i32
    return %c0_i32, %c0_i32_0, %c0_i32_1 : i32, i32, i32
  }
  func.func @transform_9(%arg0: i32, %arg1: i32) -> (i32, i32, i32) {
    %c0_i32 = arith.constant 0 : i32
    %c0_i32_0 = arith.constant 0 : i32
    %c0_i32_1 = arith.constant 0 : i32
    %c0_i32_2 = arith.constant 0 : i32
    return %c0_i32, %c0_i32_0, %c0_i32_1 : i32, i32, i32
  }
  func.func @transform_10(%arg0: i32, %arg1: i32) -> (i32, i32) {
    %c0_i32 = arith.constant 0 : i32
    %c0_i32_0 = arith.constant 0 : i32
    %c0_i32_1 = arith.constant 0 : i32
    return %c0_i32, %c0_i32_0 : i32, i32
  }
  func.func @transform_11(%arg0: i32, %arg1: i32) -> (i32, i32) {
    %c0_i32 = arith.constant 0 : i32
    %c0_i32_0 = arith.constant 0 : i32
    %c0_i32_1 = arith.constant 0 : i32
    return %c0_i32, %c0_i32_0 : i32, i32
  }
  func.func @transform_12(%arg0: i32, %arg1: i32) -> (i32, i32) {
    %c0_i32 = arith.constant 0 : i32
    %c0_i32_0 = arith.constant 0 : i32
    %c0_i32_1 = arith.constant 0 : i32
    return %c0_i32, %c0_i32_0 : i32, i32
  }
  func.func @transform_13(%arg0: i32, %arg1: i32) -> (i32, i32) {
    %c0_i32 = arith.constant 0 : i32
    %c0_i32_0 = arith.constant 0 : i32
    %c0_i32_1 = arith.constant 0 : i32
    return %c0_i32, %c0_i32_0 : i32, i32
  }
  func.func @transform_14(%arg0: i32, %arg1: i32) -> (i32, i32) {
    %c0_i32 = arith.constant 0 : i32
    %c0_i32_0 = arith.constant 0 : i32
    %c0_i32_1 = arith.constant 0 : i32
    return %c0_i32, %c0_i32_0 : i32, i32
  }
  func.func @transform_15(%arg0: i32, %arg1: i32) -> (i32, i32) {
    %c0_i32 = arith.constant 0 : i32
    %c0_i32_0 = arith.constant 0 : i32
    %c0_i32_1 = arith.constant 0 : i32
    return %c0_i32, %c0_i32_0 : i32, i32
  }
  func.func @transform_16(%arg0: i32, %arg1: i32) -> (i32, i32, i32) {
    %c0_i32 = arith.constant 0 : i32
    %c0_i32_0 = arith.constant 0 : i32
    return %arg0, %c0_i32, %arg1 : i32, i32, i32
  }
}

</mosaic_0001>

<bundles_post_ra>
// kernel: mul.6
= control target key start
LH: loop header
LB: loop body
LE: loop exit
PB: predicated region body
PF: predicated region fallthrough
CT: control target
= control target key end

     0   :  { %s34_s0 = inlined_call_operand.vmem [shape: f32[128,1], index: 0, kind: input, shape index: {}]   ;;  %s35_s1 = inlined_call_operand.vmem [shape: f32[128,1], index: 1, kind: input, shape index: {}]   ;;  %s36_s2 = inlined_call_operand.vmem [shape: f32[128,1], index: 2, kind: output, shape index: {}]  }
   0x1   :  { %v3_v0 = vld [vmem:[%s34_s0] sm:$0x1] }
   0x2   :  { %v4_v1 = vld [vmem:[%s35_s1] sm:$0x1] }
   0x3   :  { %v7_v2 = vmul.f32 %v4_v1, %v3_v0 }
   0x5   :  { %9 = vst [vmem:[%s36_s2] sm:$0x1] %v7_v2 }

// kernel: tile.28
= control target key start
LH: loop header
LB: loop body
LE: loop exit
PB: predicated region body
PF: predicated region fallthrough
CT: control target
= control target key end

     0   :  { %s22_s0 = inlined_call_operand.vmem [shape: f32[64], index: 0, kind: input, shape index: {}]   ;;  %s23_s1 = inlined_call_operand.vmem [shape: f32[2,64], index: 1, kind: output, shape index: {}]  }
   0x1   :  { %v4_v0 = vld [vmem:[%s22_s0] ss:$0 sm:$0xff] }
   0x2   :  { %5 = vst [vmem:[%s23_s1] sm:$0x3] %v4_v0 }

// kernel: tile.39
= control target key start
LH: loop header
LB: loop body
LE: loop exit
PB: predicated region body
PF: predicated region fallthrough
CT: control target
= control target key end

     0   :  { %vm7_vm0 = vcmask 523264   ;;  %vm13_vm1 = vcmask 1048064   ;;  %s39_s0 = inlined_call_operand.vmem [shape: f32[2,64], index: 0, kind: input, shape index: {}]   ;;  %s40_s1 = inlined_call_operand.vmem [shape: f32[128], index: 1, kind: output, shape index: {}]  }
   0x1   :  { %v4_v0 = vld [vmem:[%s39_s0] sm:$0x3]  ;;  %s22_s0 = smov 64  }
   0x2   :  { %5 = vst [vmem:[#allocation1] sm:$0x3] %v4_v0 }
   0x9   :  { %v10_v1 = vld [vmem:[#allocation1 + $0x1] sm:$0x1]   ;;  %v6_v2 = vld [vmem:[#allocation1] sm:$0x1]  }
   0xa   :  { %11 = vrot.lane.b32.xlu0 %v10_v1, %s22_s0  ;;  %8 = vst.msk [vmem:[#allocation0] sm:$0x1] %vm7_vm0, %v6_v2  }
  0x7c   :  { %v12_v3 = vpop.permute.xlu0 %11  }
  0x7d   :  { %14 = vst.msk [vmem:[#allocation0] sm:$0x1] %vm13_vm1, %v12_v3  }
  0x84   :  { %v18_v4 = vld [vmem:[#allocation0] sm:$0x1] }
  0x85   :  { %20 = vst [vmem:[%s40_s1] sm:$0x1] %v18_v4 }

// kernel: openunmix_cnn_forward.1
= control target key start
LH: loop header
LB: loop body
LE: loop exit
PB: predicated region body
PF: predicated region fallthrough
CT: control target
= control target key end

     0   :  { %s9988_s0 = inlined_call_operand.hbm [shape: bf16[2,128,8], index: 0, kind: input, shape index: {}]   ;;  %s9989_s1 = inlined_call_operand.hbm [shape: bf16[2,1,128,8], index: 1, kind: input, shape index: {}]   ;;  %s9990_s2 = inlined_call_operand.hbm [shape: f32[128,1], index: 2, kind: input, shape index: {}]   ;;  %s9991_s3 = inlined_call_operand.hbm [shape: f32[128,1], index: 3, kind: input, shape index: {}]   ;;  %s9992_s4 = inlined_call_operand.hbm [shape: bf16[128,128], index: 4, kind: input, shape index: {}]   ;;  %s9993_s5 = inlined_call_operand.hbm [shape: f32[128,1], index: 5, kind: input, shape index: {}]   ;;  %s9994_s6 = inlined_call_operand.hbm [shape: f32[128,1], index: 6, kind: input, shape index: {}]   ;;  %s9995_s7 = inlined_call_operand.hbm [shape: bf16[3,3,128,128], index: 7, kind: input, shape index: {}]   ;;  %s9996_s8 = inlined_call_operand.hbm [shape: f32[3,128,1], index: 8, kind: input, shape index: {}]   ;;  %s9997_s9 = inlined_call_operand.hbm [shape: f32[3,128,1], index: 9, kind: input, shape index: {}]   ;;  %s9998_s10 = inlined_call_operand.hbm [shape: bf16[128,256], index: 10, kind: input, shape index: {}]   ;;  %s9999_s11 = inlined_call_operand.hbm [shape: f32[128,1], index: 11, kind: input, shape index: {}]   ;;  %s10000_s12 = inlined_call_operand.hbm [shape: f32[128,1], index: 12, kind: input, shape index: {}]   ;;  %s10001_s13 = inlined_call_operand.hbm [shape: bf16[128,128], index: 13, kind: input, shape index: {}]   ;;  %s10002_s14 = inlined_call_operand.hbm [shape: f32[128,1], index: 14, kind: input, shape index: {}]   ;;  %s10003_s15 = inlined_call_operand.hbm [shape: f32[128,1], index: 15, kind: input, shape index: {}]   ;;  %s10004_s16 = inlined_call_operand.hbm [shape: f32[2,128,8], index: 16, kind: output, shape index: {}]  }
   0x1   :  { %10050 = sst [smem:[#allocation51_spill]] %s9988_s0 }
   0x2   :  { %10051 = sst [smem:[#allocation52_spill]] %s9989_s1 }
   0x3   :  { %10052 = sst [smem:[#allocation53_spill]] %s9990_s2 }
   0x4   :  { %10053 = sst [smem:[#allocation54_spill]] %s9991_s3 }
   0x5   :  { %10054 = sst [smem:[#allocation55_spill]] %s9992_s4 }
   0x6   :  { %10055 = sst [smem:[#allocation56_spill]] %s9993_s5 }
   0x7   :  { %10056 = sst [smem:[#allocation57_spill]] %s9994_s6 }
   0x8   :  { %10057 = sst [smem:[#allocation58_spill]] %s9995_s7 }
   0x9   :  { %10058 = sst [smem:[#allocation59_spill]] %s9996_s8 }
   0xa   :  { %10059 = sst [smem:[#allocation60_spill]] %s9997_s9 }
   0xb   :  { %10060 = sst [smem:[#allocation61_spill]] %s9998_s10 }
   0xc   :  { %10061 = sst [smem:[#allocation62_spill]] %s9999_s11 }
   0xd   :  { %10062 = sst [smem:[#allocation63_spill]] %s10004_s16 }
   0xe   :  { %21 = vsyncpa [#allocation3], 0 }
   0xf   :  { %23 = vsyncpa [#allocation3 + $0x1], 0 }
  0x10   :  { %24 = vsyncpa [#allocation6], 0 }
  0x11   :  { %26 = vsyncpa [#allocation6 + $0x1], 0 }
  0x12   :  { %27 = vsyncpa [#allocation9], 0 }
  0x13   :  { %28 = vsyncpa [#allocation12], 0 }
  0x14   :  { %29 = vsyncpa [#allocation15], 0 }
  0x15   :  { %30 = vsyncpa [#allocation18], 0 }
  0x16   :  { %31 = vsyncpa [#allocation21], 0 }
  0x17   :  { %32 = vsyncpa [#allocation24], 0 }
  0x18   :  { %33 = vsyncpa [#allocation27], 0 }
  0x19   :  { %34 = vsyncpa [#allocation4], 0 }
  0x1a   :  { %36 = vsyncpa [#allocation4 + $0x1], 0  ;;  %s8424_s21 = smov 0   ;;  %s8426_s22 = smov 0  }
  0x1b   :  { %s8428_s23 = smov 0   ;;  %s8430_s24 = smov 0  }
  0x1c   :  { %s8432_s25 = smov 0   ;;  %s8434_s26 = smov 0  }
  0x1d LB: > { %10063 = sst [smem:[#allocation40_spill]] %s8286_s21  ;;  %s8455_s27 = sadd.s32 4294967295, %s8306_s26   ;;  %s8306_s26 = sphi %s8434_s26, %s42_s26   ;;  %s8302_s25 = sphi %s8432_s25, %s10172_s25   ;;  %s8298_s24 = sphi %s8430_s24, %s10169_s24   ;;  %s8294_s23 = sphi %s8428_s23, %s10171_s23   ;;  %s8290_s22 = sphi %s8426_s22, %s10167_s22   ;;  %s8286_s21 = sphi %s8424_s21, %s10170_s21  }
  0x1e   : > { %10064 = sst [smem:[#allocation41_spill]] %s8290_s22  ;;  %p6050_p0 = scmp.ge.s32.totalorder %s8306_s26, 1 }
  0x1f   : > { %10065 = sst [smem:[#allocation42_spill]] %s8294_s23  ;;  %p10015_p1 = scmp.eq.s32.totalorder %s8455_s27, 0 }
  0x20   : > { %10066 = sst [smem:[#allocation43_spill]] %s8298_s24  ;;  %p437_p2 = scmp.lt.s32.totalorder %s8306_s26, 3 }
  0x21   : > { %10067 = sst [smem:[#allocation44_spill]] %s8302_s25  ;;  %s8308_s29 = smov [#allocation7]  }
  0x22   : > { %10068 = sst [smem:[#allocation45_spill]] %s8455_s27  ;;  %p8460_p3 = pnand %p6050_p0, %p437_p2 }
  0x23   : > { %s449_s30 = sshll.u32 %s8308_s29, 4  ;;  %s8309_s17 = smov [#allocation8]   ;;  %s8464_s30 = int_to_ptr.vmem [resolvable:$true] %s449_s30 }
  0x24   : > { %s10069_s28 = scalar_select %p8460_p3, 1, 0 }
  0x25   : > { %p7078_p4 = pneg %p8460_p3  ;;  %s462_s18 = sshll.u32 %s8309_s17, 4  ;;  %s8475_s18 = int_to_ptr.vmem [resolvable:$true] %s462_s18 }
  0x26   : > { %10070 = sst [smem:[#allocation46_spill]] %s10069_s28  ;;  %s8310_s19 = smov [#allocation11]  }
  0x27   : > { %p8471_p6 = pnand %p7078_p4, %p10015_p1  ;;  %s8477_s20 = sshll.u32 %s8310_s19, 4  ;;  %s489_s20 = int_to_ptr.vmem [resolvable:$true] %s8477_s20 }
  0x28   : > { %s10072_s2 = sld [smem:[#allocation53_spill]] }
  0x29   : > { %p8487_p8 = pneg %p8471_p6 }
  0x2e   : > { %s7736_s24 = scalar_lea.hbm %s10072_s2, 2048 }
  0x2f   : > { %p7737_p7 = scmp.ne.s32.totalorder %s10072_s2, %s7736_s24  ;;  %p7743_p11 = scmp.lt.u32.totalorder %s7736_s24, %s10072_s2 }
  0x31   : > { %p7739_p9 = pnand %p8487_p8, %p7737_p7 }
  0x33   : > { %p7740_p10 = pneg %p7739_p9 }
  0x35   : > { %p7745_p12 = pnand %p7743_p11, %p7740_p10 }
  0x37   : > { %7748 = shalt.err (!%p7745_p12)
}
  0x38   : > { %s7749_s1 = scalar_lea.vmem %s8464_s30, 2048  ;;  %p7757_p4 = scmp.lt.s32.totalorder %s8464_s30, %s8464_s30 }
  0x39   : > { %p7750_p13 = scmp.ne.s32.totalorder %s8464_s30, %s7749_s1  ;;  %p7758_p5 = scmp.lt.s32.totalorder %s7749_s1, %s7749_s1 }
  0x3b   : > { %p7752_p0 = pnand %p7750_p13, %p8487_p8  ;;  %p7759_p7 = por %p7758_p5, %p7757_p4 }
  0x3d   : > { %p7753_p2 = pneg %p7752_p0 }
  0x3f   : > { %p7760_p9 = pnand %p7759_p7, %p7753_p2 }
  0x41   : > { %7763 = shalt.err (!%p7760_p9)
}
  0x42   : > { %s10021_s16 = smov 128   ;;  %s10023_s24 = smov 8  }
  0x43   : > { %7081 = dma.hbm_to_vmem [thread:$0]  (!%p8471_p6), %s10072_s2, 2048, %s8464_s30, [#allocation6], %s10021_s16, %s10021_s16, %s10023_s24  }
  0x44   : > { %s10074_s3 = sld [smem:[#allocation54_spill]] }
  0x4a   : > { %s7764_s1 = scalar_lea.hbm %s10074_s3, 2048 }
  0x4b   : > { %p7765_p5 = scmp.ne.s32.totalorder %s10074_s3, %s7764_s1  ;;  %p7771_p12 = scmp.lt.u32.totalorder %s7764_s1, %s10074_s3 }
  0x4d   : > { %p7767_p10 = pnand %p7765_p5, %p8487_p8 }
  0x4f   : > { %p7768_p11 = pneg %p7767_p10 }
  0x51   : > { %p7773_p13 = pnand %p7771_p12, %p7768_p11 }
  0x53   : > { %7776 = shalt.err (!%p7773_p13)
}
  0x54   : > { %s7777_s30 = scalar_lea.vmem %s8475_s18, 2048  ;;  %p7785_p7 = scmp.lt.s32.totalorder %s8475_s18, %s8475_s18 }
  0x55   : > { %p7778_p0 = scmp.ne.s32.totalorder %s8475_s18, %s7777_s30  ;;  %p7786_p9 = scmp.lt.s32.totalorder %s7777_s30, %s7777_s30 }
  0x57   : > { %p7780_p2 = pnand %p7778_p0, %p8487_p8  ;;  %p7787_p5 = por %p7786_p9, %p7785_p7 }
  0x59   : > { %p7781_p4 = pneg %p7780_p2 }
  0x5b   : > { %p7788_p10 = pnand %p7787_p5, %p7781_p4 }
  0x5d   : > { %7791 = shalt.err (!%p7788_p10)
}
  0x5e   : > { %7084 = dma.hbm_to_vmem [thread:$0]  (!%p8471_p6), %s10074_s3, 2048, %s8475_s18, [#allocation9], %s10021_s16, %s10021_s16, %s10023_s24  }
  0x5f   : > { %s10075_s5 = sld [smem:[#allocation56_spill]] }
  0x65   : > { %s7792_s28 = scalar_lea.hbm %s10075_s5, 2048 }
  0x66   : > { %p7793_p11 = scmp.ne.s32.totalorder %s10075_s5, %s7792_s28  ;;  %p7799_p0 = scmp.lt.u32.totalorder %s7792_s28, %s10075_s5 }
  0x68   : > { %p7795_p12 = pnand %p7793_p11, %p8487_p8 }
  0x6a   : > { %p7796_p13 = pneg %p7795_p12 }
  0x6c   : > { %p7801_p2 = pnand %p7799_p0, %p7796_p13 }
  0x6e   : > { %7804 = shalt.err (!%p7801_p2)
}
  0x6f   : > { %s7805_s30 = scalar_lea.vmem %s489_s20, 2048  ;;  %p7813_p5 = scmp.lt.s32.totalorder %s489_s20, %s489_s20 }
  0x70   : > { %p7806_p4 = scmp.ne.s32.totalorder %s489_s20, %s7805_s30  ;;  %p7814_p10 = scmp.lt.s32.totalorder %s7805_s30, %s7805_s30 }
  0x72   : > { %p7808_p7 = pnand %p7806_p4, %p8487_p8  ;;  %p7815_p1 = por %p7814_p10, %p7813_p5 }
  0x74   : > { %p7809_p9 = pneg %p7808_p7 }
  0x76   : > { %p7816_p3 = pnand %p7815_p1, %p7809_p9 }
  0x78   : > { %7819 = shalt.err (!%p7816_p3)
}
  0x79   : > { %7090 = dma.hbm_to_vmem [thread:$0]  (!%p8471_p6), %s10075_s5, 2048, %s489_s20, [#allocation12], %s10021_s16, %s10021_s16, %s10023_s24  }
  0x7a   : > { %s8313_s22 = smov [#allocation14]   ;;  %s8314_s25 = smov [#allocation17]  }
  0x7b   : > { %s514_s23 = sshll.u32 %s8313_s22, 4  ;;  %s540_s28 = sshll.u32 %s8314_s25, 4  ;;  %s515_s23 = int_to_ptr.vmem [resolvable:$true] %s514_s23  ;;  %s541_s28 = int_to_ptr.vmem [resolvable:$true] %s540_s28 }
  0x7c   : > { %s10076_s7 = sld [smem:[#allocation58_spill]] }
  0x82   : > { %s7820_s19 = scalar_lea.hbm %s10076_s7, 9216 }
  0x83   : > { %p7821_p1 = scmp.ne.s32.totalorder %s10076_s7, %s7820_s19  ;;  %p7827_p12 = scmp.lt.u32.totalorder %s7820_s19, %s10076_s7 }
  0x85   : > { %p7823_p3 = pnand %p7821_p1, %p8487_p8 }
  0x87   : > { %p7824_p11 = pneg %p7823_p3 }
  0x89   : > { %p7829_p13 = pnand %p7827_p12, %p7824_p11 }
  0x8b   : > { %7832 = shalt.err (!%p7829_p13)
}
  0x8c   : > { %s7833_s20 = scalar_lea.vmem %s515_s23, 9216  ;;  %p7841_p7 = scmp.lt.s32.totalorder %s515_s23, %s515_s23 }
  0x8d   : > { %p7834_p0 = scmp.ne.s32.totalorder %s515_s23, %s7833_s20  ;;  %p7842_p9 = scmp.lt.s32.totalorder %s7833_s20, %s7833_s20 }
  0x8f   : > { %p7836_p2 = pnand %p7834_p0, %p8487_p8  ;;  %p7843_p5 = por %p7842_p9, %p7841_p7 }
  0x91   : > { %p7837_p4 = pneg %p7836_p2 }
  0x93   : > { %p7844_p10 = pnand %p7843_p5, %p7837_p4 }
  0x95   : > { %7847 = shalt.err (!%p7844_p10)
}
  0x96   : > { %s10017_s21 = smov 64   ;;  %s10019_s22 = smov 4  }
  0x97   : > { %7096 = dma.hbm_to_vmem [thread:$0]  (!%p8471_p6), %s10076_s7, 9216, %s515_s23, [#allocation15], %s10017_s21, %s10017_s21, %s10019_s22  }
  0x98   : > { %s10077_s9 = sld [smem:[#allocation60_spill]] }
  0x9e   : > { %s7848_s19 = scalar_lea.hbm %s10077_s9, 6144 }
  0x9f   : > { %p7849_p1 = scmp.ne.s32.totalorder %s10077_s9, %s7848_s19  ;;  %p7855_p12 = scmp.lt.u32.totalorder %s7848_s19, %s10077_s9 }
  0xa1   : > { %p7851_p3 = pnand %p7849_p1, %p8487_p8 }
  0xa3   : > { %p7852_p11 = pneg %p7851_p3 }
  0xa5   : > { %p7857_p13 = pnand %p7855_p12, %p7852_p11 }
  0xa7   : > { %7860 = shalt.err (!%p7857_p13)
}
  0xa8   : > { %s7861_s2 = scalar_lea.vmem %s541_s28, 6144  ;;  %p7869_p7 = scmp.lt.s32.totalorder %s541_s28, %s541_s28 }
  0xa9   : > { %p7862_p0 = scmp.ne.s32.totalorder %s541_s28, %s7861_s2  ;;  %p7870_p9 = scmp.lt.s32.totalorder %s7861_s2, %s7861_s2 }
  0xab   : > { %p7864_p2 = pnand %p7862_p0, %p8487_p8  ;;  %p7871_p5 = por %p7870_p9, %p7869_p7 }
  0xad   : > { %p7865_p4 = pneg %p7864_p2 }
  0xaf   : > { %p7872_p10 = pnand %p7871_p5, %p7865_p4 }
  0xb1   : > { %7875 = shalt.err (!%p7872_p10)
}
  0xb2   : > { %7102 = dma.hbm_to_vmem [thread:$0]  (!%p8471_p6), %s10077_s9, 6144, %s541_s28, [#allocation18], %s10021_s16, %s10021_s16, %s10023_s24  }
  0xb3   : > { %s8317_s29 = smov [#allocation20]   ;;  %s8318_s19 = smov [#allocation23]  }
  0xb4   : > { %s566_s17 = sshll.u32 %s8317_s29, 4  ;;  %s592_s1 = sshll.u32 %s8318_s19, 4  ;;  %s567_s17 = int_to_ptr.vmem [resolvable:$true] %s566_s17  ;;  %s593_s1 = int_to_ptr.vmem [resolvable:$true] %s592_s1 }
  0xb5   : > { %s10078_s11 = sld [smem:[#allocation62_spill]] }
  0xbb   : > { %s7876_s20 = scalar_lea.hbm %s10078_s11, 2048 }
  0xbc   : > { %p7877_p1 = scmp.ne.s32.totalorder %s10078_s11, %s7876_s20  ;;  %p7883_p12 = scmp.lt.u32.totalorder %s7876_s20, %s10078_s11 }
  0xbe   : > { %p7879_p3 = pnand %p7877_p1, %p8487_p8 }
  0xc0   : > { %p7880_p11 = pneg %p7879_p3 }
  0xc2   : > { %p7885_p13 = pnand %p7883_p12, %p7880_p11 }
  0xc4   : > { %7888 = shalt.err (!%p7885_p13)
}
  0xc5   : > { %s7889_s28 = scalar_lea.vmem %s567_s17, 2048  ;;  %p7897_p7 = scmp.lt.s32.totalorder %s567_s17, %s567_s17 }
  0xc6   : > { %p7890_p0 = scmp.ne.s32.totalorder %s567_s17, %s7889_s28  ;;  %p7898_p9 = scmp.lt.s32.totalorder %s7889_s28, %s7889_s28 }
  0xc8   : > { %p7892_p2 = pnand %p7890_p0, %p8487_p8  ;;  %p7899_p5 = por %p7898_p9, %p7897_p7 }
  0xca   : > { %p7893_p4 = pneg %p7892_p2 }
  0xcc   : > { %p7900_p10 = pnand %p7899_p5, %p7893_p4 }
  0xce   : > { %7903 = shalt.err (!%p7900_p10)
}
  0xcf   : > { %7108 = dma.hbm_to_vmem [thread:$0]  (!%p8471_p6), %s10078_s11, 2048, %s567_s17, [#allocation21], %s10021_s16, %s10021_s16, %s10023_s24  }
  0xd0   : > { %s7904_s19 = scalar_lea.hbm %s10001_s13, 1024 }
  0xd1   : > { %p7905_p1 = scmp.ne.s32.totalorder %s10001_s13, %s7904_s19  ;;  %p7911_p12 = scmp.lt.u32.totalorder %s7904_s19, %s10001_s13 }
  0xd3   : > { %p7907_p3 = pnand %p7905_p1, %p8487_p8 }
  0xd5   : > { %p7908_p11 = pneg %p7907_p3 }
  0xd7   : > { %p7913_p13 = pnand %p7911_p12, %p7908_p11 }
  0xd9   : > { %7916 = shalt.err (!%p7913_p13)
}
  0xda   : > { %s7917_s23 = scalar_lea.vmem %s593_s1, 1024  ;;  %p7925_p7 = scmp.lt.s32.totalorder %s593_s1, %s593_s1 }
  0xdb   : > { %p7918_p0 = scmp.ne.s32.totalorder %s593_s1, %s7917_s23  ;;  %p7926_p9 = scmp.lt.s32.totalorder %s7917_s23, %s7917_s23 }
  0xdd   : > { %p7920_p2 = pnand %p7918_p0, %p8487_p8  ;;  %p7927_p5 = por %p7926_p9, %p7925_p7 }
  0xdf   : > { %p7921_p4 = pneg %p7920_p2 }
  0xe1   : > { %p7928_p10 = pnand %p7927_p5, %p7921_p4 }
  0xe3   : > { %7931 = shalt.err (!%p7928_p10)
}
  0xe4   : > { %s10079_s17 = smov 4   ;;  %s10080_s28 = smov 64  }
  0xe5   : > { %7114 = dma.hbm_to_vmem [thread:$0]  (!%p8471_p6), %s10001_s13, 1024, %s593_s1, [#allocation24], %s10080_s28, %s10080_s28, %s10079_s17  }
  0xe6   : > { %s8319_s25 = smov [#allocation10]   ;;  %s8320_s19 = smov [#allocation13]  }
  0xe7   : > { %s475_s29 = sshll.u32 %s8319_s25, 4  ;;  %s501_s30 = sshll.u32 %s8320_s19, 4  ;;  %s476_s29 = int_to_ptr.vmem [resolvable:$true] %s475_s29  ;;  %s502_s30 = int_to_ptr.vmem [resolvable:$true] %s501_s30 }
  0xe8   : > { %s10081_s4 = sld [smem:[#allocation55_spill]] }
  0xee   : > { %s7932_s2 = scalar_lea.hbm %s10081_s4, 1024 }
  0xef   : > { %p7933_p1 = scmp.ne.s32.totalorder %s10081_s4, %s7932_s2  ;;  %p7939_p12 = scmp.lt.u32.totalorder %s7932_s2, %s10081_s4 }
  0xf1   : > { %p7935_p3 = pnand %p7933_p1, %p8487_p8 }
  0xf3   : > { %p7936_p11 = pneg %p7935_p3 }
  0xf5   : > { %p7941_p13 = pnand %p7939_p12, %p7936_p11 }
  0xf7   : > { %7944 = shalt.err (!%p7941_p13)
}
  0xf8   : > { %s7945_s1 = scalar_lea.vmem %s476_s29, 1024  ;;  %p7953_p7 = scmp.lt.s32.totalorder %s476_s29, %s476_s29 }
  0xf9   : > { %p7946_p0 = scmp.ne.s32.totalorder %s476_s29, %s7945_s1  ;;  %p7954_p9 = scmp.lt.s32.totalorder %s7945_s1, %s7945_s1 }
  0xfb   : > { %p7948_p2 = pnand %p7946_p0, %p8487_p8  ;;  %p7955_p5 = por %p7954_p9, %p7953_p7 }
  0xfd   : > { %p7949_p4 = pneg %p7948_p2 }
  0xff   : > { %p7956_p10 = pnand %p7955_p5, %p7949_p4 }
 0x101   : > { %7959 = shalt.err (!%p7956_p10)
}
 0x102   : > { %7087 = dma.hbm_to_vmem [thread:$0]  (!%p8471_p6), %s10081_s4, 1024, %s476_s29, [#allocation9], %s10080_s28, %s10080_s28, %s10079_s17  }
 0x103   : > { %s10082_s6 = sld [smem:[#allocation57_spill]] }
 0x109   : > { %s7960_s19 = scalar_lea.hbm %s10082_s6, 2048 }
 0x10a   : > { %p7961_p1 = scmp.ne.s32.totalorder %s10082_s6, %s7960_s19  ;;  %p7967_p12 = scmp.lt.u32.totalorder %s7960_s19, %s10082_s6 }
 0x10c   : > { %p7963_p3 = pnand %p7961_p1, %p8487_p8 }
 0x10e   : > { %p7964_p11 = pneg %p7963_p3 }
 0x110   : > { %p7969_p13 = pnand %p7967_p12, %p7964_p11 }
 0x112   : > { %7972 = shalt.err (!%p7969_p13)
}
 0x113   : > { %s7973_s21 = scalar_lea.vmem %s502_s30, 2048  ;;  %p7981_p7 = scmp.lt.s32.totalorder %s502_s30, %s502_s30 }
 0x114   : > { %p7974_p0 = scmp.ne.s32.totalorder %s502_s30, %s7973_s21  ;;  %p7982_p9 = scmp.lt.s32.totalorder %s7973_s21, %s7973_s21 }
 0x116   : > { %p7976_p2 = pnand %p7974_p0, %p8487_p8  ;;  %p7983_p5 = por %p7982_p9, %p7981_p7 }
 0x118   : > { %p7977_p4 = pneg %p7976_p2 }
 0x11a   : > { %p7984_p10 = pnand %p7983_p5, %p7977_p4 }
 0x11c   : > { %7987 = shalt.err (!%p7984_p10)
}
 0x11d   : > { %s10083_s29 = smov 8   ;;  %s10084_s1 = smov 128  }
 0x11e   : > { %7093 = dma.hbm_to_vmem [thread:$0]  (!%p8471_p6), %s10082_s6, 2048, %s502_s30, [#allocation12], %s10084_s1, %s10084_s1, %s10083_s29  }
 0x11f   : > { %s8321_s22 = smov [#allocation16]   ;;  %s8322_s19 = smov [#allocation19]  }
 0x120   : > { %s527_s25 = sshll.u32 %s8321_s22, 4  ;;  %s553_s18 = sshll.u32 %s8322_s19, 4  ;;  %s528_s25 = int_to_ptr.vmem [resolvable:$true] %s527_s25  ;;  %s554_s18 = int_to_ptr.vmem [resolvable:$true] %s553_s18 }
 0x121   : > { %s10085_s8 = sld [smem:[#allocation59_spill]] }
 0x127   : > { %s7988_s23 = scalar_lea.hbm %s10085_s8, 6144 }
 0x128   : > { %p7989_p1 = scmp.ne.s32.totalorder %s10085_s8, %s7988_s23  ;;  %p7995_p12 = scmp.lt.u32.totalorder %s7988_s23, %s10085_s8 }
 0x12a   : > { %p7991_p3 = pnand %p7989_p1, %p8487_p8 }
 0x12c   : > { %p7992_p11 = pneg %p7991_p3 }
 0x12e   : > { %p7997_p13 = pnand %p7995_p12, %p7992_p11 }
 0x130   : > { %8000 = shalt.err (!%p7997_p13)
}
 0x131   : > { %s8001_s30 = scalar_lea.vmem %s528_s25, 6144  ;;  %p8009_p7 = scmp.lt.s32.totalorder %s528_s25, %s528_s25 }
 0x132   : > { %p8002_p0 = scmp.ne.s32.totalorder %s528_s25, %s8001_s30  ;;  %p8010_p9 = scmp.lt.s32.totalorder %s8001_s30, %s8001_s30 }
 0x134   : > { %p8004_p2 = pnand %p8002_p0, %p8487_p8  ;;  %p8011_p5 = por %p8010_p9, %p8009_p7 }
 0x136   : > { %p8005_p4 = pneg %p8004_p2 }
 0x138   : > { %p8012_p10 = pnand %p8011_p5, %p8005_p4 }
 0x13a   : > { %8015 = shalt.err (!%p8012_p10)
}
 0x13b   : > { %7099 = dma.hbm_to_vmem [thread:$0]  (!%p8471_p6), %s10085_s8, 6144, %s528_s25, [#allocation15], %s10084_s1, %s10084_s1, %s10083_s29  }
 0x13c   : > { %s10086_s10 = sld [smem:[#allocation61_spill]] }
 0x142   : > { %s8016_s19 = scalar_lea.hbm %s10086_s10, 2048 }
 0x143   : > { %p8017_p1 = scmp.ne.s32.totalorder %s10086_s10, %s8016_s19  ;;  %p8023_p12 = scmp.lt.u32.totalorder %s8016_s19, %s10086_s10 }
 0x145   : > { %p8019_p3 = pnand %p8017_p1, %p8487_p8 }
 0x147   : > { %p8020_p11 = pneg %p8019_p3 }
 0x149   : > { %p8025_p13 = pnand %p8023_p12, %p8020_p11 }
 0x14b   : > { %8028 = shalt.err (!%p8025_p13)
}
 0x14c   : > { %s8029_s16 = scalar_lea.vmem %s554_s18, 2048  ;;  %p8037_p7 = scmp.lt.s32.totalorder %s554_s18, %s554_s18 }
 0x14d   : > { %p8030_p0 = scmp.ne.s32.totalorder %s554_s18, %s8029_s16  ;;  %p8038_p9 = scmp.lt.s32.totalorder %s8029_s16, %s8029_s16 }
 0x14f   : > { %p8032_p2 = pnand %p8030_p0, %p8487_p8  ;;  %p8039_p5 = por %p8038_p9, %p8037_p7 }
 0x151   : > { %p8033_p4 = pneg %p8032_p2 }
 0x153   : > { %p8040_p10 = pnand %p8039_p5, %p8033_p4 }
 0x155   : > { %8043 = shalt.err (!%p8040_p10)
}
 0x156   : > { %7105 = dma.hbm_to_vmem [thread:$0]  (!%p8471_p6), %s10086_s10, 2048, %s554_s18, [#allocation18], %s10084_s1, %s10084_s1, %s10083_s29  }
 0x157   : > { %s8323_s3 = smov [#allocation22]   ;;  %s8324_s24 = smov [#allocation25]  }
 0x158   : > { %s579_s4 = sshll.u32 %s8323_s3, 4  ;;  %s605_s22 = sshll.u32 %s8324_s24, 4  ;;  %s580_s4 = int_to_ptr.vmem [resolvable:$true] %s579_s4  ;;  %s606_s22 = int_to_ptr.vmem [resolvable:$true] %s605_s22 }
 0x159   : > { %s8044_s2 = scalar_lea.hbm %s10000_s12, 2048 }
 0x15a   : > { %p8045_p1 = scmp.ne.s32.totalorder %s10000_s12, %s8044_s2  ;;  %p8051_p12 = scmp.lt.u32.totalorder %s8044_s2, %s10000_s12 }
 0x15c   : > { %p8047_p3 = pnand %p8045_p1, %p8487_p8 }
 0x15e   : > { %p8048_p11 = pneg %p8047_p3 }
 0x160   : > { %p8053_p13 = pnand %p8051_p12, %p8048_p11 }
 0x162   : > { %8056 = shalt.err (!%p8053_p13)
}
 0x163   : > { %s8057_s18 = scalar_lea.vmem %s580_s4, 2048  ;;  %p8065_p7 = scmp.lt.s32.totalorder %s580_s4, %s580_s4 }
 0x164   : > { %p8058_p0 = scmp.ne.s32.totalorder %s580_s4, %s8057_s18  ;;  %p8066_p9 = scmp.lt.s32.totalorder %s8057_s18, %s8057_s18 }
 0x166   : > { %p8060_p2 = pnand %p8058_p0, %p8487_p8  ;;  %p8067_p5 = por %p8066_p9, %p8065_p7 }
 0x168   : > { %p8061_p4 = pneg %p8060_p2 }
 0x16a   : > { %p8068_p10 = pnand %p8067_p5, %p8061_p4 }
 0x16c   : > { %8071 = shalt.err (!%p8068_p10)
}
 0x16d   : > { %7111 = dma.hbm_to_vmem [thread:$0]  (!%p8471_p6), %s10000_s12, 2048, %s580_s4, [#allocation21], %s10084_s1, %s10084_s1, %s10083_s29  }
 0x16e   : > { %s8072_s20 = scalar_lea.hbm %s10002_s14, 2048 }
 0x16f   : > { %p8073_p1 = scmp.ne.s32.totalorder %s10002_s14, %s8072_s20  ;;  %p8079_p12 = scmp.lt.u32.totalorder %s8072_s20, %s10002_s14 }
 0x171   : > { %p8075_p3 = pnand %p8073_p1, %p8487_p8 }
 0x173   : > { %p8076_p11 = pneg %p8075_p3 }
 0x175   : > { %p8081_p13 = pnand %p8079_p12, %p8076_p11 }
 0x177   : > { %8084 = shalt.err (!%p8081_p13)
}
 0x178   : > { %s8085_s25 = scalar_lea.vmem %s606_s22, 2048  ;;  %p8093_p7 = scmp.lt.s32.totalorder %s606_s22, %s606_s22 }
 0x179   : > { %p8086_p0 = scmp.ne.s32.totalorder %s606_s22, %s8085_s25  ;;  %p8094_p9 = scmp.lt.s32.totalorder %s8085_s25, %s8085_s25 }
 0x17b   : > { %p8088_p2 = pnand %p8086_p0, %p8487_p8  ;;  %p8095_p5 = por %p8094_p9, %p8093_p7 }
 0x17d   : > { %p8089_p4 = pneg %p8088_p2 }
 0x17f   : > { %p8096_p10 = pnand %p8095_p5, %p8089_p4 }
 0x181   : > { %8099 = shalt.err (!%p8096_p10)
}
 0x182   : > { %7117 = dma.hbm_to_vmem [thread:$0]  (!%p8471_p6), %s10002_s14, 2048, %s606_s22, [#allocation24], %s10084_s1, %s10084_s1, %s10083_s29  }
 0x183   : > { %s8325_s30 = smov [#allocation26]   ;;  %s8100_s20 = scalar_lea.hbm %s10003_s15, 2048 }
 0x184   : > { %s618_s3 = sshll.u32 %s8325_s30, 4  ;;  %p8101_p1 = scmp.ne.s32.totalorder %s10003_s15, %s8100_s20  ;;  %s619_s3 = int_to_ptr.vmem [resolvable:$true] %s618_s3 }
 0x185   : > { %p8107_p12 = scmp.lt.u32.totalorder %s8100_s20, %s10003_s15 }
 0x186   : > { %p8103_p3 = pnand %p8101_p1, %p8487_p8 }
 0x188   : > { %p8104_p11 = pneg %p8103_p3 }
 0x18a   : > { %p8109_p13 = pnand %p8107_p12, %p8104_p11 }
 0x18c   : > { %8112 = shalt.err (!%p8109_p13)
}
 0x18d   : > { %s8113_s22 = scalar_lea.vmem %s619_s3, 2048  ;;  %p8121_p7 = scmp.lt.s32.totalorder %s619_s3, %s619_s3 }
 0x18e   : > { %p8114_p0 = scmp.ne.s32.totalorder %s619_s3, %s8113_s22  ;;  %p8122_p9 = scmp.lt.s32.totalorder %s8113_s22, %s8113_s22 }
 0x190   : > { %p8116_p2 = pnand %p8114_p0, %p8487_p8  ;;  %p8123_p5 = por %p8122_p9, %p8121_p7 }
 0x192   : > { %p8117_p4 = pneg %p8116_p2 }
 0x194   : > { %p8124_p10 = pnand %p8123_p5, %p8117_p4 }
 0x196   : > { %8127 = shalt.err (!%p8124_p10)
}
 0x197   : > { %s10087_s18 = sld [smem:[#allocation44_spill]]  ;;  %s10088_s30 = sld [smem:[#allocation42_spill]] }
 0x198   : > { %s10089_s24 = sld [smem:[#allocation41_spill]]  ;;  %s10090_s27 = sld [smem:[#allocation40_spill]] }
 0x199   : > { %s10091_s19 = sld [smem:[#allocation45_spill]]  ;;  %s6049_s0 = sadd.s32 4294967294, %s8306_s26  }
 0x19a   : > { %7120 = dma.hbm_to_vmem [thread:$0]  (!%p8471_p6), %s10003_s15, 2048, %s619_s3, [#allocation27], %s10084_s1, %s10084_s1, %s10083_s29  }
 0x19b   : > { %p71_p3 = scmp.eq.s32.totalorder %s8306_s26, 0  ;;  %p430_p7 = scmp.eq.s32.totalorder %s6049_s0, 1 }
 0x19c   : > { %p7146_p5 = scmp.lt.s32.totalorder %s8306_s26, 2 }
 0x19d   : > { %s54_s20 = sadd.s32 1, %s10087_s18  ;;  %s63_s2 = sadd.s32 1, %s10088_s30 }
 0x19e   : > { %p56_p8 = scmp.ge.s32.totalorder %s54_s20, 2  ;;  %p70_p1 = scmp.ne.s32.totalorder %s10088_s30, %s10089_s24 }
 0x19f   : > { %p76_p12 = scmp.ne.s32.totalorder %s10089_s24, %s10090_s27  ;;  %p424_p6 = scmp.eq.s32.totalorder %s10091_s19, 1 }
 0x1a0   : > { %s10174_s20 = smov (%p56_p8, %s54_s20), 0  ;;  %p8798_p11 = por %p71_p3, %p70_p1 }
 0x1a1   : > { %s58_s29 = ssub.s32 %s10087_s18, %s10174_s20  ;;  %p10093_p0 = scmp.eq.s32.totalorder %s10091_s19, 0 }
 0x1a2   : > { %p61_p13 = scmp.eq.s32.totalorder %s58_s29, 0  ;;  %p8813_p4 = por %p424_p6, %p70_p1 }
 0x1a3   : > { %p8809_p2 = por %p10093_p0, %p76_p12  ;;  %p8820_p9 = por %p430_p7, %p76_p12 }
 0x1a4   : > { %s10095_s3 = scalar_select %p8813_p4, 1, 0 }
 0x1a5   : > { %s8818_s21 = scalar_select %p61_p13, %s10088_s30, %s63_s2  }
 0x1a6   : > { %s10096_s16 = scalar_select %p8820_p9, 1, 0 }
 0x1a7   : > { %s632_s22 = sand.u32 1, %s10088_s30   ;;  %s6199_s25 = sshll.u32 %s10087_s18, 10 }
 0x1a8   : > { %s8827_s4 = sshll.u32 %s632_s22, 6  ;;  %s10097_s19 = sld [smem:[#allocation51_spill]] }
 0x1a9   : > { %s636_s0 = scalar_lea.vmem [#allocation2], %s8827_s4  ;;  %p8837_p10 = pnand %p7146_p5, %p8798_p11 }
 0x1aa   : > { %s644_s2 = sshll.u32 %s636_s0, 4  ;;  %s10099_s24 = sld [smem:[#allocation52_spill]]  ;;  %s8841_s2 = int_to_ptr.vmem [resolvable:$true] %s644_s2 }
 0x1ab   : > { %s8848_s7 = scalar_lea.sflag [#allocation3], %s632_s22  ;;  %p8130_p1 = pneg %p8837_p10 }
 0x1ae   : > { %s8832_s29 = scalar_lea.hbm %s10097_s19, %s6199_s25  ;;  %s8133_s9 = scalar_lea.hbm %s10097_s19, 2048 }
 0x1af   : > { %s8128_s8 = scalar_lea.hbm %s8832_s29, 1024  ;;  %p8134_p12 = scmp.lt.u32.totalorder %s8832_s29, %s10097_s19 }
 0x1b0   : > { %s10100_s27 = smov %s10099_s24  ;;  %s8846_s6 = scalar_lea.hbm %s10099_s24, %s6199_s25 }
 0x1b1   : > { %p8129_p8 = scmp.ne.s32.totalorder %s8832_s29, %s8128_s8  ;;  %p8135_p6 = scmp.lt.u32.totalorder %s8133_s9, %s8128_s8 }
 0x1b2   : > { %p8137_p0 = scmp.lt.u32.totalorder %s8128_s8, %s8832_s29 }
 0x1b3   : > { %p8131_p3 = pnand %p8130_p1, %p8129_p8  ;;  %p8136_p13 = por %p8135_p6, %p8134_p12 }
 0x1b5   : > { %p8132_p11 = pneg %p8131_p3  ;;  %p8138_p7 = por %p8137_p0, %p8136_p13 }
 0x1b7   : > { %p8139_p5 = pnand %p8138_p7, %p8132_p11 }
 0x1b9   : > { %8142 = shalt.err (!%p8139_p5)
}
 0x1ba   : > { %s8143_s22 = scalar_lea.vmem %s8841_s2, 1024  ;;  %s8326_s25 = smov [#allocation2]  }
 0x1bb   : > { %p8144_p8 = scmp.ne.s32.totalorder %s8841_s2, %s8143_s22  ;;  %s8148_s18 = sshll.u32 %s8326_s25, 4  ;;  %s8149_s18 = int_to_ptr.vmem [resolvable:$false] %s8148_s18 }
 0x1bc   : > { %s8150_s10 = scalar_lea.vmem %s8149_s18, 2048  ;;  %p8151_p4 = scmp.lt.s32.totalorder %s8841_s2, %s8149_s18 }
 0x1bd   : > { %p8146_p3 = pnand %p8144_p8, %p8130_p1  ;;  %p8152_p12 = scmp.lt.s32.totalorder %s8150_s10, %s8143_s22 }
 0x1bf   : > { %p8147_p9 = pneg %p8146_p3  ;;  %p8153_p6 = por %p8152_p12, %p8151_p4 }
 0x1c1   : > { %p8154_p13 = pnand %p8153_p6, %p8147_p9 }
 0x1c3   : > { %8157 = shalt.err (!%p8154_p13)
}
 0x1c4   : > { %7124 = dma.hbm_to_vmem [thread:$0]  (!%p8837_p10), %s8832_s29, 1024, %s8841_s2, %s8848_s7, %s10080_s28, %s10080_s28, %s10079_s17  }
 0x1c5   : > { %s658_s8 = scalar_lea.vmem [#allocation5], %s8827_s4  ;;  %s654_s11 = sand.u32 1, %s8306_s26  }
 0x1c6   : > { %s667_s9 = sshll.u32 %s658_s8, 4  ;;  %s8883_s30 = scalar_lea.sflag [#allocation6], %s654_s11  ;;  %s8881_s9 = int_to_ptr.vmem [resolvable:$true] %s667_s9 }
 0x1c7   : > { %s8158_s24 = scalar_lea.hbm %s8846_s6, 1024  ;;  %s8163_s22 = scalar_lea.hbm %s10100_s27, 2048 }
 0x1c8   : > { %p8159_p4 = scmp.ne.s32.totalorder %s8846_s6, %s8158_s24  ;;  %p8164_p0 = scmp.lt.u32.totalorder %s8846_s6, %s10100_s27 }
 0x1c9   : > { %p8165_p7 = scmp.lt.u32.totalorder %s8163_s22, %s8158_s24  ;;  %p8167_p8 = scmp.lt.u32.totalorder %s8158_s24, %s8846_s6 }
 0x1ca   : > { %p8161_p9 = pnand %p8159_p4, %p8130_p1 }
 0x1cb   : > { %p8166_p5 = por %p8165_p7, %p8164_p0 }
 0x1cc   : > { %p8162_p11 = pneg %p8161_p9 }
 0x1cd   : > { %p8168_p3 = por %p8167_p8, %p8166_p5 }
 0x1cf   : > { %p8169_p12 = pnand %p8168_p3, %p8162_p11 }
 0x1d1   : > { %8172 = shalt.err (!%p8169_p12)
}
 0x1d2   : > { %s8173_s7 = scalar_lea.vmem %s8881_s9, 1024  ;;  %s8327_s4 = smov [#allocation5]  }
 0x1d3   : > { %p8174_p6 = scmp.ne.s32.totalorder %s8881_s9, %s8173_s7  ;;  %s8178_s29 = sshll.u32 %s8327_s4, 4  ;;  %s8179_s29 = int_to_ptr.vmem [resolvable:$false] %s8178_s29 }
 0x1d4   : > { %s8180_s2 = scalar_lea.vmem %s8179_s29, 2048  ;;  %p8181_p9 = scmp.lt.s32.totalorder %s8881_s9, %s8179_s29 }
 0x1d5   : > { %p8176_p13 = pnand %p8174_p6, %p8130_p1  ;;  %p8182_p0 = scmp.lt.s32.totalorder %s8180_s2, %s8173_s7 }
 0x1d7   : > { %p8177_p4 = pneg %p8176_p13  ;;  %p8183_p7 = por %p8182_p0, %p8181_p9 }
 0x1d9   : > { %p8184_p5 = pnand %p8183_p7, %p8177_p4 }
 0x1db   : > { %8187 = shalt.err (!%p8184_p5)
}
 0x1dc   : > { %7127 = dma.hbm_to_vmem [thread:$0]  (!%p8837_p10), %s8846_s6, 1024, %s8881_s9, %s8883_s30, %s10080_s28, %s10080_s28, %s10079_s17  }
 0x1dd   : > { %s10101_s10 = sld [smem:[#allocation46_spill]] }
 0x1e3   : > { %p10102_p1 = scmp.ne.s32.totalorder %s10101_s10, 0 }
 0x1e5   : > { %679 = sbr.rel (%p10102_p1) target bundleno = 3358 (0xd1e), region = 84 }
 0x1ec   : > { %s10103_s8 = sld [smem:[#allocation41_spill]] }
 0x1f2   : > { %s8915_s11 = sand.u32 1, %s10103_s8  }
 0x1f3   : > { %s6073_s24 = sshll.u32 %s8915_s11, 6  ;;  %s682_s23 = scalar_lea.sflag [#allocation3], %s8915_s11 }
 0x1f4   : > { %s8919_s0 = scalar_lea.vmem [#allocation2], %s6073_s24 }
 0x1f5   : > { %8241 = dma.done.wait (%p8809_p2), %s682_s23, 1024  }
 0x1f6   : > { %8243 = vsyncadd (%p8809_p2), %s682_s23, 4294966272  ;;  %s10104_s5 = sld [smem:[#allocation45_spill]]  ;;  %s8926_s28 = scalar_lea.vmem [#allocation5], %s6073_s24 }
 0x1fc   : > { %s690_s6 = sand.u32 1, %s10104_s5  }
 0x1fd   : > { %s691_s17 = scalar_lea.sflag [#allocation6], %s690_s6 }
 0x1fe   : > { %8245 = dma.done.wait (%p8809_p2), %s691_s17, 1024  }
 0x1ff   : > { %8247 = vsyncadd (%p8809_p2), %s691_s17, 4294966272  ;;  %p10105_p10 = scmp.eq.s32.totalorder %s10104_s5, 0 }
 0x201   : > { %8249 = dma.done.wait (%p10105_p10), [#allocation6], 2048   ;;  %p10106_p11 = pmov %p10105_p10 }
 0x202   : > { %p10107_p8 = pmov %p10105_p10 }
 0x203   : > { %8251 = vsyncadd (%p10106_p11), [#allocation6], 4294965248 }
 0x204   : > { %8253 = dma.done.wait (%p10107_p8), [#allocation9], 3072   ;;  %p10108_p3 = pmov %p10107_p8 }
 0x206   : > { %8255 = vsyncadd (%p10108_p3), [#allocation9], 4294964224  ;;  %p10109_p12 = pmov %p10108_p3 }
 0x207   : > { %p10110_p6 = pmov %p10108_p3 }
 0x208   : > { %8257 = dma.done.wait (%p10109_p12), [#allocation12], 4096  }
 0x209   : > { %8259 = vsyncadd (%p10110_p6), [#allocation12], 4294963200  ;;  %p10111_p2 = pmov %p10108_p3 }
 0x20b   : > { %8261 = dma.done.wait (%p10111_p2), [#allocation15], 15360   ;;  %p10112_p13 = pmov %p10111_p2 }
 0x20c   : > { %p10113_p4 = pmov %p10111_p2 }
 0x20d   : > { %8263 = vsyncadd (%p10112_p13), [#allocation15], 4294951936 }
 0x20e   : > { %8265 = dma.done.wait (%p10113_p4), [#allocation18], 8192   ;;  %p10114_p9 = pmov %p10111_p2 }
 0x20f   : > { %p10115_p0 = pmov %p10111_p2 }
 0x210   : > { %8267 = vsyncadd (%p10114_p9), [#allocation18], 4294959104 }
 0x211   : > { %8269 = dma.done.wait (%p10115_p0), [#allocation21], 4096   ;;  %p10116_p7 = pmov %p10115_p0 }
 0x212   : > { %p10117_p5 = pmov %p10115_p0 }
 0x213   : > { %8271 = vsyncadd (%p10116_p7), [#allocation21], 4294963200 }
 0x214   : > { %8273 = dma.done.wait (%p10117_p5), [#allocation24], 3072   ;;  %p10118_p1 = pmov %p10115_p0 }
 0x215   : > { %p10119_p10 = pmov %p10115_p0 }
 0x216   : > { %8275 = vsyncadd (%p10118_p1), [#allocation24], 4294964224 }
 0x217   : > { %8277 = dma.done.wait (%p10119_p10), [#allocation27], 2048   ;;  %p10120_p11 = pmov %p10115_p0 }
 0x218   : > { %v8328_v0 = vmov 0   ;;  %v854_v1 = vld [vmem:[#allocation8] sm:$0xff]  ;;  %v855_v3 = vld [vmem:[#allocation8 + $0x8] sm:$0xff]  ;;  %v841_v5 = vld [vmem:[#allocation7 + $0x18] sm:$0xff]  ;;  %s8329_s1 = smov 4   ;;  %s8330_s9 = smov 8  }
 0x219   : > { %8279 = vsyncadd (%p10120_p11), [#allocation27], 4294965248  ;;  %7239 = vset.pattern.permute.xlu1 %v8328_v0  ;;  %7238 = vset.pattern.permute.xlu0 %v8328_v0  ;;  %v838_v2 = vld [vmem:[#allocation7] sm:$0xff]  ;;  %v839_v4 = vld [vmem:[#allocation7 + $0x8] sm:$0xff]  ;;  %vm1816_vm0 = vcmask 31744   ;;  %vm1833_vm1 = vcmask 97280  }
 0x21a   : > { %984 = vperm.xlu1 %7239, %v854_v1   ;;  %888 = vperm.xlu0 %7238, %v838_v2   ;;  %v840_v6 = vld [vmem:[#allocation7 + $0x10] sm:$0xff]  ;;  %v857_v7 = vld [vmem:[#allocation8 + $0x18] sm:$0xff]  ;;  %v843_v9 = vld [vmem:[#allocation7 + $0x28] sm:$0xff]  ;;  %s8331_s30 = smov 1   ;;  %s8332_s22 = smov 127   ;;  %vm5772_vm4 = vcmask 64512  }
 0x21b   : > { %v856_v8 = vld [vmem:[#allocation8 + $0x10] sm:$0xff]  ;;  %v842_v10 = vld [vmem:[#allocation7 + $0x20] sm:$0xff]  ;;  %v859_v11 = vld [vmem:[#allocation8 + $0x28] sm:$0xff]  ;;  %s8333_s25 = smov 2   ;;  %s8334_s18 = smov 126  }
 0x21c   : > { %v858_v12 = vld [vmem:[#allocation8 + $0x20] sm:$0xff]  ;;  %v845_v13 = vld [vmem:[#allocation7 + $0x38] sm:$0xff]  ;;  %v844_v14 = vld [vmem:[#allocation7 + $0x30] sm:$0xff]  ;;  %s8335_s7 = smov 3   ;;  %s8336_s4 = smov 125  }
 0x21d   : > { %v861_v15 = vld [vmem:[#allocation8 + $0x38] sm:$0xff]  ;;  %v860_v16 = vld [vmem:[#allocation8 + $0x30] sm:$0xff]  ;;  %v847_v17 = vld [vmem:[#allocation7 + $0x48] sm:$0xff]  ;;  %s6089_s29 = sshll.u32 %s8915_s11, 7  ;;  %s10154_s10 = sld [smem:[#allocation43_spill]] }
 0x21e   : > { %989 = vperm.xlu1 %7239, %v855_v3   ;;  %893 = vperm.xlu0 %7238, %v839_v4   ;;  %v846_v18 = vld [vmem:[#allocation7 + $0x40] sm:$0xff]  ;;  %v863_v19 = vld [vmem:[#allocation8 + $0x48] sm:$0xff]  ;;  %v849_v21 = vld [vmem:[#allocation7 + $0x58] sm:$0xff]  ;;  %s9861_s2 = scalar_lea.vmem [#allocation28], %s6089_s29  ;;  %s10160_s5 = sld [smem:[#allocation63_spill]] }
 0x21f   : > { %v862_v20 = vld [vmem:[#allocation8 + $0x40] sm:$0xff]  ;;  %v848_v22 = vld [vmem:[#allocation7 + $0x50] sm:$0xff]  ;;  %v865_v23 = vld [vmem:[#allocation8 + $0x58] sm:$0xff]  ;;  %s5804_s24 = sshll.u32 %s9861_s2, 4  ;;  %s5790_s17 = scalar_lea.sflag [#allocation4], %s8915_s11  ;;  %s9934_s24 = int_to_ptr.vmem [resolvable:$true] %s5804_s24 }
 0x220   : > { %v864_v24 = vld [vmem:[#allocation8 + $0x50] sm:$0xff]  ;;  %v851_v25 = vld [vmem:[#allocation7 + $0x68] sm:$0xff]  ;;  %v850_v26 = vld [vmem:[#allocation7 + $0x60] sm:$0xff]  ;;  %p10162_p3 = scmp.ne.s32.totalorder %s10095_s3, 0 }
 0x221   : > { %v867_v27 = vld [vmem:[#allocation8 + $0x68] sm:$0xff]  ;;  %v866_v28 = vld [vmem:[#allocation8 + $0x60] sm:$0xff]  ;;  %v853_v29 = vld [vmem:[#allocation7 + $0x78] sm:$0xff] }
 0x222   : > { %903 = vperm.xlu1 %7239, %v841_v5   ;;  %898 = vperm.xlu0 %7238, %v840_v6   ;;  %v852_v30 = vld [vmem:[#allocation7 + $0x70] sm:$0xff]  ;;  %v869_v31 = vld [vmem:[#allocation8 + $0x78] sm:$0xff]  ;;  %v1143_v33 = vld [vmem:[#allocation11 + $0x8] sm:$0xff] }
 0x223   : > { %v868_v32 = vld [vmem:[#allocation8 + $0x70] sm:$0xff]  ;;  %v1142_v34 = vld [vmem:[#allocation11] sm:$0xff]  ;;  %v1159_v35 = vld [vmem:[#allocation13 + $0x8] sm:$0xff]  ;;  %s6201_s8 = sshll.u32 %s10154_s10, 11 }
 0x224   : > { %v1158_v36 = vld [vmem:[#allocation13] sm:$0xff]  ;;  %v1145_v38 = vld [vmem:[#allocation11 + $0x18] sm:$0xff]  ;;  %v1144_v39 = vld [vmem:[#allocation11 + $0x10] sm:$0xff]  ;;  %s9928_s6 = scalar_lea.hbm %s10160_s5, %s6201_s8 }
 0x225   : > { %v7560_v37 = vld [vmem:[#allocation10] sm:$0xff]   ;;  %v1161_v40 = vld [vmem:[#allocation13 + $0x18] sm:$0xff]  ;;  %v1160_v41 = vld [vmem:[#allocation13 + $0x10] sm:$0xff] }
 0x226   : > { %999 = vperm.xlu1 %7239, %v857_v7   ;;  %994 = vperm.xlu0 %7238, %v856_v8   ;;  %v1147_v42 = vld [vmem:[#allocation11 + $0x28] sm:$0xff]  ;;  %v1146_v43 = vld [vmem:[#allocation11 + $0x20] sm:$0xff]  ;;  %v1149_v46 = vld [vmem:[#allocation11 + $0x38] sm:$0xff] }
 0x227   : > { %6552 = vmatprep.mubr.bf16.mxu0 %v7560_v37  ;;  %6584 = vmatprep.mubr.bf16.mxu1 %v7560_v37  ;;  %v1163_v44 = vld [vmem:[#allocation13 + $0x28] sm:$0xff]  ;;  %v1162_v45 = vld [vmem:[#allocation13 + $0x20] sm:$0xff]  ;;  %v1148_v47 = vld [vmem:[#allocation11 + $0x30] sm:$0xff] }
 0x228   : > { %v1165_v48 = vld [vmem:[#allocation13 + $0x38] sm:$0xff]  ;;  %v1164_v49 = vld [vmem:[#allocation13 + $0x30] sm:$0xff]  ;;  %v1151_v50 = vld [vmem:[#allocation11 + $0x48] sm:$0xff] }
 0x229   : > { %v1150_v51 = vld [vmem:[#allocation11 + $0x40] sm:$0xff]  ;;  %v1167_v52 = vld [vmem:[#allocation13 + $0x48] sm:$0xff]  ;;  %v1153_v54 = vld [vmem:[#allocation11 + $0x58] sm:$0xff] }
 0x22a   : > { %913 = vperm.xlu1 %7239, %v843_v9   ;;  %908 = vperm.xlu0 %7238, %v842_v10   ;;  %v1166_v53 = vld [vmem:[#allocation13 + $0x40] sm:$0xff]  ;;  %v1152_v55 = vld [vmem:[#allocation11 + $0x50] sm:$0xff]  ;;  %v1169_v56 = vld [vmem:[#allocation13 + $0x58] sm:$0xff] }
 0x22b   : > { %v1168_v57 = vld [vmem:[#allocation13 + $0x50] sm:$0xff]  ;;  %v1155_v58 = vld [vmem:[#allocation11 + $0x68] sm:$0xff]  ;;  %v1154_v59 = vld [vmem:[#allocation11 + $0x60] sm:$0xff] }
 0x22c   : > { %v1171_v60 = vld [vmem:[#allocation13 + $0x68] sm:$0xff]  ;;  %v1170_v61 = vld [vmem:[#allocation13 + $0x60] sm:$0xff]  ;;  %v1157_v62 = vld [vmem:[#allocation11 + $0x78] sm:$0xff] }
 0x22d   : > { %v1156_v63 = vld [vmem:[#allocation11 + $0x70] sm:$0xff]  ;;  %v1173_v0 = vld [vmem:[#allocation13 + $0x78] sm:$0xff]  ;;  %v8965_v2 = vld [vmem:[%s8919_s0] sm:$0xff]  }
 0x22e   : > { %1009 = vperm.xlu1 %7239, %v859_v11   ;;  %1004 = vperm.xlu0 %7238, %v858_v12   ;;  %v1172_v1 = vld [vmem:[#allocation13 + $0x70] sm:$0xff]  ;;  %v6235_v3 = vld [vmem:[%s8926_s28] sm:$0xff]   ;;  %v10040_v6 = vunpack.c.l.bf16 %v8965_v2  ;;  %v10038_v8 = vunpack.c.h.bf16 %v8965_v2  ;;  %v8971_v10 = vld [vmem:[%s8919_s0 + $0x8] sm:$0xff]  }
 0x22f   : > { %v6236_v7 = vunpack.c.l.bf16 %v6235_v3  ;;  %v6237_v9 = vunpack.c.h.bf16 %v6235_v3  ;;  %v6273_v11 = vld [vmem:[%s8926_s28 + $0x8] sm:$0xff]  }
 0x232   : > { %923 = vperm.xlu1 %7239, %v845_v13   ;;  %918 = vperm.xlu0 %7238, %v844_v14  }
 0x236   : > { %1019 = vperm.xlu1 %7239, %v861_v15   ;;  %1014 = vperm.xlu0 %7238, %v860_v16  }
 0x23a   : > { %933 = vperm.xlu1 %7239, %v847_v17   ;;  %928 = vperm.xlu0 %7238, %v846_v18   ;;  %v10039_v18 = vunpack.c.h.bf16 %v8971_v10 }
 0x23e   : > { %1029 = vperm.xlu1 %7239, %v863_v19   ;;  %1024 = vperm.xlu0 %7238, %v862_v20   ;;  %v6241_v19 = vunpack.c.h.bf16 %v6273_v11  ;;  %v10041_v20 = vunpack.c.l.bf16 %v8971_v10 }
 0x242   : > { %943 = vperm.xlu1 %7239, %v849_v21   ;;  %938 = vperm.xlu0 %7238, %v848_v22   ;;  %v6240_v21 = vunpack.c.l.bf16 %v6273_v11 }
 0x246   : > { %1039 = vperm.xlu1 %7239, %v865_v23   ;;  %1034 = vperm.xlu0 %7238, %v864_v24  }
 0x24a   : > { %953 = vperm.xlu1 %7239, %v851_v25   ;;  %948 = vperm.xlu0 %7238, %v850_v26  }
 0x24e   : > { %1049 = vperm.xlu1 %7239, %v867_v27   ;;  %1044 = vperm.xlu0 %7238, %v866_v28  }
 0x252   : > { %963 = vperm.xlu1 %7239, %v853_v29   ;;  %958 = vperm.xlu0 %7238, %v852_v30  }
 0x256   : > { %1059 = vperm.xlu1 %7239, %v869_v31   ;;  %1054 = vperm.xlu0 %7238, %v868_v32  }
 0x25a   : > { %1334 = vperm.xlu1 %7239, %v1143_v33   ;;  %1329 = vperm.xlu0 %7238, %v1142_v34   ;;  %v8985_v34 = vld [vmem:[%s8919_s0 + $0x10] sm:$0xff]  }
 0x25e   : > { %1430 = vperm.xlu1 %7239, %v1159_v35   ;;  %1425 = vperm.xlu0 %7238, %v1158_v36   ;;  %v6274_v35 = vld [vmem:[%s8926_s28 + $0x10] sm:$0xff]  }
 0x262   : > { %1344 = vperm.xlu1 %7239, %v1145_v38   ;;  %1339 = vperm.xlu0 %7238, %v1144_v39  }
 0x266   : > { %1440 = vperm.xlu1 %7239, %v1161_v40   ;;  %1435 = vperm.xlu0 %7238, %v1160_v41  }
 0x26a   : > { %1354 = vperm.xlu1 %7239, %v1147_v42   ;;  %1349 = vperm.xlu0 %7238, %v1146_v43   ;;  %v10034_v42 = vunpack.c.h.bf16 %v8985_v34  ;;  %v6245_v43 = vunpack.c.h.bf16 %v6274_v35 }
 0x26e   : > { %1450 = vperm.xlu1 %7239, %v1163_v44   ;;  %1445 = vperm.xlu0 %7238, %v1162_v45   ;;  %v10036_v44 = vunpack.c.l.bf16 %v8985_v34  ;;  %v6244_v45 = vunpack.c.l.bf16 %v6274_v35 }
 0x272   : > { %1364 = vperm.xlu1 %7239, %v1149_v46   ;;  %1359 = vperm.xlu0 %7238, %v1148_v47  }
 0x276   : > { %1460 = vperm.xlu1 %7239, %v1165_v48   ;;  %1455 = vperm.xlu0 %7238, %v1164_v49  }
 0x27a   : > { %1374 = vperm.xlu1 %7239, %v1151_v50   ;;  %1369 = vperm.xlu0 %7238, %v1150_v51  }
 0x27e   : > { %1470 = vperm.xlu1 %7239, %v1167_v52   ;;  %1465 = vperm.xlu0 %7238, %v1166_v53  }
 0x282   : > { %1384 = vperm.xlu1 %7239, %v1153_v54   ;;  %1379 = vperm.xlu0 %7238, %v1152_v55   ;;  %v8995_v54 = vld [vmem:[%s8919_s0 + $0x18] sm:$0xff]  }
 0x283   : > { %v6275_v55 = vld [vmem:[%s8926_s28 + $0x18] sm:$0xff]  }
 0x286   : > { %1480 = vperm.xlu1 %7239, %v1169_v56   ;;  %1475 = vperm.xlu0 %7238, %v1168_v57  }
 0x28a   : > { %1394 = vperm.xlu1 %7239, %v1155_v58   ;;  %1389 = vperm.xlu0 %7238, %v1154_v59  }
 0x28e   : > { %1490 = vperm.xlu1 %7239, %v1171_v60   ;;  %1485 = vperm.xlu0 %7238, %v1170_v61  }
 0x292   : > { %1404 = vperm.xlu1 %7239, %v1157_v62   ;;  %1399 = vperm.xlu0 %7238, %v1156_v63   ;;  %v10035_v62 = vunpack.c.h.bf16 %v8995_v54  ;;  %v6249_v63 = vunpack.c.h.bf16 %v6275_v55 }
 0x296   : > { %1500 = vperm.xlu1 %7239, %v1173_v0   ;;  %1495 = vperm.xlu0 %7238, %v1172_v1   ;;  %v10037_v0 = vunpack.c.l.bf16 %v8995_v54  ;;  %v6248_v1 = vunpack.c.l.bf16 %v6275_v55 }
 0x299   : > { %v985_v4 = vpop.permute.xlu1 %984  ;;  %v889_v5 = vpop.permute.xlu0 %888 }
 0x29a   : > { %v966_v12 = vmul.f32 %v10040_v6, %v889_v5  ;;  %v1094_v13 = vmul.f32 %v6236_v7, %v889_v5 }
 0x29c   : > { %v1062_v26 = vadd.f32 %v985_v4, %v966_v12  ;;  %v1110_v27 = vadd.f32 %v1094_v13, %v985_v4 }
 0x29d   : > { %v990_v14 = vpop.permute.xlu1 %989  ;;  %v894_v15 = vpop.permute.xlu0 %893 }
 0x29e   : > { %v967_v16 = vmul.f32 %v10038_v8, %v894_v15  ;;  %v1095_v17 = vmul.f32 %v6237_v9, %v894_v15  ;;  %v6276_v15 = vld [vmem:[%s8926_s28 + $0x20] sm:$0xff]  }
 0x2a0   : > { %v1063_v22 = vadd.f32 %v990_v14, %v967_v16  ;;  %v1111_v23 = vadd.f32 %v1095_v17, %v990_v14  ;;  %v9005_v14 = vld [vmem:[%s8919_s0 + $0x20] sm:$0xff]  }
 0x2a1   : > { %v904_v24 = vpop.permute.xlu1 %903  ;;  %v899_v25 = vpop.permute.xlu0 %898  ;;  %10121 = vst [vmem:[#allocation47_spill] sm:$0xff] %v9005_v14 }
 0x2a2   : > { %v1174_v28 = vpack.c.bf16 %v1063_v22, %v1062_v26  ;;  %v1535_v29 = vpack.c.bf16 %v1111_v23, %v1110_v27  ;;  %v969_v30 = vmul.f32 %v10039_v18, %v904_v24  ;;  %v1097_v31 = vmul.f32 %v6241_v19, %v904_v24 }
 0x2a3   : > { %v968_v32 = vmul.f32 %v10041_v20, %v899_v25  ;;  %v1096_v33 = vmul.f32 %v6240_v21, %v899_v25  ;;  %v10030_v24 = vunpack.c.h.bf16 %v9005_v14  ;;  %v6253_v25 = vunpack.c.h.bf16 %v6276_v15 }
 0x2a4   : > { %6536 = vmatprep.subr.bf16.mxu0 %v1174_v28  ;;  %6568 = vmatprep.subr.bf16.mxu1 %v1535_v29  ;;  %v10032_v26 = vunpack.c.l.bf16 %v9005_v14  ;;  %v6252_v27 = vunpack.c.l.bf16 %v6276_v15 }
 0x2a5   : > { %v1000_v36 = vpop.permute.xlu1 %999  ;;  %v995_v37 = vpop.permute.xlu0 %994  ;;  %6537 = vmatpush3.bf16.msra.mxu0 %v1174_v28  ;;  %6569 = vmatpush3.bf16.msra.mxu1 %v1535_v29 }
 0x2a6   : > { %v1065_v38 = vadd.f32 %v1000_v36, %v969_v30  ;;  %v1113_v39 = vadd.f32 %v1097_v31, %v1000_v36  ;;  %v1064_v40 = vadd.f32 %v995_v37, %v968_v32  ;;  %v1112_v41 = vadd.f32 %v1096_v33, %v995_v37  ;;  %v9015_v37 = vld [vmem:[%s8919_s0 + $0x28] sm:$0xff]  }
 0x2a7   : > { %10122 = vst [vmem:[#allocation48_spill] sm:$0xff] %v9015_v37 }
 0x2a8   : > { %v1175_v46 = vpack.c.bf16 %v1065_v38, %v1064_v40  ;;  %v1536_v47 = vpack.c.bf16 %v1113_v39, %v1112_v41  ;;  %v6277_v38 = vld [vmem:[%s8926_s28 + $0x28] sm:$0xff]  }
 0x2a9   : > { %v914_v48 = vpop.permute.xlu1 %913  ;;  %v909_v49 = vpop.permute.xlu0 %908 }
 0x2aa   : > { %6538 = vmatprep.subr.bf16.mxu0 %v1175_v46  ;;  %6570 = vmatprep.subr.bf16.mxu1 %v1536_v47  ;;  %v971_v50 = vmul.f32 %v10034_v42, %v914_v48  ;;  %v1099_v51 = vmul.f32 %v6245_v43, %v914_v48  ;;  %v970_v52 = vmul.f32 %v10036_v44, %v909_v49  ;;  %v6257_v48 = vunpack.c.h.bf16 %v6277_v38 }
 0x2ab   : > { %6539 = vmatpush3.bf16.msra.mxu0 %v1175_v46  ;;  %v1098_v53 = vmul.f32 %v6244_v45, %v909_v49  ;;  %6571 = vmatpush3.bf16.msra.mxu1 %v1536_v47  ;;  %v10031_v47 = vunpack.c.h.bf16 %v9015_v37  ;;  %v10033_v49 = vunpack.c.l.bf16 %v9015_v37 }
 0x2ad   : > { %v1010_v56 = vpop.permute.xlu1 %1009  ;;  %v1005_v57 = vpop.permute.xlu0 %1004 }
 0x2ae   : > { %v1067_v58 = vadd.f32 %v1010_v56, %v971_v50  ;;  %v1115_v59 = vadd.f32 %v1099_v51, %v1010_v56  ;;  %v1066_v60 = vadd.f32 %v1005_v57, %v970_v52  ;;  %v1114_v61 = vadd.f32 %v1098_v53, %v1005_v57 }
 0x2af   : > { %v6256_v50 = vunpack.c.l.bf16 %v6277_v38 }
 0x2b0   : > { %v1176_v3 = vpack.c.bf16 %v1067_v58, %v1066_v60  ;;  %v1537_v4 = vpack.c.bf16 %v1115_v59, %v1114_v61  ;;  %v9025_v60 = vld [vmem:[%s8919_s0 + $0x30] sm:$0xff]  }
 0x2b1   : > { %v924_v5 = vpop.permute.xlu1 %923  ;;  %v919_v7 = vpop.permute.xlu0 %918  ;;  %10123 = vst [vmem:[#allocation49_spill] sm:$0xff] %v9025_v60  ;;  %v6278_v61 = vld [vmem:[%s8926_s28 + $0x30] sm:$0xff]  }
 0x2b2   : > { %6540 = vmatprep.subr.bf16.mxu0 %v1176_v3  ;;  %6572 = vmatprep.subr.bf16.mxu1 %v1537_v4  ;;  %v973_v9 = vmul.f32 %v10035_v62, %v924_v5  ;;  %v1101_v11 = vmul.f32 %v6249_v63, %v924_v5  ;;  %v972_v12 = vmul.f32 %v10037_v0, %v919_v7 }
 0x2b3   : > { %6541 = vmatpush3.bf16.msra.mxu0 %v1176_v3  ;;  %v1100_v13 = vmul.f32 %v6248_v1, %v919_v7  ;;  %6573 = vmatpush3.bf16.msra.mxu1 %v1537_v4 }
 0x2b5   : > { %v1020_v16 = vpop.permute.xlu1 %1019  ;;  %v1015_v17 = vpop.permute.xlu0 %1014 }
 0x2b6   : > { %v1069_v19 = vadd.f32 %v1020_v16, %v973_v9  ;;  %v1117_v21 = vadd.f32 %v1101_v11, %v1020_v16  ;;  %v1068_v22 = vadd.f32 %v1015_v17, %v972_v12  ;;  %v1116_v23 = vadd.f32 %v1100_v13, %v1015_v17 }
 0x2b7   : > { %v10026_v9 = vunpack.c.h.bf16 %v9025_v60  ;;  %v6261_v11 = vunpack.c.h.bf16 %v6278_v61  ;;  %v10028_v12 = vunpack.c.l.bf16 %v9025_v60  ;;  %v6260_v13 = vunpack.c.l.bf16 %v6278_v61 }
 0x2b8   : > { %v1177_v28 = vpack.c.bf16 %v1069_v19, %v1068_v22  ;;  %v1538_v29 = vpack.c.bf16 %v1117_v21, %v1116_v23 }
 0x2b9   : > { %v934_v30 = vpop.permute.xlu1 %933  ;;  %v929_v31 = vpop.permute.xlu0 %928 }
 0x2ba   : > { %6542 = vmatprep.subr.bf16.mxu0 %v1177_v28  ;;  %6574 = vmatprep.subr.bf16.mxu1 %v1538_v29  ;;  %v975_v32 = vmul.f32 %v10030_v24, %v934_v30  ;;  %v1103_v33 = vmul.f32 %v6253_v25, %v934_v30  ;;  %v974_v35 = vmul.f32 %v10032_v26, %v929_v31 }
 0x2bb   : > { %6543 = vmatpush3.bf16.msra.mxu0 %v1177_v28  ;;  %v1102_v36 = vmul.f32 %v6252_v27, %v929_v31  ;;  %6575 = vmatpush3.bf16.msra.mxu1 %v1538_v29  ;;  %v9035_v27 = vld [vmem:[%s8919_s0 + $0x38] sm:$0xff]  }
 0x2bc   : > { %10124 = vst [vmem:[#allocation50_spill] sm:$0xff] %v9035_v27  ;;  %v6279_v28 = vld [vmem:[%s8926_s28 + $0x38] sm:$0xff]   ;;  %s8188_s28 = scalar_lea.vmem %s9934_s24, 2048 }
 0x2bd   : > { %v1030_v39 = vpop.permute.xlu1 %1029  ;;  %v1025_v40 = vpop.permute.xlu0 %1024  ;;  %v6265_v38 = vunpack.c.h.bf16 %v6279_v28  ;;  %p8189_p8 = scmp.ne.s32.totalorder %s9934_s24, %s8188_s28 }
 0x2be   : > { %v1071_v41 = vadd.f32 %v1030_v39, %v975_v32  ;;  %v1119_v43 = vadd.f32 %v1103_v33, %v1030_v39  ;;  %v1070_v45 = vadd.f32 %v1025_v40, %v974_v35  ;;  %v1118_v46 = vadd.f32 %v1102_v36, %v1025_v40 }
 0x2bf   : > { %v10027_v36 = vunpack.c.h.bf16 %v9035_v27  ;;  %v10029_v39 = vunpack.c.l.bf16 %v9035_v27  ;;  %v6264_v40 = vunpack.c.l.bf16 %v6279_v28  ;;  %p8190_p12 = pnand %p8189_p8, %p10162_p3 }
 0x2c0   : > { %v1178_v51 = vpack.c.bf16 %v1071_v41, %v1070_v45  ;;  %v1539_v52 = vpack.c.bf16 %v1119_v43, %v1118_v46 }
 0x2c1   : > { %v944_v53 = vpop.permute.xlu1 %943  ;;  %v939_v55 = vpop.permute.xlu0 %938  ;;  %p8191_p6 = pneg %p8190_p12 }
 0x2c2   : > { %6544 = vmatprep.subr.bf16.mxu0 %v1178_v51  ;;  %6576 = vmatprep.subr.bf16.mxu1 %v1539_v52  ;;  %v977_v56 = vmul.f32 %v10031_v47, %v944_v53  ;;  %v1105_v57 = vmul.f32 %v6257_v48, %v944_v53  ;;  %v976_v58 = vmul.f32 %v10033_v49, %v939_v55 }
 0x2c3   : > { %6545 = vmatpush3.bf16.msra.mxu0 %v1178_v51  ;;  %v1104_v59 = vmul.f32 %v6256_v50, %v939_v55  ;;  %6577 = vmatpush3.bf16.msra.mxu1 %v1539_v52 }
 0x2c5   : > { %v1040_v63 = vpop.permute.xlu1 %1039  ;;  %v1035_v1 = vpop.permute.xlu0 %1034 }
 0x2c6   : > { %v1073_v3 = vadd.f32 %v1040_v63, %v977_v56  ;;  %v1121_v4 = vadd.f32 %v1105_v57, %v1040_v63  ;;  %v1072_v5 = vadd.f32 %v1035_v1, %v976_v58  ;;  %v1120_v7 = vadd.f32 %v1104_v59, %v1035_v1  ;;  %v7561_v1 = vld [vmem:[#allocation10 + $0x8] sm:$0xff]  }
 0x2c8   : > { %v1179_v15 = vpack.c.bf16 %v1073_v3, %v1072_v5  ;;  %v1540_v16 = vpack.c.bf16 %v1121_v4, %v1120_v7  ;;  %v7562_v3 = vld [vmem:[#allocation10 + $0x10] sm:$0xff]   ;;  %v7563_v4 = vld [vmem:[#allocation10 + $0x18] sm:$0xff]   ;;  %v7564_v5 = vld [vmem:[#allocation10 + $0x20] sm:$0xff]  }
 0x2c9   : > { %v954_v17 = vpop.permute.xlu1 %953  ;;  %v949_v19 = vpop.permute.xlu0 %948  ;;  %v7565_v7 = vld [vmem:[#allocation10 + $0x28] sm:$0xff]  }
 0x2ca   : > { %6546 = vmatprep.subr.bf16.mxu0 %v1179_v15  ;;  %6578 = vmatprep.subr.bf16.mxu1 %v1540_v16  ;;  %v979_v21 = vmul.f32 %v10026_v9, %v954_v17  ;;  %v1107_v22 = vmul.f32 %v6261_v11, %v954_v17  ;;  %v978_v23 = vmul.f32 %v10028_v12, %v949_v19  ;;  %v7566_v11 = vld [vmem:[#allocation10 + $0x30] sm:$0xff]  }
 0x2cb   : > { %6547 = vmatpush3.bf16.msra.mxu0 %v1179_v15  ;;  %v1106_v25 = vmul.f32 %v6260_v13, %v949_v19  ;;  %6579 = vmatpush3.bf16.msra.mxu1 %v1540_v16  ;;  %v7567_v13 = vld [vmem:[#allocation10 + $0x38] sm:$0xff]  }
 0x2cd   : > { %v1050_v29 = vpop.permute.xlu1 %1049  ;;  %v1045_v30 = vpop.permute.xlu0 %1044 }
 0x2ce   : > { %v1075_v31 = vadd.f32 %v1050_v29, %v979_v21  ;;  %v1123_v32 = vadd.f32 %v1107_v22, %v1050_v29  ;;  %v1074_v33 = vadd.f32 %v1045_v30, %v978_v23  ;;  %v1122_v35 = vadd.f32 %v1106_v25, %v1045_v30 }
 0x2d0   : > { %v1180_v41 = vpack.c.bf16 %v1075_v31, %v1074_v33  ;;  %v1541_v43 = vpack.c.bf16 %v1123_v32, %v1122_v35 }
 0x2d1   : > { %v964_v45 = vpop.permute.xlu1 %963  ;;  %v959_v46 = vpop.permute.xlu0 %958 }
 0x2d2   : > { %6548 = vmatprep.subr.bf16.mxu0 %v1180_v41  ;;  %6580 = vmatprep.subr.bf16.mxu1 %v1541_v43  ;;  %v981_v48 = vmul.f32 %v10027_v36, %v964_v45  ;;  %v1109_v50 = vmul.f32 %v6265_v38, %v964_v45  ;;  %v980_v51 = vmul.f32 %v10029_v39, %v959_v46 }
 0x2d3   : > { %6549 = vmatpush3.bf16.msra.mxu0 %v1180_v41  ;;  %v1108_v52 = vmul.f32 %v6264_v40, %v959_v46  ;;  %6581 = vmatpush3.bf16.msra.mxu1 %v1541_v43 }
 0x2d5   : > { %v1060_v53 = vpop.permute.xlu1 %1059  ;;  %v1055_v55 = vpop.permute.xlu0 %1054 }
 0x2d6   : > { %v1077_v56 = vadd.f32 %v1060_v53, %v981_v48  ;;  %v1125_v57 = vadd.f32 %v1109_v50, %v1060_v53  ;;  %v1076_v58 = vadd.f32 %v1055_v55, %v980_v51  ;;  %v1124_v59 = vadd.f32 %v1108_v52, %v1055_v55 }
 0x2d8   : > { %v1181_v61 = vpack.c.bf16 %v1077_v56, %v1076_v58  ;;  %v1542_v63 = vpack.c.bf16 %v1125_v57, %v1124_v59 }
 0x2d9   : > { %v1330_v15 = vpop.permute.xlu0 %1329  ;;  %v1335_v16 = vpop.permute.xlu1 %1334 }
 0x2da   : > { %6550 = vmatprep.subr.bf16.mxu0 %v1181_v61  ;;  %6582 = vmatprep.subr.bf16.mxu1 %v1542_v63 }
 0x2db   : > { %6551 = vmatpush3.bf16.msra.mxu0 %v1181_v61  ;;  %6583 = vmatpush3.bf16.msra.mxu1 %v1542_v63 }
 0x2dd   : > { %v1426_v17 = vpop.permute.xlu0 %1425  ;;  %v1431_v19 = vpop.permute.xlu1 %1430 }
 0x2de   : > { %6553 = vmatmul.mubr.bf16.vlgmr.msra.gmra.mrb[0].mxu0 %v7561_v1  ;;  %6585 = vmatmul.mubr.bf16.vlgmr.msra.gmra.mrb[0].mxu1 %v7561_v1 }
 0x2df   : > { %6556 = vmatprep.mubr.bf16.mxu0 %v7562_v3  ;;  %6588 = vmatprep.mubr.bf16.mxu1 %v7562_v3 }
 0x2e1   : > { %v1340_v21 = vpop.permute.xlu0 %1339  ;;  %v1345_v22 = vpop.permute.xlu1 %1344 }
 0x2e5   : > { %v1436_v23 = vpop.permute.xlu0 %1435  ;;  %v1441_v25 = vpop.permute.xlu1 %1440 }
 0x2e6   : > { %6557 = vmatmul.mubr.bf16.gmra.mrb[4].mxu0 %v7563_v4  ;;  %6589 = vmatmul.mubr.bf16.gmra.mrb[4].mxu1 %v7563_v4 }
 0x2e7   : > { %6560 = vmatprep.mubr.bf16.mxu0 %v7564_v5  ;;  %6592 = vmatprep.mubr.bf16.mxu1 %v7564_v5 }
 0x2e9   : > { %v1350_v28 = vpop.permute.xlu0 %1349  ;;  %v9044_v29 = vpop.permute.xlu1 %1354 }
 0x2ed   : > { %v9046_v30 = vpop.permute.xlu0 %1445  ;;  %v9048_v31 = vpop.permute.xlu1 %1450 }
 0x2ee   : > { %6561 = vmatmul.mubr.bf16.gmra.mrb[8].mxu0 %v7565_v7  ;;  %6593 = vmatmul.mubr.bf16.gmra.mrb[8].mxu1 %v7565_v7 }
 0x2ef   : > { %6564 = vmatprep.mubr.bf16.mxu0 %v7566_v11  ;;  %6596 = vmatprep.mubr.bf16.mxu1 %v7566_v11 }
 0x2f1   : > { %v1360_v32 = vpop.permute.xlu0 %1359  ;;  %v9050_v33 = vpop.permute.xlu1 %1364 }
 0x2f5   : > { %v1456_v35 = vpop.permute.xlu0 %1455  ;;  %v9052_v38 = vpop.permute.xlu1 %1460 }
 0x2f6   : > { %6565 = vmatmul.mubr.bf16.gmra.mrb[12].mxu0 %v7567_v13  ;;  %6597 = vmatmul.mubr.bf16.gmra.mrb[12].mxu1 %v7567_v13 }
 0x2f9   : > { %v9054_v40 = vpop.permute.xlu0 %1369  ;;  %v9056_v41 = vpop.permute.xlu1 %1374 }
 0x2fd   : > { %v9058_v43 = vpop.permute.xlu0 %1465  ;;  %v9060_v45 = vpop.permute.xlu1 %1470 }
 0x301   : > { %v9062_v46 = vpop.permute.xlu0 %1379  ;;  %v9064_v48 = vpop.permute.xlu1 %1384 }
 0x305   : > { %v9066_v50 = vpop.permute.xlu0 %1475  ;;  %v9068_v51 = vpop.permute.xlu1 %1480 }
 0x309   : > { %v9070_v52 = vpop.permute.xlu0 %1389 }
 0x3b1   : > { %v6554_v53 = vpop.f32.mrb[0].mxu0  ;;  %v6586_v55 = vpop.f32.mrb[0].mxu1 }
 0x3b2   : > { %v1409_v56 = vmul.f32 %v6554_v53, %v1340_v21  ;;  %v1642_v57 = vmul.f32 %v6586_v55, %v1340_v21  ;;  %v1264_v58 = vpop.f32.mrb[1].mxu0  ;;  %v1577_v59 = vpop.f32.mrb[1].mxu1 }
 0x3b3   : > { %v1407_v61 = vmul.f32 %v1330_v15, %v1264_v58  ;;  %v1640_v63 = vmul.f32 %v1577_v59, %v1330_v15  ;;  %v6555_v1 = vpop.f32.mrb[2].mxu0  ;;  %v6587_v3 = vpop.f32.mrb[2].mxu1 }
 0x3b4   : > { %v1505_v4 = vadd.f32 %v1436_v23, %v1409_v56  ;;  %v1658_v5 = vadd.f32 %v1642_v57, %v1436_v23  ;;  %v1410_v7 = vmul.f32 %v6555_v1, %v1345_v22  ;;  %v1643_v11 = vmul.f32 %v6587_v3, %v1345_v22  ;;  %v1267_v13 = vpop.f32.mrb[3].mxu0  ;;  %v1580_v9 = vpop.f32.mrb[3].mxu1 }
 0x3b5   : > { %v1503_v36 = vadd.f32 %v1426_v17, %v1407_v61  ;;  %v1656_v12 = vadd.f32 %v1640_v63, %v1426_v17  ;;  %v1408_v39 = vmul.f32 %v1335_v16, %v1267_v13  ;;  %v1641_v24 = vmul.f32 %v1580_v9, %v1335_v16  ;;  %v9072_v53 = vpop.permute.xlu1 %1394  ;;  %v9074_v55 = vpop.permute.xlu0 %1485 }
 0x3b6   : > { %7672 = vtanh.f32 %v1505_v4  ;;  %v1506_v47 = vadd.f32 %v1441_v25, %v1410_v7  ;;  %v1659_v21 = vadd.f32 %v1643_v11, %v1441_v25 }
 0x3b7   : > { %7674 = vtanh.f32 %v1658_v5  ;;  %v1504_v15 = vadd.f32 %v1431_v19, %v1408_v39  ;;  %v1657_v23 = vadd.f32 %v1641_v24, %v1431_v19 }
 0x3b8   : > { %7676 = vtanh.f32 %v1503_v36 }
 0x3b9   : > { %7678 = vtanh.f32 %v1656_v12  ;;  %v6558_v56 = vpop.f32.mrb[4].mxu0  ;;  %v6590_v22 = vpop.f32.mrb[4].mxu1 }
 0x3ba   : > { %7680 = vtanh.f32 %v1506_v47  ;;  %v1413_v57 = vmul.f32 %v6558_v56, %v1360_v32  ;;  %v1646_v58 = vmul.f32 %v6590_v22, %v1360_v32  ;;  %v1280_v17 = vpop.f32.mrb[5].mxu0  ;;  %v1593_v59 = vpop.f32.mrb[5].mxu1 }
 0x3bb   : > { %7682 = vtanh.f32 %v1659_v21  ;;  %v1411_v9 = vmul.f32 %v1350_v28, %v1280_v17  ;;  %v1644_v16 = vmul.f32 %v1593_v59, %v1350_v28  ;;  %v6559_v61 = vpop.f32.mrb[6].mxu0  ;;  %v6591_v25 = vpop.f32.mrb[6].mxu1 }
 0x3bc   : > { %7684 = vtanh.f32 %v1504_v15  ;;  %v1509_v63 = vadd.f32 %v1456_v35, %v1413_v57  ;;  %v1662_v1 = vadd.f32 %v1646_v58, %v1456_v35  ;;  %v1414_v36 = vmul.f32 %v6559_v61, %v9050_v33  ;;  %v1283_v39 = vpop.f32.mrb[7].mxu0  ;;  %v1596_v12 = vpop.f32.mrb[7].mxu1 }
 0x3bd   : > { %7686 = vtanh.f32 %v1657_v23  ;;  %v1507_v24 = vadd.f32 %v9046_v30, %v1411_v9  ;;  %v1660_v47 = vadd.f32 %v1644_v16, %v9046_v30  ;;  %v1647_v19 = vmul.f32 %v6591_v25, %v9050_v33  ;;  %v9086_v5 = vpop.permute.xlu1 %1490  ;;  %v9088_v7 = vpop.permute.xlu0 %1399 }
 0x3be   : > { %7688 = vtanh.f32 %v1509_v63  ;;  %v1510_v32 = vadd.f32 %v9052_v38, %v1414_v36  ;;  %v1412_v28 = vmul.f32 %v9044_v29, %v1283_v39  ;;  %v1645_v3 = vmul.f32 %v1596_v12, %v9044_v29 }
 0x3bf   : > { %7690 = vtanh.f32 %v1662_v1  ;;  %v1663_v35 = vadd.f32 %v1647_v19, %v9052_v38 }
 0x3c0   : > { %v9084_v4 = vpop.eup %7672  ;;  %7692 = vtanh.f32 %v1507_v24  ;;  %v1508_v30 = vadd.f32 %v9048_v31, %v1412_v28  ;;  %v1661_v11 = vadd.f32 %v1645_v3, %v9048_v31 }
 0x3c1   : > { %v9091_v33 = vpop.eup %7674  ;;  %7694 = vtanh.f32 %v1660_v47  ;;  %v6562_v13 = vpop.f32.mrb[8].mxu0 }
 0x3c2   : > { %v6594_v21 = vpop.f32.mrb[8].mxu1  ;;  %v9094_v29 = vpop.eup %7676  ;;  %7696 = vtanh.f32 %v1510_v32  ;;  %v1417_v38 = vmul.f32 %v6562_v13, %v9062_v46 }
 0x3c3   : > { %v1650_v15 = vmul.f32 %v6594_v21, %v9062_v46  ;;  %v1296_v23 = vpop.f32.mrb[9].mxu0  ;;  %v1609_v56 = vpop.f32.mrb[9].mxu1  ;;  %7698 = vtanh.f32 %v1663_v35 }
 0x3c4   : > { %v9098_v22 = vpop.eup %7678  ;;  %v1415_v57 = vmul.f32 %v9054_v40, %v1296_v23  ;;  %v1648_v58 = vmul.f32 %v1609_v56, %v9054_v40  ;;  %v6563_v17 = vpop.f32.mrb[10].mxu0  ;;  %7700 = vtanh.f32 %v1508_v30  ;;  %v1513_v9 = vadd.f32 %v9066_v50, %v1417_v38 }
 0x3c5   : > { %v6595_v31 = vpop.f32.mrb[10].mxu1  ;;  %v9102_v59 = vpop.eup %7680  ;;  %v1666_v16 = vadd.f32 %v1650_v15, %v9066_v50  ;;  %v1418_v46 = vmul.f32 %v6563_v17, %v9064_v48  ;;  %7702 = vtanh.f32 %v1661_v11 }
 0x3c6   : > { %v1299_v61 = vpop.f32.mrb[11].mxu0  ;;  %v1612_v25 = vpop.f32.mrb[11].mxu1  ;;  %v1511_v1 = vadd.f32 %v9058_v43, %v1415_v57  ;;  %v1651_v40 = vmul.f32 %v6595_v31, %v9064_v48  ;;  %7704 = vtanh.f32 %v1513_v9  ;;  %v1664_v19 = vadd.f32 %v1648_v58, %v9058_v43 }
 0x3c7   : > { %v9107_v63 = vpop.eup %7682  ;;  %v1514_v39 = vadd.f32 %v9068_v51, %v1418_v46  ;;  %v1416_v12 = vmul.f32 %v9056_v41, %v1299_v61  ;;  %v1649_v50 = vmul.f32 %v1612_v25, %v9056_v41  ;;  %v1405_v47 = vpop.permute.xlu1 %1404  ;;  %7706 = vtanh.f32 %v1666_v16 }
 0x3c8   : > { %v9111_v36 = vpop.eup %7684  ;;  %v9123_v48 = vpop.permute.xlu0 %1495  ;;  %7708 = vtanh.f32 %v1511_v1  ;;  %v7245_v13 = vpack.i.bf16 %v9102_v59, %v9084_v4  ;;  %v1667_v23 = vadd.f32 %v1651_v40, %v9068_v51  ;;  %v7255_v61 = vpack.i.bf16 %v9107_v63, %v9091_v33 }
 0x3c9   : > { %v9116_v24 = vpop.eup %7686  ;;  %v7240_v32 = vpack.i.bf16 %v9111_v36, %v9094_v29  ;;  %v1512_v3 = vadd.f32 %v9060_v45, %v1416_v12  ;;  %v1665_v30 = vadd.f32 %v1649_v50, %v9060_v45  ;;  %v6566_v43 = vpop.f32.mrb[12].mxu0  ;;  %7710 = vtanh.f32 %v1514_v39 }
 0x3ca   : > { %v9121_v28 = vpop.eup %7688  ;;  %v7250_v35 = vpack.i.bf16 %v9116_v24, %v9098_v22  ;;  %v6598_v11 = vpop.f32.mrb[12].mxu1  ;;  %v1421_v45 = vmul.f32 %v6566_v43, %v9088_v7  ;;  %7712 = vtanh.f32 %v1664_v19 }
 0x3cb   : > { %v9128_v41 = vpop.eup %7690  ;;  %7241 = vrot.lane.b32.xlu0 %v7240_v32, %s8329_s1  ;;  %v1625_v56 = vpop.f32.mrb[13].mxu1  ;;  %7714 = vtanh.f32 %v1512_v3 }
 0x3cc   : > { %v9138_v15 = vpop.eup %7692  ;;  %7251 = vrot.lane.b32.xlu1 %v7250_v35, %s8330_s9  ;;  %v1312_v57 = vpop.f32.mrb[13].mxu0  ;;  %v1652_v17 = vmul.f32 %v1625_v56, %v9070_v52  ;;  %v1517_v51 = vadd.f32 %v9123_v48, %v1421_v45  ;;  %7716 = vtanh.f32 %v1665_v30 }
 0x3cd   : > { %v9143_v58 = vpop.eup %7694  ;;  %v1419_v31 = vmul.f32 %v9070_v52, %v1312_v57  ;;  %v6567_v9 = vpop.f32.mrb[14].mxu0  ;;  %7718 = vtanh.f32 %v1667_v23  ;;  %v1654_v23 = vmul.f32 %v6598_v11, %v9088_v7 }
 0x3ce   : > { %v6599_v16 = vpop.f32.mrb[14].mxu1  ;;  %v9147_v46 = vpop.eup %7696  ;;  %v1422_v25 = vmul.f32 %v6567_v9, %v1405_v47  ;;  %v1668_v50 = vadd.f32 %v1652_v17, %v9074_v55  ;;  %7720 = vtanh.f32 %v1517_v51 }
 0x3cf   : > { %v1315_v1 = vpop.f32.mrb[15].mxu0  ;;  %v1628_v40 = vpop.f32.mrb[15].mxu1  ;;  %7246 = vrot.lane.b32.xlu0 %v7245_v13, %s8329_s1  ;;  %v1515_v43 = vadd.f32 %v9074_v55, %v1419_v31  ;;  %v1655_v30 = vmul.f32 %v6599_v16, %v1405_v47  ;;  %v7265_v55 = vpack.i.bf16 %v9147_v46, %v9121_v28  ;;  %v1670_v51 = vadd.f32 %v1654_v23, %v9123_v48 }
 0x3d0   : > { %v9152_v39 = vpop.eup %7698  ;;  %v1501_v12 = vpop.permute.xlu1 %1500  ;;  %7256 = vrot.lane.b32.xlu1 %v7255_v61, %s8330_s9  ;;  %v1420_v32 = vmul.f32 %v9072_v53, %v1315_v1  ;;  %v1653_v3 = vmul.f32 %v1628_v40, %v9072_v53  ;;  %7722 = vtanh.f32 %v1668_v50 }
 0x3d1   : > { %v9156_v52 = vpop.eup %7700  ;;  %v1518_v19 = vadd.f32 %v1501_v12, %v1422_v25  ;;  %v1671_v31 = vadd.f32 %v1655_v30, %v1501_v12 }
 0x3d2   : > { %v9161_v35 = vpop.eup %7702  ;;  %v7260_v45 = vpack.i.bf16 %v9156_v52, %v9138_v15  ;;  %v1516_v56 = vadd.f32 %v9086_v5, %v1420_v32  ;;  %v1669_v17 = vadd.f32 %v1653_v3, %v9086_v5  ;;  %v7275_v5 = vpack.i.bf16 %v9152_v39, %v9128_v41 }
 0x3d3   : > { %v9166_v13 = vpop.eup %7704  ;;  %v7270_v57 = vpack.i.bf16 %v9161_v35, %v9143_v58  ;;  %7724 = vtanh.f32 %v1518_v19 }
 0x3d4   : > { %v9172_v53 = vpop.eup %7706  ;;  %7261 = vrot.lane.b32.xlu0 %v7260_v45, %s8329_s1  ;;  %7726 = vtanh.f32 %v1515_v43 }
 0x3d5   : > { %v9182_v11 = vpop.eup %7708  ;;  %7271 = vrot.lane.b32.xlu1 %v7270_v57, %s8330_s9  ;;  %7728 = vtanh.f32 %v1516_v56 }
 0x3d6   : > { %v9185_v9 = vpop.eup %7710  ;;  %7730 = vtanh.f32 %v1669_v17 }
 0x3d7   : > { %v9189_v16 = vpop.eup %7712  ;;  %v7285_v61 = vpack.i.bf16 %v9185_v9, %v9166_v13  ;;  %7732 = vtanh.f32 %v1671_v31 }
 0x3d8   : > { %7266 = vrot.lane.b32.xlu0 %v7265_v55, %s8329_s1  ;;  %v9197_v1 = vpop.eup %7714  ;;  %7734 = vtanh.f32 %v1670_v51 }
 0x3d9   : > { %7276 = vrot.lane.b32.xlu1 %v7275_v5, %s8330_s9  ;;  %v9200_v40 = vpop.eup %7716  ;;  %v7280_v12 = vpack.i.bf16 %v9197_v1, %v9182_v11 }
 0x3da   : > { %v9206_v50 = vpop.eup %7718  ;;  %v7290_v19 = vpack.i.bf16 %v9200_v40, %v9189_v16 }
 0x3db   : > { %v9210_v32 = vpop.eup %7720  ;;  %v7295_v30 = vpack.i.bf16 %v9206_v50, %v9172_v53 }
 0x3dc   : > { %7281 = vrot.lane.b32.xlu0 %v7280_v12, %s8329_s1  ;;  %v9213_v3 = vpop.eup %7722 }
 0x3dd   : > { %7291 = vrot.lane.b32.xlu1 %v7290_v19, %s8330_s9  ;;  %v9216_v43 = vpop.eup %7724 }
 0x3de   : > { %v9220_v45 = vpop.eup %7726  ;;  %v7305_v23 = vpack.i.bf16 %v9216_v43, %v9210_v32 }
 0x3df   : > { %v9227_v57 = vpop.eup %7728 }
 0x3e0   : > { %7286 = vrot.lane.b32.xlu0 %v7285_v61, %s8329_s1  ;;  %v9230_v17 = vpop.eup %7730  ;;  %v7300_v55 = vpack.i.bf16 %v9227_v57, %v9220_v45 }
 0x3e1   : > { %7296 = vrot.lane.b32.xlu1 %v7295_v30, %s8330_s9  ;;  %v7310_v5 = vpack.i.bf16 %v9230_v17, %v9213_v3  ;;  %v9238_v51 = vpop.eup %7732 }
 0x3e2   : > { %v9242_v61 = vpop.eup %7734 }
 0x3e3   : > { %v7315_v12 = vpack.i.bf16 %v9238_v51, %v9242_v61 }
 0x3e4   : > { %7301 = vrot.lane.b32.xlu0 %v7300_v55, %s8329_s1 }
 0x3e5   : > { %7311 = vrot.lane.b32.xlu1 %v7310_v5, %s8330_s9 }
 0x3e8   : > { %7306 = vrot.lane.b32.xlu0 %v7305_v23, %s8329_s1  ;;  %s8337_s1 = smov [#allocation28]  }
 0x3e9   : > { %7316 = vrot.lane.b32.xlu1 %v7315_v12, %s8330_s9 }
 0x43d   : > { %v7242_v19 = vpop.permute.xlu0 %7241 }
 0x43e   : > { %v7252_v30 = vpop.permute.xlu1 %7251  ;;  %v7244_v26 = vunpack.i.h.bf16 %v7242_v19  ;;  %v7243_v49 = vunpack.i.l.bf16 %v7242_v19 }
 0x43f   : > { %v7254_v42 = vunpack.i.h.bf16 %v7252_v30  ;;  %v7253_v62 = vunpack.i.l.bf16 %v7252_v30 }
 0x440   : > { %v1818_v55 = vsel %vm1816_vm0, %v9116_v24, %v7244_v26  ;;  %v1817_v5 = vsel %vm1816_vm0, %v9098_v22, %v7243_v49 }
 0x441   : > { %v7247_v44 = vpop.permute.xlu0 %7246  ;;  %v9253_v0 = vsel %vm1833_vm1, %v1817_v5, %v7253_v62  ;;  %v9256_v23 = vsel %vm1833_vm1, %v1818_v55, %v7254_v42 }
 0x442   : > { %v7257_v12 = vpop.permute.xlu1 %7256  ;;  %v7249_v8 = vunpack.i.h.bf16 %v7247_v44  ;;  %v7248_v18 = vunpack.i.l.bf16 %v7247_v44  ;;  %v9260_v19 = vpack.i.bf16 %v9256_v23, %v9253_v0 }
 0x443   : > { %v7259_v30 = vunpack.i.h.bf16 %v7257_v12  ;;  %v7258_v6 = vunpack.i.l.bf16 %v7257_v12 }
 0x444   : > { %v1820_v26 = vsel %vm1816_vm0, %v9107_v63, %v7249_v8  ;;  %v1819_v49 = vsel %vm1816_vm0, %v9091_v33, %v7248_v18  ;;  %7321 = vrot.lane.b32.xlu0 %v9260_v19, %s8331_s30 }
 0x445   : > { %v9269_v62 = vsel %vm1833_vm1, %v1819_v49, %v7258_v6  ;;  %v9272_v44 = vsel %vm1833_vm1, %v1820_v26, %v7259_v30 }
 0x446   : > { %v7262_v42 = vpop.permute.xlu0 %7261  ;;  %v9276_v8 = vpack.i.bf16 %v9272_v44, %v9269_v62 }
 0x447   : > { %v7272_v22 = vpop.permute.xlu1 %7271  ;;  %v7264_v24 = vunpack.i.h.bf16 %v7262_v42  ;;  %v7263_v55 = vunpack.i.l.bf16 %v7262_v42 }
 0x448   : > { %v7274_v63 = vunpack.i.h.bf16 %v7272_v22  ;;  %v7273_v18 = vunpack.i.l.bf16 %v7272_v22  ;;  %7326 = vrot.lane.b32.xlu1 %v9276_v8, %s8331_s30 }
 0x449   : > { %v1822_v33 = vsel %vm1816_vm0, %v9161_v35, %v7264_v24  ;;  %v1821_v5 = vsel %vm1816_vm0, %v9143_v58, %v7263_v55 }
 0x44a   : > { %v7267_v6 = vpop.permute.xlu0 %7266  ;;  %v9285_v12 = vsel %vm1833_vm1, %v1821_v5, %v7273_v18  ;;  %v9288_v30 = vsel %vm1833_vm1, %v1822_v33, %v7274_v63 }
 0x44b   : > { %v7277_v26 = vpop.permute.xlu1 %7276  ;;  %v7269_v49 = vunpack.i.h.bf16 %v7267_v6  ;;  %v7268_v42 = vunpack.i.l.bf16 %v7267_v6  ;;  %v9292_v22 = vpack.i.bf16 %v9288_v30, %v9285_v12 }
 0x44c   : > { %v7279_v35 = vunpack.i.h.bf16 %v7277_v26  ;;  %v7278_v24 = vunpack.i.l.bf16 %v7277_v26 }
 0x44d   : > { %v1824_v58 = vsel %vm1816_vm0, %v9152_v39, %v7269_v49  ;;  %v1823_v55 = vsel %vm1816_vm0, %v9128_v41, %v7268_v42  ;;  %7331 = vrot.lane.b32.xlu0 %v9292_v22, %s8331_s30 }
 0x44e   : > { %v7282_v63 = vpop.permute.xlu0 %7281  ;;  %v1840_v18 = vsel %vm1833_vm1, %v1823_v55, %v7278_v24  ;;  %v1841_v33 = vsel %vm1833_vm1, %v1824_v58, %v7279_v35 }
 0x44f   : > { %v7292_v5 = vpop.permute.xlu1 %7291  ;;  %v7284_v6 = vunpack.i.h.bf16 %v7282_v63  ;;  %v7283_v20 = vunpack.i.l.bf16 %v7282_v63  ;;  %v7335_v56 = vpack.i.bf16 %v1841_v33, %v1840_v18 }
 0x450   : > { %v7294_v31 = vunpack.i.h.bf16 %v7292_v5  ;;  %v7293_v26 = vunpack.i.l.bf16 %v7292_v5 }
 0x451   : > { %v1826_v39 = vsel %vm1816_vm0, %v9200_v40, %v7284_v6  ;;  %v1825_v41 = vsel %vm1816_vm0, %v9189_v16, %v7283_v20  ;;  %7336 = vrot.lane.b32.xlu1 %v7335_v56, %s8331_s30 }
 0x452   : > { %v7287_v49 = vpop.permute.xlu0 %7286  ;;  %v1842_v42 = vsel %vm1833_vm1, %v1825_v41, %v7293_v26  ;;  %v1843_v24 = vsel %vm1833_vm1, %v1826_v39, %v7294_v31 }
 0x453   : > { %v7297_v35 = vpop.permute.xlu1 %7296  ;;  %v7289_v58 = vunpack.i.h.bf16 %v7287_v49  ;;  %v7288_v55 = vunpack.i.l.bf16 %v7287_v49  ;;  %v7340_v63 = vpack.i.bf16 %v1843_v24, %v1842_v42 }
 0x454   : > { %v7299_v25 = vunpack.i.h.bf16 %v7297_v35  ;;  %v7298_v48 = vunpack.i.l.bf16 %v7297_v35 }
 0x455   : > { %v1828_v5 = vsel %vm1816_vm0, %v9206_v50, %v7289_v58  ;;  %v1827_v40 = vsel %vm1816_vm0, %v9172_v53, %v7288_v55  ;;  %7341 = vrot.lane.b32.xlu0 %v7340_v63, %s8331_s30 }
 0x456   : > { %v7302_v20 = vpop.permute.xlu0 %7301  ;;  %v1844_v16 = vsel %vm1833_vm1, %v1827_v40, %v7298_v48  ;;  %v1845_v6 = vsel %vm1833_vm1, %v1828_v5, %v7299_v25 }
 0x457   : > { %v7312_v31 = vpop.permute.xlu1 %7311  ;;  %v7304_v26 = vunpack.i.h.bf16 %v7302_v20  ;;  %v7303_v39 = vunpack.i.l.bf16 %v7302_v20  ;;  %v7345_v41 = vpack.i.bf16 %v1845_v6, %v1844_v16 }
 0x458   : > { %v7314_v49 = vunpack.i.h.bf16 %v7312_v31  ;;  %v7313_v7 = vunpack.i.l.bf16 %v7312_v31 }
 0x459   : > { %v1830_v35 = vsel %vm1816_vm0, %v9230_v17, %v7304_v26  ;;  %v1829_v50 = vsel %vm1816_vm0, %v9213_v3, %v7303_v39  ;;  %7346 = vrot.lane.b32.xlu1 %v7345_v41, %s8331_s30  ;;  %v2046_v39 = vpack.c.bf16 %v9256_v23, %v9253_v0  ;;  %v2049_v0 = vpack.c.bf16 %v1841_v33, %v1840_v18 }
 0x45a   : > { %v7307_v53 = vpop.permute.xlu0 %7306  ;;  %v1846_v58 = vsel %vm1833_vm1, %v1829_v50, %v7313_v7  ;;  %v1847_v48 = vsel %vm1833_vm1, %v1830_v35, %v7314_v49  ;;  %v2051_v23 = vpack.c.bf16 %v1845_v6, %v1844_v16 }
 0x45b   : > { %v7317_v25 = vpop.permute.xlu1 %7316  ;;  %v7309_v55 = vunpack.i.h.bf16 %v7307_v53  ;;  %v7308_v5 = vunpack.i.l.bf16 %v7307_v53  ;;  %v7350_v40 = vpack.i.bf16 %v1847_v48, %v1846_v58 }
 0x45c   : > { %v7319_v20 = vunpack.i.h.bf16 %v7317_v25  ;;  %v7318_v47 = vunpack.i.l.bf16 %v7317_v25 }
 0x45d   : > { %v1832_v31 = vsel %vm1816_vm0, %v9238_v51, %v7309_v55  ;;  %v1831_v17 = vsel %vm1816_vm0, %v9242_v61, %v7308_v5  ;;  %7351 = vrot.lane.b32.xlu0 %v7350_v40, %s8331_s30  ;;  %v2047_v51 = vpack.c.bf16 %v9272_v44, %v9269_v62  ;;  %v2050_v61 = vpack.c.bf16 %v1843_v24, %v1842_v42  ;;  %v7568_v44 = vld [vmem:[#allocation14 + $0x40] sm:$0xff]  }
 0x45e   : > { %v1848_v3 = vsel %vm1833_vm1, %v1831_v17, %v7318_v47  ;;  %v1849_v7 = vsel %vm1833_vm1, %v1832_v31, %v7319_v20  ;;  %v2048_v47 = vpack.c.bf16 %v9288_v30, %v9285_v12  ;;  %6616 = vmatprep.mubr.bf16.mxu0 %v7568_v44 }
 0x45f   : > { %v7355_v26 = vpack.i.bf16 %v1849_v7, %v1848_v3  ;;  %v2053_v62 = vpack.c.bf16 %v1849_v7, %v1848_v3 }
 0x461   : > { %7356 = vrot.lane.b32.xlu1 %v7355_v26, %s8331_s30  ;;  %2110 = vrot.lane.b32.xlu0 %v2046_v39, %s8332_s22 }
 0x465   : > { %7361 = vrot.lane.b32.xlu1 %v9260_v19, %s8332_s22  ;;  %2112 = vrot.lane.b32.xlu0 %v2047_v51, %s8332_s22  ;;  %v2052_v19 = vpack.c.bf16 %v1847_v48, %v1846_v58 }
 0x469   : > { %7366 = vrot.lane.b32.xlu1 %v9276_v8, %s8332_s22  ;;  %2114 = vrot.lane.b32.xlu0 %v2048_v47, %s8332_s22 }
 0x46d   : > { %7371 = vrot.lane.b32.xlu1 %v9292_v22, %s8332_s22  ;;  %2116 = vrot.lane.b32.xlu0 %v2049_v0, %s8332_s22 }
 0x471   : > { %7376 = vrot.lane.b32.xlu1 %v7335_v56, %s8332_s22  ;;  %2118 = vrot.lane.b32.xlu0 %v2050_v61, %s8332_s22  ;;  %v1850_v56 = vlaneseq }
 0x473   : > { %v1851_v8 = vand.u32 127, %v1850_v56 }
 0x475   : > { %7381 = vrot.lane.b32.xlu1 %v7340_v63, %s8332_s22  ;;  %2120 = vrot.lane.b32.xlu0 %v2051_v23, %s8332_s22  ;;  %v9356_v12 = vadd.s32 4294967292, %v1851_v8 }
 0x477   : > { %vm1855_vm2 = vcmp.eq.s32.totalorder %v9356_v12, 0  ;;  %vm1938_vm3 = vcmp.eq.s32.totalorder %v9356_v12, 7  ;;  %v4596_v12 = vld [vmem:[#allocation16 + $0x118] sm:$0xff] }
 0x479   : > { %7386 = vrot.lane.b32.xlu1 %v7345_v41, %s8332_s22  ;;  %2122 = vrot.lane.b32.xlu0 %v2052_v19, %s8332_s22 }
 0x47d   : > { %7391 = vrot.lane.b32.xlu1 %v7350_v40, %s8332_s22  ;;  %2124 = vrot.lane.b32.xlu0 %v2053_v62, %s8332_s22 }
 0x481   : > { %7396 = vrot.lane.b32.xlu1 %v7355_v26, %s8332_s22 }
 0x4b6   : > { %v7322_v30 = vpop.permute.xlu0 %7321 }
 0x4b7   : > { %v7324_v22 = vunpack.i.h.bf16 %v7322_v30  ;;  %v7323_v18 = vunpack.i.l.bf16 %v7322_v30 }
 0x4b9   : > { %v1923_v33 = vsel %vm1855_vm2, 0.0, %v7324_v22  ;;  %v1922_v42 = vsel %vm1855_vm2, 0.0, %v7323_v18 }
 0x4ba   : > { %v2021_v24 = vpack.c.bf16 %v1923_v33, %v1922_v42  ;;  %v7327_v63 = vpop.permute.xlu1 %7326 }
 0x4bb   : > { %v7329_v16 = vunpack.i.h.bf16 %v7327_v63  ;;  %v7328_v6 = vunpack.i.l.bf16 %v7327_v63 }
 0x4bc   : > { %2287 = vrot.lane.b32.xlu0 %v2021_v24, %s8332_s22 }
 0x4bd   : > { %v1925_v41 = vsel %vm1855_vm2, 0.0, %v7329_v16  ;;  %v1924_v49 = vsel %vm1855_vm2, 0.0, %v7328_v6 }
 0x4be   : > { %v2022_v35 = vpack.c.bf16 %v1925_v41, %v1924_v49 }
 0x4bf   : > { %v7332_v50 = vpop.permute.xlu0 %7331 }
 0x4c0   : > { %v7334_v53 = vunpack.i.h.bf16 %v7332_v50  ;;  %v7333_v58 = vunpack.i.l.bf16 %v7332_v50  ;;  %2289 = vrot.lane.b32.xlu1 %v2022_v35, %s8332_s22 }
 0x4c2   : > { %v1927_v48 = vsel %vm1855_vm2, 0.0, %v7334_v53  ;;  %v1926_v25 = vsel %vm1855_vm2, 0.0, %v7333_v58 }
 0x4c3   : > { %v2023_v55 = vpack.c.bf16 %v1927_v48, %v1926_v25  ;;  %v7337_v5 = vpop.permute.xlu1 %7336 }
 0x4c4   : > { %v7339_v40 = vunpack.i.h.bf16 %v7337_v5  ;;  %v7338_v20 = vunpack.i.l.bf16 %v7337_v5 }
 0x4c5   : > { %2291 = vrot.lane.b32.xlu0 %v2023_v55, %s8332_s22 }
 0x4c6   : > { %v1929_v31 = vsel %vm1855_vm2, 0.0, %v7339_v40  ;;  %v1928_v17 = vsel %vm1855_vm2, 0.0, %v7338_v20 }
 0x4c7   : > { %v2024_v3 = vpack.c.bf16 %v1929_v31, %v1928_v17  ;;  %v7342_v7 = vpop.permute.xlu0 %7341 }
 0x4c8   : > { %v7344_v26 = vunpack.i.h.bf16 %v7342_v7  ;;  %v7343_v39 = vunpack.i.l.bf16 %v7342_v7 }
 0x4c9   : > { %2293 = vrot.lane.b32.xlu1 %v2024_v3, %s8332_s22 }
 0x4ca   : > { %v1931_v51 = vsel %vm1855_vm2, 0.0, %v7344_v26  ;;  %v1930_v47 = vsel %vm1855_vm2, 0.0, %v7343_v39 }
 0x4cb   : > { %v2025_v0 = vpack.c.bf16 %v1931_v51, %v1930_v47  ;;  %v7347_v61 = vpop.permute.xlu1 %7346 }
 0x4cc   : > { %v7349_v23 = vunpack.i.h.bf16 %v7347_v61  ;;  %v7348_v19 = vunpack.i.l.bf16 %v7347_v61 }
 0x4cd   : > { %2295 = vrot.lane.b32.xlu0 %v2025_v0, %s8332_s22 }
 0x4ce   : > { %v1933_v62 = vsel %vm1855_vm2, 0.0, %v7349_v23  ;;  %v1932_v56 = vsel %vm1855_vm2, 0.0, %v7348_v19 }
 0x4cf   : > { %v2026_v44 = vpack.c.bf16 %v1933_v62, %v1932_v56  ;;  %v7352_v8 = vpop.permute.xlu0 %7351 }
 0x4d0   : > { %v7354_v30 = vunpack.i.h.bf16 %v7352_v8  ;;  %v7353_v22 = vunpack.i.l.bf16 %v7352_v8 }
 0x4d1   : > { %2297 = vrot.lane.b32.xlu1 %v2026_v44, %s8332_s22 }
 0x4d2   : > { %v1935_v18 = vsel %vm1855_vm2, 0.0, %v7354_v30  ;;  %v1934_v33 = vsel %vm1855_vm2, 0.0, %v7353_v22 }
 0x4d3   : > { %v2027_v42 = vpack.c.bf16 %v1935_v18, %v1934_v33  ;;  %v7357_v24 = vpop.permute.xlu1 %7356  ;;  %v2111_v63 = vpop.permute.xlu0 %2110 }
 0x4d4   : > { %v7359_v16 = vunpack.i.h.bf16 %v7357_v24  ;;  %v7358_v6 = vunpack.i.l.bf16 %v7357_v24  ;;  %6600 = vmatprep.subr.bf16.mxu0 %v2111_v63 }
 0x4d5   : > { %6601 = vmatpush3.bf16.msra.mxu0 %v2111_v63  ;;  %2299 = vrot.lane.b32.xlu0 %v2027_v42, %s8332_s22 }
 0x4d6   : > { %v1937_v41 = vsel %vm1855_vm2, 0.0, %v7359_v16  ;;  %v1936_v49 = vsel %vm1855_vm2, 0.0, %v7358_v6 }
 0x4d7   : > { %v2028_v35 = vpack.c.bf16 %v1937_v41, %v1936_v49  ;;  %v7362_v50 = vpop.permute.xlu1 %7361  ;;  %v2113_v53 = vpop.permute.xlu0 %2112 }
 0x4d8   : > { %v7364_v58 = vunpack.i.h.bf16 %v7362_v50  ;;  %v7363_v48 = vunpack.i.l.bf16 %v7362_v50  ;;  %6602 = vmatprep.subr.bf16.mxu0 %v2113_v53 }
 0x4d9   : > { %2301 = vrot.lane.b32.xlu1 %v2028_v35, %s8332_s22  ;;  %6603 = vmatpush3.bf16.msra.mxu0 %v2113_v53 }
 0x4da   : > { %v1990_v25 = vsel %vm1938_vm3, 0.0, %v7364_v58  ;;  %v1989_v55 = vsel %vm1938_vm3, 0.0, %v7363_v48 }
 0x4db   : > { %v2425_v5 = vpack.c.bf16 %v1990_v25, %v1989_v55  ;;  %v7367_v40 = vpop.permute.xlu1 %7366  ;;  %v2115_v20 = vpop.permute.xlu0 %2114 }
 0x4dc   : > { %v7369_v31 = vunpack.i.h.bf16 %v7367_v40  ;;  %v7368_v17 = vunpack.i.l.bf16 %v7367_v40  ;;  %6604 = vmatprep.subr.bf16.mxu0 %v2115_v20 }
 0x4dd   : > { %6605 = vmatpush3.bf16.msra.mxu0 %v2115_v20  ;;  %2489 = vrot.lane.b32.xlu0 %v2425_v5, %s8332_s22 }
 0x4de   : > { %v1992_v3 = vsel %vm1938_vm3, 0.0, %v7369_v31  ;;  %v1991_v7 = vsel %vm1938_vm3, 0.0, %v7368_v17  ;;  %v7569_v31 = vld [vmem:[#allocation14 + $0x48] sm:$0xff]   ;;  %v7570_v17 = vld [vmem:[#allocation14 + $0x50] sm:$0xff]  }
 0x4df   : > { %v2426_v26 = vpack.c.bf16 %v1992_v3, %v1991_v7  ;;  %v7372_v39 = vpop.permute.xlu1 %7371  ;;  %v2117_v51 = vpop.permute.xlu0 %2116 }
 0x4e0   : > { %v7374_v47 = vunpack.i.h.bf16 %v7372_v39  ;;  %v7373_v0 = vunpack.i.l.bf16 %v7372_v39  ;;  %6606 = vmatprep.subr.bf16.mxu0 %v2117_v51 }
 0x4e1   : > { %2491 = vrot.lane.b32.xlu1 %v2426_v26, %s8332_s22  ;;  %6607 = vmatpush3.bf16.msra.mxu0 %v2117_v51 }
 0x4e2   : > { %v1994_v61 = vsel %vm1938_vm3, 0.0, %v7374_v47  ;;  %v1993_v23 = vsel %vm1938_vm3, 0.0, %v7373_v0 }
 0x4e3   : > { %v2427_v19 = vpack.c.bf16 %v1994_v61, %v1993_v23  ;;  %v7377_v62 = vpop.permute.xlu1 %7376  ;;  %v2119_v56 = vpop.permute.xlu0 %2118  ;;  %v2626_v23 = vld [vmem:[#allocation16] sm:$0xff] }
 0x4e4   : > { %v7379_v44 = vunpack.i.h.bf16 %v7377_v62  ;;  %v7378_v8 = vunpack.i.l.bf16 %v7377_v62  ;;  %6608 = vmatprep.subr.bf16.mxu0 %v2119_v56  ;;  %v7571_v62 = vld [vmem:[#allocation14 + $0x58] sm:$0xff]  }
 0x4e5   : > { %6609 = vmatpush3.bf16.msra.mxu0 %v2119_v56  ;;  %2493 = vrot.lane.b32.xlu0 %v2427_v19, %s8332_s22  ;;  %v2627_v56 = vld [vmem:[#allocation16 + $0x8] sm:$0xff] }
 0x4e6   : > { %v1996_v30 = vsel %vm1938_vm3, 0.0, %v7379_v44  ;;  %v1995_v22 = vsel %vm1938_vm3, 0.0, %v7378_v8  ;;  %v2738_v44 = vld [vmem:[#allocation17] sm:$0xff] }
 0x4e7   : > { %v2428_v18 = vpack.c.bf16 %v1996_v30, %v1995_v22  ;;  %v7382_v33 = vpop.permute.xlu1 %7381  ;;  %v2121_v42 = vpop.permute.xlu0 %2120  ;;  %v7572_v8 = vld [vmem:[#allocation14 + $0x60] sm:$0xff]   ;;  %v2739_v30 = vld [vmem:[#allocation17 + $0x8] sm:$0xff]  ;;  %v2628_v22 = vld [vmem:[#allocation16 + $0x10] sm:$0xff] }
 0x4e8   : > { %v7384_v24 = vunpack.i.h.bf16 %v7382_v33  ;;  %v7383_v63 = vunpack.i.l.bf16 %v7382_v33  ;;  %6610 = vmatprep.subr.bf16.mxu0 %v2121_v42  ;;  %v2629_v33 = vld [vmem:[#allocation16 + $0x18] sm:$0xff] }
 0x4e9   : > { %2495 = vrot.lane.b32.xlu1 %v2428_v18, %s8332_s22  ;;  %6611 = vmatpush3.bf16.msra.mxu0 %v2121_v42  ;;  %v7573_v18 = vld [vmem:[#allocation14 + $0x68] sm:$0xff]   ;;  %v2740_v42 = vld [vmem:[#allocation17 + $0x10] sm:$0xff] }
 0x4ea   : > { %v1998_v16 = vsel %vm1938_vm3, 0.0, %v7384_v24  ;;  %v1997_v6 = vsel %vm1938_vm3, 0.0, %v7383_v63  ;;  %v7574_v24 = vld [vmem:[#allocation14 + $0x70] sm:$0xff]   ;;  %v2741_v63 = vld [vmem:[#allocation17 + $0x18] sm:$0xff] }
 0x4eb   : > { %v2429_v41 = vpack.c.bf16 %v1998_v16, %v1997_v6  ;;  %v7387_v49 = vpop.permute.xlu1 %7386  ;;  %v2123_v35 = vpop.permute.xlu0 %2122  ;;  %v2630_v16 = vld [vmem:[#allocation16 + $0x20] sm:$0xff]  ;;  %v7575_v6 = vld [vmem:[#allocation14 + $0x78] sm:$0xff]  }
 0x4ec   : > { %v7389_v50 = vunpack.i.h.bf16 %v7387_v49  ;;  %v7388_v53 = vunpack.i.l.bf16 %v7387_v49  ;;  %6612 = vmatprep.subr.bf16.mxu0 %v2123_v35  ;;  %v2742_v49 = vld [vmem:[#allocation17 + $0x20] sm:$0xff] }
 0x4ed   : > { %2497 = vrot.lane.b32.xlu0 %v2429_v41, %s8332_s22  ;;  %6613 = vmatpush3.bf16.msra.mxu0 %v2123_v35  ;;  %v2631_v41 = vld [vmem:[#allocation16 + $0x28] sm:$0xff]  ;;  %v7576_v35 = vld [vmem:[#allocation14] sm:$0xff]  }
 0x4ee   : > { %v2000_v58 = vsel %vm1938_vm3, 0.0, %v7389_v50  ;;  %v1999_v48 = vsel %vm1938_vm3, 0.0, %v7388_v53  ;;  %v2743_v50 = vld [vmem:[#allocation17 + $0x28] sm:$0xff]  ;;  %v2632_v53 = vld [vmem:[#allocation16 + $0x30] sm:$0xff] }
 0x4ef   : > { %v2430_v25 = vpack.c.bf16 %v2000_v58, %v1999_v48  ;;  %v7392_v55 = vpop.permute.xlu1 %7391  ;;  %v2125_v5 = vpop.permute.xlu0 %2124  ;;  %v2633_v58 = vld [vmem:[#allocation16 + $0x38] sm:$0xff]  ;;  %v2744_v48 = vld [vmem:[#allocation17 + $0x30] sm:$0xff] }
 0x4f0   : > { %v7394_v40 = vunpack.i.h.bf16 %v7392_v55  ;;  %v7393_v20 = vunpack.i.l.bf16 %v7392_v55  ;;  %6614 = vmatprep.subr.bf16.mxu0 %v2125_v5  ;;  %v2634_v55 = vld [vmem:[#allocation16 + $0x40] sm:$0xff] }
 0x4f1   : > { %2499 = vrot.lane.b32.xlu1 %v2430_v25, %s8332_s22  ;;  %6615 = vmatpush3.bf16.msra.mxu0 %v2125_v5  ;;  %v2745_v25 = vld [vmem:[#allocation17 + $0x38] sm:$0xff]  ;;  %v2635_v5 = vld [vmem:[#allocation16 + $0x48] sm:$0xff] }
 0x4f2   : > { %v2002_v3 = vsel %vm1938_vm3, 0.0, %v7394_v40  ;;  %v2001_v7 = vsel %vm1938_vm3, 0.0, %v7393_v20  ;;  %v2746_v40 = vld [vmem:[#allocation17 + $0x40] sm:$0xff]  ;;  %v2747_v20 = vld [vmem:[#allocation17 + $0x48] sm:$0xff] }
 0x4f3   : > { %v2431_v26 = vpack.c.bf16 %v2002_v3, %v2001_v7  ;;  %v7397_v39 = vpop.permute.xlu1 %7396  ;;  %v2748_v3 = vld [vmem:[#allocation17 + $0x50] sm:$0xff]  ;;  %v2749_v7 = vld [vmem:[#allocation17 + $0x58] sm:$0xff] }
 0x4f4   : > { %v7399_v51 = vunpack.i.h.bf16 %v7397_v39  ;;  %v7398_v47 = vunpack.i.l.bf16 %v7397_v39  ;;  %6617 = vmatmul.mubr.bf16.vlgmr.msra.gmra.mrb[16].mxu0 %v7569_v31  ;;  %v2636_v31 = vld [vmem:[#allocation16 + $0x50] sm:$0xff]  ;;  %v2639_v39 = vld [vmem:[#allocation16 + $0x68] sm:$0xff] }
 0x4f5   : > { %2501 = vrot.lane.b32.xlu0 %v2431_v26, %s8332_s22  ;;  %6620 = vmatprep.mubr.bf16.mxu0 %v7570_v17  ;;  %v2637_v17 = vld [vmem:[#allocation16 + $0x58] sm:$0xff]  ;;  %v2638_v26 = vld [vmem:[#allocation16 + $0x60] sm:$0xff] }
 0x4f6   : > { %v2004_v0 = vsel %vm1938_vm3, 0.0, %v7399_v51  ;;  %v2003_v61 = vsel %vm1938_vm3, 0.0, %v7398_v47  ;;  %v2750_v51 = vld [vmem:[#allocation17 + $0x60] sm:$0xff]  ;;  %v2751_v47 = vld [vmem:[#allocation17 + $0x68] sm:$0xff] }
 0x4f7   : > { %v2432_v19 = vpack.c.bf16 %v2004_v0, %v2003_v61  ;;  %v2640_v0 = vld [vmem:[#allocation16 + $0x70] sm:$0xff] }
 0x4f9   : > { %2503 = vrot.lane.b32.xlu1 %v2432_v19, %s8332_s22  ;;  %2644 = vperm.xlu0 %7238, %v2626_v23   ;;  %v2641_v23 = vld [vmem:[#allocation16 + $0x78] sm:$0xff]  ;;  %v2752_v19 = vld [vmem:[#allocation17 + $0x70] sm:$0xff] }
 0x4fc   : > { %6621 = vmatmul.mubr.bf16.gmra.mrb[20].mxu0 %v7571_v62 }
 0x4fd   : > { %2649 = vperm.xlu1 %7239, %v2627_v56   ;;  %2756 = vperm.xlu0 %7238, %v2738_v44   ;;  %v2753_v56 = vld [vmem:[#allocation17 + $0x78] sm:$0xff] }
 0x4fe   : > { %6624 = vmatprep.mubr.bf16.mxu0 %v7572_v8 }
 0x501   : > { %2761 = vperm.xlu1 %7239, %v2739_v30   ;;  %2654 = vperm.xlu0 %7238, %v2628_v22  }
 0x504   : > { %6625 = vmatmul.mubr.bf16.gmra.mrb[24].mxu0 %v7573_v18 }
 0x505   : > { %2659 = vperm.xlu1 %7239, %v2629_v33   ;;  %2766 = vperm.xlu0 %7238, %v2740_v42   ;;  %v7577_v42 = vld [vmem:[#allocation14 + $0x8] sm:$0xff]  }
 0x506   : > { %6628 = vmatprep.mubr.bf16.mxu0 %v7574_v24  ;;  %v7578_v24 = vld [vmem:[#allocation14 + $0x10] sm:$0xff]  }
 0x509   : > { %2771 = vperm.xlu1 %7239, %v2741_v63   ;;  %2664 = vperm.xlu0 %7238, %v2630_v16  }
 0x50c   : > { %6629 = vmatmul.mubr.bf16.gmra.mrb[28].mxu0 %v7575_v6  ;;  %v7579_v6 = vld [vmem:[#allocation14 + $0x18] sm:$0xff]  }
 0x50d   : > { %2669 = vperm.xlu1 %7239, %v2631_v41   ;;  %2776 = vperm.xlu0 %7238, %v2742_v49   ;;  %v7580_v41 = vld [vmem:[#allocation14 + $0x20] sm:$0xff]  }
 0x50e   : > { %6648 = vmatprep.mubr.bf16.mxu0 %v7576_v35 }
 0x511   : > { %2781 = vperm.xlu1 %7239, %v2743_v50   ;;  %2674 = vperm.xlu0 %7238, %v2632_v53   ;;  %v7581_v50 = vld [vmem:[#allocation14 + $0x28] sm:$0xff]   ;;  %v7582_v53 = vld [vmem:[#allocation14 + $0x30] sm:$0xff]  }
 0x515   : > { %2679 = vperm.xlu1 %7239, %v2633_v58   ;;  %2786 = vperm.xlu0 %7238, %v2744_v48  }
 0x519   : > { %2791 = vperm.xlu1 %7239, %v2745_v25   ;;  %2684 = vperm.xlu0 %7238, %v2634_v55   ;;  %v7583_v25 = vld [vmem:[#allocation14 + $0x38] sm:$0xff]   ;;  %v7584_v55 = vld [vmem:[#allocation14 + $0x80] sm:$0xff]  }
 0x51d   : > { %2689 = vperm.xlu1 %7239, %v2635_v5   ;;  %2796 = vperm.xlu0 %7238, %v2746_v40  }
 0x521   : > { %2801 = vperm.xlu1 %7239, %v2747_v20   ;;  %2694 = vperm.xlu0 %7238, %v2636_v31   ;;  %v7585_v20 = vld [vmem:[#allocation14 + $0x88] sm:$0xff]   ;;  %v7586_v31 = vld [vmem:[#allocation14 + $0x90] sm:$0xff]  }
 0x525   : > { %2699 = vperm.xlu1 %7239, %v2637_v17   ;;  %2806 = vperm.xlu0 %7238, %v2748_v3   ;;  %v7587_v17 = vld [vmem:[#allocation14 + $0x98] sm:$0xff]   ;;  %v7588_v3 = vld [vmem:[#allocation14 + $0xa0] sm:$0xff]  }
 0x529   : > { %2811 = vperm.xlu1 %7239, %v2749_v7   ;;  %2704 = vperm.xlu0 %7238, %v2638_v26   ;;  %v7589_v7 = vld [vmem:[#allocation14 + $0xa8] sm:$0xff]   ;;  %v7590_v26 = vld [vmem:[#allocation14 + $0xb0] sm:$0xff]  }
 0x52d   : > { %2709 = vperm.xlu1 %7239, %v2639_v39   ;;  %2816 = vperm.xlu0 %7238, %v2750_v51   ;;  %v7591_v39 = vld [vmem:[#allocation14 + $0xb8] sm:$0xff]  }
 0x52e   : > { %v2288_v61 = vpop.permute.xlu0 %2287 }
 0x52f   : > { %6632 = vmatprep.subr.bf16.mxu0 %v2288_v61 }
 0x530   : > { %6633 = vmatpush3.bf16.msra.mxu0 %v2288_v61 }
 0x531   : > { %2821 = vperm.xlu1 %7239, %v2751_v47   ;;  %2714 = vperm.xlu0 %7238, %v2640_v0  }
 0x532   : > { %v2290_v62 = vpop.permute.xlu1 %2289 }
 0x533   : > { %6634 = vmatprep.subr.bf16.mxu0 %v2290_v62 }
 0x534   : > { %6635 = vmatpush3.bf16.msra.mxu0 %v2290_v62 }
 0x535   : > { %2719 = vperm.xlu1 %7239, %v2641_v23   ;;  %2826 = vperm.xlu0 %7238, %v2752_v19  }
 0x537   : > { %v2292_v44 = vpop.permute.xlu0 %2291 }
 0x538   : > { %6636 = vmatprep.subr.bf16.mxu0 %v2292_v44 }
 0x539   : > { %2831 = vperm.xlu1 %7239, %v2753_v56   ;;  %6637 = vmatpush3.bf16.msra.mxu0 %v2292_v44 }
 0x53b   : > { %v2294_v8 = vpop.permute.xlu1 %2293 }
 0x53c   : > { %6638 = vmatprep.subr.bf16.mxu0 %v2294_v8 }
 0x53d   : > { %6639 = vmatpush3.bf16.msra.mxu0 %v2294_v8 }
 0x53f   : > { %v2296_v30 = vpop.permute.xlu0 %2295 }
 0x540   : > { %6640 = vmatprep.subr.bf16.mxu0 %v2296_v30 }
 0x541   : > { %6641 = vmatpush3.bf16.msra.mxu0 %v2296_v30 }
 0x543   : > { %v2298_v22 = vpop.permute.xlu1 %2297 }
 0x544   : > { %6642 = vmatprep.subr.bf16.mxu0 %v2298_v22 }
 0x545   : > { %6643 = vmatpush3.bf16.msra.mxu0 %v2298_v22 }
 0x547   : > { %v2300_v18 = vpop.permute.xlu0 %2299 }
 0x548   : > { %6644 = vmatprep.subr.bf16.mxu0 %v2300_v18 }
 0x549   : > { %6645 = vmatpush3.bf16.msra.mxu0 %v2300_v18 }
 0x54b   : > { %v2302_v33 = vpop.permute.xlu1 %2301 }
 0x54c   : > { %6646 = vmatprep.subr.bf16.mxu0 %v2302_v33 }
 0x54d   : > { %6647 = vmatpush3.bf16.msra.mxu0 %v2302_v33 }
 0x54f   : > { %v2490_v63 = vpop.permute.xlu0 %2489 }
 0x550   : > { %6664 = vmatprep.subr.bf16.mxu0 %v2490_v63  ;;  %6649 = vmatmul.mubr.bf16.vlgmr.msra.gmra.mrb[16].mxu0 %v7577_v42 }
 0x551   : > { %6665 = vmatpush3.bf16.msra.mxu0 %v2490_v63  ;;  %6652 = vmatprep.mubr.bf16.mxu0 %v7578_v24 }
 0x553   : > { %v2492_v16 = vpop.permute.xlu1 %2491 }
 0x554   : > { %6666 = vmatprep.subr.bf16.mxu0 %v2492_v16 }
 0x555   : > { %6667 = vmatpush3.bf16.msra.mxu0 %v2492_v16 }
 0x557   : > { %v2494_v49 = vpop.permute.xlu0 %2493 }
 0x558   : > { %6668 = vmatprep.subr.bf16.mxu0 %v2494_v49  ;;  %6653 = vmatmul.mubr.bf16.gmra.mrb[20].mxu0 %v7579_v6 }
 0x559   : > { %6669 = vmatpush3.bf16.msra.mxu0 %v2494_v49  ;;  %6656 = vmatprep.mubr.bf16.mxu0 %v7580_v41 }
 0x55b   : > { %v2496_v35 = vpop.permute.xlu1 %2495 }
 0x55c   : > { %6670 = vmatprep.subr.bf16.mxu0 %v2496_v35 }
 0x55d   : > { %6671 = vmatpush3.bf16.msra.mxu0 %v2496_v35 }
 0x55f   : > { %v2498_v58 = vpop.permute.xlu0 %2497 }
 0x560   : > { %6672 = vmatprep.subr.bf16.mxu0 %v2498_v58  ;;  %6657 = vmatmul.mubr.bf16.gmra.mrb[24].mxu0 %v7581_v50 }
 0x561   : > { %6673 = vmatpush3.bf16.msra.mxu0 %v2498_v58  ;;  %6660 = vmatprep.mubr.bf16.mxu0 %v7582_v53 }
 0x563   : > { %v2500_v48 = vpop.permute.xlu1 %2499 }
 0x564   : > { %6674 = vmatprep.subr.bf16.mxu0 %v2500_v48 }
 0x565   : > { %6675 = vmatpush3.bf16.msra.mxu0 %v2500_v48 }
 0x567   : > { %v2502_v5 = vpop.permute.xlu0 %2501 }
 0x568   : > { %6676 = vmatprep.subr.bf16.mxu0 %v2502_v5  ;;  %6661 = vmatmul.mubr.bf16.gmra.mrb[28].mxu0 %v7583_v25 }
 0x569   : > { %6677 = vmatpush3.bf16.msra.mxu0 %v2502_v5  ;;  %6680 = vmatprep.mubr.bf16.mxu0 %v7584_v55 }
 0x56b   : > { %v2504_v40 = vpop.permute.xlu1 %2503 }
 0x56c   : > { %6678 = vmatprep.subr.bf16.mxu0 %v2504_v40 }
 0x56d   : > { %6679 = vmatpush3.bf16.msra.mxu0 %v2504_v40 }
 0x570   : > { %6681 = vmatmul.mubr.bf16.vlgmr.msra.gmra.mrb[16].mxu0 %v7585_v20 }
 0x571   : > { %6684 = vmatprep.mubr.bf16.mxu0 %v7586_v31 }
 0x578   : > { %6685 = vmatmul.mubr.bf16.gmra.mrb[20].mxu0 %v7587_v17  ;;  %v2645_v51 = vpop.permute.xlu0 %2644 }
 0x579   : > { %6688 = vmatprep.mubr.bf16.mxu0 %v7588_v3 }
 0x57c   : > { %v2650_v47 = vpop.permute.xlu1 %2649  ;;  %v2757_v0 = vpop.permute.xlu0 %2756 }
 0x580   : > { %6689 = vmatmul.mubr.bf16.gmra.mrb[24].mxu0 %v7589_v7  ;;  %v2762_v61 = vpop.permute.xlu1 %2761  ;;  %v2655_v23 = vpop.permute.xlu0 %2654 }
 0x581   : > { %6692 = vmatprep.mubr.bf16.mxu0 %v7590_v26 }
 0x584   : > { %v2660_v19 = vpop.permute.xlu1 %2659  ;;  %v2767_v62 = vpop.permute.xlu0 %2766 }
 0x588   : > { %6693 = vmatmul.mubr.bf16.gmra.mrb[28].mxu0 %v7591_v39  ;;  %v2772_v56 = vpop.permute.xlu1 %2771  ;;  %v2665_v44 = vpop.permute.xlu0 %2664 }
 0x58c   : > { %v2670_v8 = vpop.permute.xlu1 %2669  ;;  %v2777_v30 = vpop.permute.xlu0 %2776 }
 0x590   : > { %v2782_v22 = vpop.permute.xlu1 %2781  ;;  %v2675_v18 = vpop.permute.xlu0 %2674 }
 0x594   : > { %v2680_v33 = vpop.permute.xlu1 %2679  ;;  %v2787_v42 = vpop.permute.xlu0 %2786 }
 0x598   : > { %v2792_v24 = vpop.permute.xlu1 %2791  ;;  %v9440_v63 = vpop.permute.xlu0 %2684 }
 0x59c   : > { %v9442_v16 = vpop.permute.xlu1 %2689  ;;  %v9444_v6 = vpop.permute.xlu0 %2796 }
 0x5a0   : > { %v9446_v41 = vpop.permute.xlu1 %2801  ;;  %v2695_v49 = vpop.permute.xlu0 %2694 }
 0x5a4   : > { %v9448_v35 = vpop.permute.xlu1 %2699  ;;  %v2807_v48 = vpop.permute.xlu0 %2806 }
 0x5a8   : > { %v9450_v31 = vpop.permute.xlu1 %2811 }
 0x643   : > { %v6682_v50 = vpop.f32.mrb[16].mxu0 }
 0x644   : > { %v2724_v53 = vmul.f32 %v6682_v50, %v2655_v23  ;;  %v2547_v58 = vpop.f32.mrb[17].mxu0  ;;  %v9458_v23 = vpop.permute.xlu0 %2704 }
 0x645   : > { %v2722_v25 = vmul.f32 %v2645_v51, %v2547_v58  ;;  %v6683_v55 = vpop.f32.mrb[18].mxu0  ;;  %v9481_v58 = vpop.permute.xlu1 %2709 }
 0x646   : > { %v2836_v5 = vadd.f32 %v2767_v62, %v2724_v53  ;;  %v2725_v40 = vmul.f32 %v6683_v55, %v2660_v19  ;;  %v2550_v20 = vpop.f32.mrb[19].mxu0 }
 0x647   : > { %v2834_v17 = vadd.f32 %v2757_v0, %v2722_v25  ;;  %v2723_v3 = vmul.f32 %v2650_v47, %v2550_v20 }
 0x648   : > { %v9452_v7 = vmax.f32 %v2836_v5, 0.0  ;;  %v2837_v26 = vadd.f32 %v2772_v56, %v2725_v40 }
 0x649   : > { %v9454_v39 = vmax.f32 %v2834_v17, 0.0  ;;  %v2835_v38 = vadd.f32 %v2762_v61, %v2723_v3 }
 0x64a   : > { %v9456_v21 = vmax.f32 %v2837_v26, 0.0  ;;  %v9463_v51 = vsel %vm1938_vm3, 0.0, %v9452_v7 }
 0x64b   : > { %v9468_v0 = vsel %vm1938_vm3, 0.0, %v9454_v39  ;;  %v9470_v47 = vmax.f32 %v2835_v38, 0.0  ;;  %v6686_v19 = vpop.f32.mrb[20].mxu0 }
 0x64c   : > { %v9475_v61 = vsel %vm1938_vm3, 0.0, %v9456_v21  ;;  %v2728_v62 = vmul.f32 %v6686_v19, %v2675_v18  ;;  %v2563_v56 = vpop.f32.mrb[21].mxu0  ;;  %v7405_v50 = vpack.i.bf16 %v9456_v21, %v9452_v7  ;;  %v2817_v18 = vpop.permute.xlu0 %2816 }
 0x64d   : > { %v9486_v38 = vsel %vm1938_vm3, 0.0, %v9470_v47  ;;  %v2726_v25 = vmul.f32 %v2665_v44, %v2563_v56  ;;  %v6687_v55 = vpop.f32.mrb[22].mxu0  ;;  %v7400_v5 = vpack.i.bf16 %v9470_v47, %v9454_v39 }
 0x64e   : > { %v2840_v40 = vadd.f32 %v2787_v42, %v2728_v62  ;;  %v2729_v20 = vmul.f32 %v6687_v55, %v2680_v33  ;;  %v2566_v17 = vpop.f32.mrb[23].mxu0  ;;  %7406 = vrot.lane.b32.xlu1 %v7405_v50, %s8333_s25  ;;  %v2822_v50 = vpop.permute.xlu1 %2821 }
 0x64f   : > { %v2838_v44 = vadd.f32 %v2777_v30, %v2726_v25  ;;  %v2727_v19 = vmul.f32 %v2670_v8, %v2566_v17  ;;  %7401 = vrot.lane.b32.xlu0 %v7400_v5, %s8333_s25 }
 0x650   : > { %v9498_v56 = vmax.f32 %v2840_v40, 0.0  ;;  %v2841_v53 = vadd.f32 %v2792_v24, %v2729_v20 }
 0x651   : > { %v9500_v42 = vmax.f32 %v2838_v44, 0.0  ;;  %v2839_v33 = vadd.f32 %v2782_v22, %v2727_v19 }
 0x652   : > { %v9502_v62 = vmax.f32 %v2841_v53, 0.0  ;;  %v9507_v55 = vsel %vm1938_vm3, 0.0, %v9498_v56 }
 0x653   : > { %v9512_v8 = vsel %vm1938_vm3, 0.0, %v9500_v42  ;;  %v9514_v30 = vmax.f32 %v2839_v33, 0.0  ;;  %v6690_v24 = vpop.f32.mrb[24].mxu0 }
 0x654   : > { %v9519_v22 = vsel %vm1938_vm3, 0.0, %v9502_v62  ;;  %v2732_v53 = vmul.f32 %v6690_v24, %v2695_v49  ;;  %v2579_v25 = vpop.f32.mrb[25].mxu0  ;;  %v7415_v5 = vpack.i.bf16 %v9502_v62, %v9498_v56 }
 0x655   : > { %v9528_v20 = vsel %vm1938_vm3, 0.0, %v9514_v30  ;;  %v2730_v17 = vmul.f32 %v9440_v63, %v2579_v25  ;;  %v6691_v44 = vpop.f32.mrb[26].mxu0  ;;  %v7410_v19 = vpack.i.bf16 %v9514_v30, %v9500_v42  ;;  %v3006_v49 = vpack.c.bf16 %v9514_v30, %v9500_v42  ;;  %v2715_v63 = vpop.permute.xlu0 %2714 }
 0x656   : > { %v2844_v33 = vadd.f32 %v2807_v48, %v2732_v53  ;;  %v2733_v24 = vmul.f32 %v6691_v44, %v9448_v35  ;;  %v2582_v26 = vpop.f32.mrb[27].mxu0  ;;  %7416 = vrot.lane.b32.xlu1 %v7415_v5, %s8333_s25  ;;  %v2720_v35 = vpop.permute.xlu1 %2719 }
 0x657   : > { %v2842_v25 = vadd.f32 %v9444_v6, %v2730_v17  ;;  %v2731_v60 = vmul.f32 %v9442_v16, %v2582_v26  ;;  %7411 = vrot.lane.b32.xlu0 %v7410_v19, %s8333_s25 }
 0x658   : > { %v2860_v42 = vmax.f32 %v2844_v33, 0.0  ;;  %v2845_v48 = vadd.f32 %v9450_v31, %v2733_v24 }
 0x659   : > { %v2858_v30 = vmax.f32 %v2842_v25, 0.0  ;;  %v2843_v53 = vadd.f32 %v9446_v41, %v2731_v60  ;;  %v2827_v60 = vpop.permute.xlu0 %2826 }
 0x65a   : > { %v2861_v5 = vmax.f32 %v2845_v48, 0.0  ;;  %v9548_v44 = vsel %vm1938_vm3, 0.0, %v2860_v42 }
 0x65b   : > { %v9552_v40 = vsel %vm1938_vm3, 0.0, %v2858_v30  ;;  %v2859_v6 = vmax.f32 %v2843_v53, 0.0  ;;  %v6694_v16 = vpop.f32.mrb[28].mxu0 }
 0x65c   : > { %v9556_v26 = vsel %vm1938_vm3, 0.0, %v2861_v5  ;;  %v2736_v31 = vmul.f32 %v6694_v16, %v2715_v63  ;;  %v2595_v17 = vpop.f32.mrb[29].mxu0  ;;  %v7425_v19 = vpack.i.bf16 %v2861_v5, %v2860_v42  ;;  %v3009_v33 = vpack.c.bf16 %v2861_v5, %v2860_v42  ;;  %v2832_v5 = vpop.permute.xlu1 %2831 }
 0x65d   : > { %v9560_v41 = vsel %vm1938_vm3, 0.0, %v2859_v6  ;;  %v2734_v24 = vmul.f32 %v9458_v23, %v2595_v17  ;;  %v6695_v25 = vpop.f32.mrb[30].mxu0  ;;  %v7420_v48 = vpack.i.bf16 %v2859_v6, %v2858_v30  ;;  %v3008_v3 = vpack.c.bf16 %v2859_v6, %v2858_v30 }
 0x65e   : > { %v2848_v53 = vadd.f32 %v2827_v60, %v2736_v31  ;;  %v2737_v27 = vmul.f32 %v6695_v25, %v2720_v35  ;;  %v2598_v14 = vpop.f32.mrb[31].mxu0  ;;  %7426 = vrot.lane.b32.xlu1 %v7425_v19, %s8333_s25  ;;  %v3388_v63 = vpack.c.bf16 %v9556_v26, %v9548_v44  ;;  %v3387_v42 = vpack.c.bf16 %v9560_v41, %v9552_v40  ;;  %v3698_v40 = vld [vmem:[#allocation17 + $0x80] sm:$0xff]  ;;  %v3588_v44 = vld [vmem:[#allocation16 + $0x98] sm:$0xff]  ;;  %v3587_v26 = vld [vmem:[#allocation16 + $0x90] sm:$0xff] }
 0x65f   : > { %v2846_v16 = vadd.f32 %v2817_v18, %v2734_v24  ;;  %v2735_v37 = vmul.f32 %v9481_v58, %v2598_v14  ;;  %7421 = vrot.lane.b32.xlu0 %v7420_v48, %s8333_s25  ;;  %v10125_v48 = vpack.c.bf16 %v9456_v21, %v9452_v7  ;;  %v7592_v21 = vld [vmem:[#allocation14 + $0x100] sm:$0xff]   ;;  %v7593_v41 = vld [vmem:[#allocation14 + $0x108] sm:$0xff]  }
 0x660   : > { %v2864_v23 = vmax.f32 %v2848_v53, 0.0  ;;  %v2849_v17 = vadd.f32 %v2832_v5, %v2737_v27  ;;  %v10126_v53 = vpack.c.bf16 %v9470_v47, %v9454_v39  ;;  %v10127_v5 = vpack.c.bf16 %v9502_v62, %v9498_v56  ;;  %6712 = vmatprep.mubr.bf16.mxu1 %v7592_v21 }
 0x661   : > { %v2862_v30 = vmax.f32 %v2846_v16, 0.0  ;;  %v2847_v6 = vadd.f32 %v2822_v50, %v2735_v37 }
 0x662   : > { %v2865_v35 = vmax.f32 %v2849_v17, 0.0  ;;  %v9572_v31 = vsel %vm1938_vm3, 0.0, %v2864_v23 }
 0x663   : > { %v2863_v19 = vmax.f32 %v2847_v6, 0.0  ;;  %v9576_v60 = vsel %vm1938_vm3, 0.0, %v2862_v30 }
 0x664   : > { %v9580_v18 = vsel %vm1938_vm3, 0.0, %v2865_v35  ;;  %v7435_v14 = vpack.i.bf16 %v2865_v35, %v2864_v23  ;;  %v3011_v58 = vpack.c.bf16 %v2865_v35, %v2864_v23 }
 0x665   : > { %v9584_v27 = vsel %vm1938_vm3, 0.0, %v2863_v19  ;;  %v7430_v37 = vpack.i.bf16 %v2863_v19, %v2862_v30  ;;  %v3010_v50 = vpack.c.bf16 %v2863_v19, %v2862_v30  ;;  %v3390_v24 = vpack.c.bf16 %v9580_v18, %v9572_v31  ;;  %v3700_v31 = vld [vmem:[#allocation17 + $0x90] sm:$0xff]  ;;  %v3589_v18 = vld [vmem:[#allocation16 + $0xa0] sm:$0xff] }
 0x666   : > { %7436 = vrot.lane.b32.xlu1 %v7435_v14, %s8333_s25  ;;  %v3389_v25 = vpack.c.bf16 %v9584_v27, %v9576_v60  ;;  %v3590_v60 = vld [vmem:[#allocation16 + $0xa8] sm:$0xff]  ;;  %v7595_v27 = vld [vmem:[#allocation14 + $0x118] sm:$0xff]  }
 0x667   : > { %7431 = vrot.lane.b32.xlu0 %v7430_v37, %s8333_s25 }
 0x66a   : > { %3070 = vrot.lane.b32.xlu1 %v10125_v48, %s8332_s22 }
 0x66b   : > { %3068 = vrot.lane.b32.xlu0 %v10126_v53, %s8332_s22 }
 0x66e   : > { %3074 = vrot.lane.b32.xlu1 %v10127_v5, %s8332_s22 }
 0x66f   : > { %3072 = vrot.lane.b32.xlu0 %v3006_v49, %s8332_s22 }
 0x672   : > { %3078 = vrot.lane.b32.xlu1 %v3009_v33, %s8332_s22 }
 0x673   : > { %3076 = vrot.lane.b32.xlu0 %v3008_v3, %s8332_s22 }
 0x676   : > { %3082 = vrot.lane.b32.xlu1 %v3011_v58, %s8332_s22 }
 0x677   : > { %3080 = vrot.lane.b32.xlu0 %v3010_v50, %s8332_s22 }
 0x6c0   : > { %v7407_v7 = vpop.permute.xlu1 %7406 }
 0x6c1   : > { %v7409_v39 = vunpack.i.h.bf16 %v7407_v7  ;;  %v7408_v47 = vunpack.i.l.bf16 %v7407_v7  ;;  %v7402_v16 = vpop.permute.xlu0 %7401 }
 0x6c2   : > { %v7404_v23 = vunpack.i.h.bf16 %v7402_v16  ;;  %v7403_v17 = vunpack.i.l.bf16 %v7402_v16 }
 0x6c3   : > { %v2933_v56 = vsel %vm1855_vm2, 0.0, %v7409_v39  ;;  %v2932_v62 = vsel %vm1855_vm2, 0.0, %v7408_v47 }
 0x6c4   : > { %v2980_v49 = vpack.c.bf16 %v2933_v56, %v2932_v62  ;;  %v2931_v3 = vsel %vm1855_vm2, 0.0, %v7404_v23  ;;  %v2930_v33 = vsel %vm1855_vm2, 0.0, %v7403_v17 }
 0x6c5   : > { %v2979_v30 = vpack.c.bf16 %v2931_v3, %v2930_v33 }
 0x6c6   : > { %3247 = vrot.lane.b32.xlu1 %v2980_v49, %s8334_s18 }
 0x6c7   : > { %3245 = vrot.lane.b32.xlu0 %v2979_v30, %s8334_s18 }
 0x6c8   : > { %v7417_v6 = vpop.permute.xlu1 %7416 }
 0x6c9   : > { %v7419_v35 = vunpack.i.h.bf16 %v7417_v6  ;;  %v7418_v19 = vunpack.i.l.bf16 %v7417_v6  ;;  %v7412_v14 = vpop.permute.xlu0 %7411 }
 0x6ca   : > { %v7414_v58 = vunpack.i.h.bf16 %v7412_v14  ;;  %v7413_v37 = vunpack.i.l.bf16 %v7412_v14 }
 0x6cb   : > { %v2937_v50 = vsel %vm1855_vm2, 0.0, %v7419_v35  ;;  %v2936_v48 = vsel %vm1855_vm2, 0.0, %v7418_v19 }
 0x6cc   : > { %v2982_v53 = vpack.c.bf16 %v2937_v50, %v2936_v48  ;;  %v2935_v5 = vsel %vm1855_vm2, 0.0, %v7414_v58  ;;  %v2934_v21 = vsel %vm1855_vm2, 0.0, %v7413_v37 }
 0x6cd   : > { %v2981_v7 = vpack.c.bf16 %v2935_v5, %v2934_v21 }
 0x6ce   : > { %3251 = vrot.lane.b32.xlu1 %v2982_v53, %s8334_s18 }
 0x6cf   : > { %3249 = vrot.lane.b32.xlu0 %v2981_v7, %s8334_s18 }
 0x6d0   : > { %v7427_v39 = vpop.permute.xlu1 %7426 }
 0x6d1   : > { %v7429_v47 = vunpack.i.h.bf16 %v7427_v39  ;;  %v7428_v16 = vunpack.i.l.bf16 %v7427_v39  ;;  %v7422_v23 = vpop.permute.xlu0 %7421 }
 0x6d2   : > { %v7424_v17 = vunpack.i.h.bf16 %v7422_v23  ;;  %v7423_v56 = vunpack.i.l.bf16 %v7422_v23  ;;  %v10128_v23 = vpack.c.bf16 %v9475_v61, %v9463_v51  ;;  %v10131_v51 = vpack.c.bf16 %v9528_v20, %v9512_v8 }
 0x6d3   : > { %v2941_v62 = vsel %vm1855_vm2, 0.0, %v7429_v47  ;;  %v2940_v49 = vsel %vm1855_vm2, 0.0, %v7428_v16 }
 0x6d4   : > { %v2984_v3 = vpack.c.bf16 %v2941_v62, %v2940_v49  ;;  %v2939_v33 = vsel %vm1855_vm2, 0.0, %v7424_v17  ;;  %v2938_v30 = vsel %vm1855_vm2, 0.0, %v7423_v56  ;;  %v10129_v56 = vpack.c.bf16 %v9486_v38, %v9468_v0  ;;  %v3586_v38 = vld [vmem:[#allocation16 + $0x88] sm:$0xff] }
 0x6d5   : > { %v2983_v6 = vpack.c.bf16 %v2939_v33, %v2938_v30  ;;  %v10130_v62 = vpack.c.bf16 %v9519_v22, %v9507_v55  ;;  %v3585_v55 = vld [vmem:[#allocation16 + $0x80] sm:$0xff]  ;;  %v3699_v22 = vld [vmem:[#allocation17 + $0x88] sm:$0xff]  ;;  %v3592_v33 = vld [vmem:[#allocation16 + $0xb8] sm:$0xff] }
 0x6d6   : > { %3255 = vrot.lane.b32.xlu1 %v2984_v3, %s8334_s18  ;;  %v3702_v3 = vld [vmem:[#allocation17 + $0xa0] sm:$0xff]  ;;  %v3591_v30 = vld [vmem:[#allocation16 + $0xb0] sm:$0xff] }
 0x6d7   : > { %3253 = vrot.lane.b32.xlu0 %v2983_v6, %s8334_s18  ;;  %v7597_v6 = vld [vmem:[#allocation14 + $0x128] sm:$0xff]  }
 0x6d8   : > { %v7437_v35 = vpop.permute.xlu1 %7436 }
 0x6d9   : > { %v7439_v19 = vunpack.i.h.bf16 %v7437_v35  ;;  %v7438_v14 = vunpack.i.l.bf16 %v7437_v35  ;;  %v7432_v58 = vpop.permute.xlu0 %7431  ;;  %v3705_v35 = vld [vmem:[#allocation17 + $0xb8] sm:$0xff] }
 0x6da   : > { %v7434_v37 = vunpack.i.h.bf16 %v7432_v58  ;;  %v7433_v50 = vunpack.i.l.bf16 %v7432_v58  ;;  %v3594_v58 = vld [vmem:[#allocation16 + $0xc8] sm:$0xff] }
 0x6db   : > { %v2945_v48 = vsel %vm1855_vm2, 0.0, %v7439_v19  ;;  %v2944_v53 = vsel %vm1855_vm2, 0.0, %v7438_v14  ;;  %v7598_v19 = vld [vmem:[#allocation14 + $0x130] sm:$0xff]  }
 0x6dc   : > { %v2986_v5 = vpack.c.bf16 %v2945_v48, %v2944_v53  ;;  %v2943_v21 = vsel %vm1855_vm2, 0.0, %v7434_v37  ;;  %v2942_v7 = vsel %vm1855_vm2, 0.0, %v7433_v50  ;;  %v3071_v16 = vpop.permute.xlu1 %3070  ;;  %v3704_v14 = vld [vmem:[#allocation17 + $0xb0] sm:$0xff]  ;;  %v3593_v37 = vld [vmem:[#allocation16 + $0xc0] sm:$0xff]  ;;  %v7599_v50 = vld [vmem:[#allocation14 + $0x138] sm:$0xff]  }
 0x6dd   : > { %v2985_v39 = vpack.c.bf16 %v2943_v21, %v2942_v7  ;;  %v3069_v47 = vpop.permute.xlu0 %3068  ;;  %v3707_v48 = vld [vmem:[#allocation17 + $0xc8] sm:$0xff]  ;;  %v7600_v53 = vld [vmem:[#allocation14 + $0xc0] sm:$0xff]   ;;  %v3596_v21 = vld [vmem:[#allocation16 + $0xd8] sm:$0xff] }
 0x6de   : > { %3259 = vrot.lane.b32.xlu1 %v2986_v5, %s8334_s18  ;;  %6696 = vmatprep.subr.bf16.mxu1 %v3069_v47  ;;  %v3706_v5 = vld [vmem:[#allocation17 + $0xc0] sm:$0xff]  ;;  %v3595_v7 = vld [vmem:[#allocation16 + $0xd0] sm:$0xff] }
 0x6df   : > { %6697 = vmatpush3.bf16.msra.mxu1 %v3069_v47  ;;  %3257 = vrot.lane.b32.xlu0 %v2985_v39, %s8334_s18  ;;  %v3709_v39 = vld [vmem:[#allocation17 + $0xd8] sm:$0xff]  ;;  %v3708_v47 = vld [vmem:[#allocation17 + $0xd0] sm:$0xff] }
 0x6e0   : > { %6698 = vmatprep.subr.bf16.mxu1 %v3071_v16  ;;  %v3075_v49 = vpop.permute.xlu1 %3074 }
 0x6e1   : > { %v3073_v17 = vpop.permute.xlu0 %3072 }
 0x6e2   : > { %3449 = vrot.lane.b32.xlu1 %v10128_v23, %s8334_s18  ;;  %v3597_v23 = vld [vmem:[#allocation16 + $0xe0] sm:$0xff] }
 0x6e3   : > { %6699 = vmatpush3.bf16.msra.mxu1 %v3071_v16  ;;  %3447 = vrot.lane.b32.xlu0 %v10129_v56, %s8334_s18  ;;  %v3598_v16 = vld [vmem:[#allocation16 + $0xe8] sm:$0xff]  ;;  %v3710_v56 = vld [vmem:[#allocation17 + $0xe0] sm:$0xff] }
 0x6e4   : > { %6700 = vmatprep.subr.bf16.mxu1 %v3073_v17  ;;  %v3079_v61 = vpop.permute.xlu1 %3078 }
 0x6e5   : > { %v3077_v0 = vpop.permute.xlu0 %3076 }
 0x6e6   : > { %3453 = vrot.lane.b32.xlu1 %v10130_v62, %s8334_s18  ;;  %v3600_v62 = vld [vmem:[#allocation16 + $0xf8] sm:$0xff] }
 0x6e7   : > { %6701 = vmatpush3.bf16.msra.mxu1 %v3073_v17  ;;  %3451 = vrot.lane.b32.xlu0 %v10131_v51, %s8334_s18  ;;  %v3711_v17 = vld [vmem:[#allocation17 + $0xe8] sm:$0xff]  ;;  %v3713_v51 = vld [vmem:[#allocation17 + $0xf8] sm:$0xff] }
 0x6e8   : > { %6702 = vmatprep.subr.bf16.mxu1 %v3075_v49  ;;  %v3083_v20 = vpop.permute.xlu1 %3082 }
 0x6e9   : > { %v3081_v8 = vpop.permute.xlu0 %3080 }
 0x6ea   : > { %3457 = vrot.lane.b32.xlu1 %v3388_v63, %s8334_s18  ;;  %v3701_v63 = vld [vmem:[#allocation17 + $0x98] sm:$0xff] }
 0x6eb   : > { %6703 = vmatpush3.bf16.msra.mxu1 %v3075_v49  ;;  %3455 = vrot.lane.b32.xlu0 %v3387_v42, %s8334_s18  ;;  %v7594_v42 = vld [vmem:[#allocation14 + $0x110] sm:$0xff]  }
 0x6ec   : > { %6704 = vmatprep.subr.bf16.mxu1 %v3077_v0  ;;  %v3599_v49 = vld [vmem:[#allocation16 + $0xf0] sm:$0xff] }
 0x6ee   : > { %3461 = vrot.lane.b32.xlu1 %v3390_v24, %s8334_s18  ;;  %v3703_v24 = vld [vmem:[#allocation17 + $0xa8] sm:$0xff] }
 0x6ef   : > { %6705 = vmatpush3.bf16.msra.mxu1 %v3077_v0  ;;  %3459 = vrot.lane.b32.xlu0 %v3389_v25, %s8334_s18  ;;  %v7596_v25 = vld [vmem:[#allocation14 + $0x120] sm:$0xff]   ;;  %v3712_v0 = vld [vmem:[#allocation17 + $0xf0] sm:$0xff] }
 0x6f0   : > { %6706 = vmatprep.subr.bf16.mxu1 %v3079_v61 }
 0x6f2   : > { %3608 = vperm.xlu1 %7239, %v3586_v38  }
 0x6f3   : > { %6707 = vmatpush3.bf16.msra.mxu1 %v3079_v61  ;;  %3603 = vperm.xlu0 %7238, %v3585_v55  }
 0x6f4   : > { %6708 = vmatprep.subr.bf16.mxu1 %v3081_v8 }
 0x6f6   : > { %3721 = vperm.xlu1 %7239, %v3699_v22  }
 0x6f7   : > { %6709 = vmatpush3.bf16.msra.mxu1 %v3081_v8  ;;  %3716 = vperm.xlu0 %7238, %v3698_v40  }
 0x6f8   : > { %6710 = vmatprep.subr.bf16.mxu1 %v3083_v20 }
 0x6fa   : > { %3618 = vperm.xlu1 %7239, %v3588_v44  }
 0x6fb   : > { %6711 = vmatpush3.bf16.msra.mxu1 %v3083_v20  ;;  %3613 = vperm.xlu0 %7238, %v3587_v26   ;;  %v7601_v26 = vld [vmem:[#allocation14 + $0xc8] sm:$0xff]  }
 0x6fe   : > { %3731 = vperm.xlu1 %7239, %v3701_v63   ;;  %6713 = vmatmul.mubr.bf16.vlgmr.msra.gmra.mrb[16].mxu1 %v7593_v41  ;;  %v7602_v63 = vld [vmem:[#allocation14 + $0xd0] sm:$0xff]  }
 0x6ff   : > { %3726 = vperm.xlu0 %7238, %v3700_v31   ;;  %6716 = vmatprep.mubr.bf16.mxu1 %v7594_v42  ;;  %v7603_v31 = vld [vmem:[#allocation14 + $0xd8] sm:$0xff]  }
 0x702   : > { %3628 = vperm.xlu1 %7239, %v3590_v60  }
 0x703   : > { %3623 = vperm.xlu0 %7238, %v3589_v18   ;;  %v7604_v18 = vld [vmem:[#allocation14 + $0xe0] sm:$0xff]  }
 0x706   : > { %3741 = vperm.xlu1 %7239, %v3703_v24   ;;  %6717 = vmatmul.mubr.bf16.gmra.mrb[20].mxu1 %v7595_v27  ;;  %v7605_v24 = vld [vmem:[#allocation14 + $0xe8] sm:$0xff]  }
 0x707   : > { %3736 = vperm.xlu0 %7238, %v3702_v3   ;;  %6720 = vmatprep.mubr.bf16.mxu1 %v7596_v25  ;;  %v7606_v3 = vld [vmem:[#allocation14 + $0xf0] sm:$0xff]  }
 0x70a   : > { %3638 = vperm.xlu1 %7239, %v3592_v33  }
 0x70b   : > { %3633 = vperm.xlu0 %7238, %v3591_v30   ;;  %v7607_v30 = vld [vmem:[#allocation14 + $0xf8] sm:$0xff]  }
 0x70e   : > { %3751 = vperm.xlu1 %7239, %v3705_v35   ;;  %6721 = vmatmul.mubr.bf16.gmra.mrb[24].mxu1 %v7597_v6  ;;  %v7608_v35 = vld [vmem:[#allocation14 + $0x140] sm:$0xff]  }
 0x70f   : > { %3746 = vperm.xlu0 %7238, %v3704_v14   ;;  %6724 = vmatprep.mubr.bf16.mxu1 %v7598_v19  ;;  %v7609_v14 = vld [vmem:[#allocation14 + $0x148] sm:$0xff]  }
 0x712   : > { %3648 = vperm.xlu1 %7239, %v3594_v58   ;;  %v7610_v58 = vld [vmem:[#allocation14 + $0x150] sm:$0xff]  }
 0x713   : > { %3643 = vperm.xlu0 %7238, %v3593_v37   ;;  %v7611_v37 = vld [vmem:[#allocation14 + $0x158] sm:$0xff]  }
 0x716   : > { %3761 = vperm.xlu1 %7239, %v3707_v48   ;;  %6725 = vmatmul.mubr.bf16.gmra.mrb[28].mxu1 %v7599_v50  ;;  %v7612_v50 = vld [vmem:[#allocation14 + $0x160] sm:$0xff]   ;;  %v7613_v48 = vld [vmem:[#allocation14 + $0x168] sm:$0xff]  }
 0x717   : > { %3756 = vperm.xlu0 %7238, %v3706_v5   ;;  %6744 = vmatprep.mubr.bf16.mxu1 %v7600_v53  ;;  %v7614_v53 = vld [vmem:[#allocation14 + $0x170] sm:$0xff]   ;;  %v7615_v5 = vld [vmem:[#allocation14 + $0x178] sm:$0xff]  }
 0x71a   : > { %3658 = vperm.xlu1 %7239, %v3596_v21  }
 0x71b   : > { %3653 = vperm.xlu0 %7238, %v3595_v7  }
 0x71e   : > { %3771 = vperm.xlu1 %7239, %v3709_v39  }
 0x71f   : > { %3766 = vperm.xlu0 %7238, %v3708_v47  }
 0x722   : > { %3668 = vperm.xlu1 %7239, %v3598_v16  }
 0x723   : > { %3663 = vperm.xlu0 %7238, %v3597_v23  }
 0x726   : > { %3781 = vperm.xlu1 %7239, %v3711_v17  }
 0x727   : > { %3776 = vperm.xlu0 %7238, %v3710_v56  }
 0x72a   : > { %3678 = vperm.xlu1 %7239, %v3600_v62  }
 0x72b   : > { %3673 = vperm.xlu0 %7238, %v3599_v49  }
 0x72e   : > { %3791 = vperm.xlu1 %7239, %v3713_v51  }
 0x72f   : > { %3786 = vperm.xlu0 %7238, %v3712_v0  }
 0x738   : > { %v3248_v38 = vpop.permute.xlu1 %3247 }
 0x739   : > { %v3246_v61 = vpop.permute.xlu0 %3245 }
 0x73a   : > { %6728 = vmatprep.subr.bf16.mxu1 %v3246_v61 }
 0x73b   : > { %6729 = vmatpush3.bf16.msra.mxu1 %v3246_v61 }
 0x73c   : > { %6730 = vmatprep.subr.bf16.mxu1 %v3248_v38 }
 0x73f   : > { %6731 = vmatpush3.bf16.msra.mxu1 %v3248_v38 }
 0x740   : > { %v3252_v8 = vpop.permute.xlu1 %3251 }
 0x741   : > { %v3250_v55 = vpop.permute.xlu0 %3249 }
 0x742   : > { %6732 = vmatprep.subr.bf16.mxu1 %v3250_v55 }
 0x743   : > { %6733 = vmatpush3.bf16.msra.mxu1 %v3250_v55 }
 0x744   : > { %6734 = vmatprep.subr.bf16.mxu1 %v3252_v8 }
 0x747   : > { %6735 = vmatpush3.bf16.msra.mxu1 %v3252_v8 }
 0x748   : > { %v3256_v40 = vpop.permute.xlu1 %3255 }
 0x749   : > { %v3254_v22 = vpop.permute.xlu0 %3253 }
 0x74a   : > { %6736 = vmatprep.subr.bf16.mxu1 %v3254_v22 }
 0x74b   : > { %6737 = vmatpush3.bf16.msra.mxu1 %v3254_v22 }
 0x74c   : > { %6738 = vmatprep.subr.bf16.mxu1 %v3256_v40 }
 0x74f   : > { %6739 = vmatpush3.bf16.msra.mxu1 %v3256_v40 }
 0x750   : > { %v3260_v44 = vpop.permute.xlu1 %3259 }
 0x751   : > { %v3258_v20 = vpop.permute.xlu0 %3257 }
 0x752   : > { %6740 = vmatprep.subr.bf16.mxu1 %v3258_v20 }
 0x753   : > { %6741 = vmatpush3.bf16.msra.mxu1 %v3258_v20 }
 0x754   : > { %6742 = vmatprep.subr.bf16.mxu1 %v3260_v44  ;;  %v3450_v42 = vpop.permute.xlu1 %3449 }
 0x755   : > { %v3448_v41 = vpop.permute.xlu0 %3447 }
 0x757   : > { %6743 = vmatpush3.bf16.msra.mxu1 %v3260_v44 }
 0x758   : > { %6760 = vmatprep.subr.bf16.mxu1 %v3448_v41  ;;  %v3454_v27 = vpop.permute.xlu1 %3453 }
 0x759   : > { %v3452_v60 = vpop.permute.xlu0 %3451 }
 0x75a   : > { %6745 = vmatmul.mubr.bf16.vlgmr.msra.gmra.mrb[16].mxu1 %v7601_v26 }
 0x75b   : > { %6761 = vmatpush3.bf16.msra.mxu1 %v3448_v41  ;;  %6748 = vmatprep.mubr.bf16.mxu1 %v7602_v63 }
 0x75c   : > { %6762 = vmatprep.subr.bf16.mxu1 %v3450_v42  ;;  %v3458_v33 = vpop.permute.xlu1 %3457 }
 0x75d   : > { %v3456_v25 = vpop.permute.xlu0 %3455 }
 0x75f   : > { %6763 = vmatpush3.bf16.msra.mxu1 %v3450_v42 }
 0x760   : > { %6764 = vmatprep.subr.bf16.mxu1 %v3452_v60  ;;  %v3462_v19 = vpop.permute.xlu1 %3461 }
 0x761   : > { %v3460_v6 = vpop.permute.xlu0 %3459 }
 0x762   : > { %6749 = vmatmul.mubr.bf16.gmra.mrb[20].mxu1 %v7603_v31 }
 0x763   : > { %6765 = vmatpush3.bf16.msra.mxu1 %v3452_v60  ;;  %6752 = vmatprep.mubr.bf16.mxu1 %v7604_v18 }
 0x764   : > { %6766 = vmatprep.subr.bf16.mxu1 %v3454_v27 }
 0x767   : > { %6767 = vmatpush3.bf16.msra.mxu1 %v3454_v27 }
 0x768   : > { %6768 = vmatprep.subr.bf16.mxu1 %v3456_v25 }
 0x76a   : > { %6753 = vmatmul.mubr.bf16.gmra.mrb[24].mxu1 %v7605_v24 }
 0x76b   : > { %6769 = vmatpush3.bf16.msra.mxu1 %v3456_v25  ;;  %6756 = vmatprep.mubr.bf16.mxu1 %v7606_v3 }
 0x76c   : > { %6770 = vmatprep.subr.bf16.mxu1 %v3458_v33 }
 0x76f   : > { %6771 = vmatpush3.bf16.msra.mxu1 %v3458_v33 }
 0x770   : > { %6772 = vmatprep.subr.bf16.mxu1 %v3460_v6 }
 0x771   : > { %v3609_v7 = vpop.permute.xlu1 %3608 }
 0x772   : > { %6757 = vmatmul.mubr.bf16.gmra.mrb[28].mxu1 %v7607_v30  ;;  %v3604_v21 = vpop.permute.xlu0 %3603 }
 0x773   : > { %6773 = vmatpush3.bf16.msra.mxu1 %v3460_v6  ;;  %6776 = vmatprep.mubr.bf16.mxu1 %v7608_v35 }
 0x774   : > { %6774 = vmatprep.subr.bf16.mxu1 %v3462_v19 }
 0x775   : > { %v3722_v47 = vpop.permute.xlu1 %3721 }
 0x776   : > { %v3717_v39 = vpop.permute.xlu0 %3716 }
 0x777   : > { %6775 = vmatpush3.bf16.msra.mxu1 %v3462_v19 }
 0x779   : > { %v3619_v23 = vpop.permute.xlu1 %3618 }
 0x77a   : > { %6777 = vmatmul.mubr.bf16.vlgmr.msra.gmra.mrb[16].mxu1 %v7609_v14  ;;  %v3614_v16 = vpop.permute.xlu0 %3613 }
 0x77b   : > { %6780 = vmatprep.mubr.bf16.mxu1 %v7610_v58 }
 0x77d   : > { %v3732_v56 = vpop.permute.xlu1 %3731 }
 0x77e   : > { %v3727_v17 = vpop.permute.xlu0 %3726 }
 0x781   : > { %v3629_v49 = vpop.permute.xlu1 %3628 }
 0x782   : > { %6781 = vmatmul.mubr.bf16.gmra.mrb[20].mxu1 %v7611_v37  ;;  %v3624_v62 = vpop.permute.xlu0 %3623 }
 0x783   : > { %6784 = vmatprep.mubr.bf16.mxu1 %v7612_v50 }
 0x785   : > { %v3742_v0 = vpop.permute.xlu1 %3741 }
 0x786   : > { %v3737_v51 = vpop.permute.xlu0 %3736 }
 0x789   : > { %v3639_v38 = vpop.permute.xlu1 %3638 }
 0x78a   : > { %6785 = vmatmul.mubr.bf16.gmra.mrb[24].mxu1 %v7613_v48  ;;  %v3634_v61 = vpop.permute.xlu0 %3633 }
 0x78b   : > { %6788 = vmatprep.mubr.bf16.mxu1 %v7614_v53 }
 0x78d   : > { %v3752_v8 = vpop.permute.xlu1 %3751 }
 0x78e   : > { %v3747_v55 = vpop.permute.xlu0 %3746 }
 0x791   : > { %v9681_v40 = vpop.permute.xlu1 %3648 }
 0x792   : > { %6789 = vmatmul.mubr.bf16.gmra.mrb[28].mxu1 %v7615_v5  ;;  %v3644_v22 = vpop.permute.xlu0 %3643 }
 0x795   : > { %v9685_v44 = vpop.permute.xlu1 %3761 }
 0x796   : > { %v9683_v20 = vpop.permute.xlu0 %3756 }
 0x799   : > { %v3659_v41 = vpop.permute.xlu1 %3658 }
 0x79a   : > { %v3654_v26 = vpop.permute.xlu0 %3653 }
 0x79d   : > { %v3772_v33 = vpop.permute.xlu1 %3771 }
 0x79e   : > { %v3767_v60 = vpop.permute.xlu0 %3766 }
 0x7a2   : > { %v3664_v37 = vpop.permute.xlu0 %3663 }
 0x84d   : > { %v6778_v63 = vpop.f32.mrb[16].mxu1 }
 0x84e   : > { %v3683_v42 = vmul.f32 %v6778_v63, %v3614_v16  ;;  %v3505_v31 = vpop.f32.mrb[17].mxu1 }
 0x84f   : > { %v3681_v18 = vmul.f32 %v3604_v21, %v3505_v31  ;;  %v6779_v27 = vpop.f32.mrb[18].mxu1 }
 0x850   : > { %v3796_v24 = vadd.f32 %v3727_v17, %v3683_v42  ;;  %v3684_v25 = vmul.f32 %v6779_v27, %v3619_v23  ;;  %v3508_v3 = vpop.f32.mrb[19].mxu1  ;;  %v3669_v17 = vpop.permute.xlu1 %3668 }
 0x851   : > { %v3794_v30 = vadd.f32 %v3717_v39, %v3681_v18  ;;  %v3682_v6 = vmul.f32 %v3609_v7, %v3508_v3 }
 0x852   : > { %v3797_v35 = vadd.f32 %v3732_v56, %v3684_v25  ;;  %v3812_v14 = vmax.f32 %v3796_v24, 0.0  ;;  %v3777_v24 = vpop.permute.xlu0 %3776 }
 0x853   : > { %v3795_v19 = vadd.f32 %v3722_v47, %v3682_v6  ;;  %v3810_v50 = vmax.f32 %v3794_v30, 0.0 }
 0x854   : > { %v3813_v58 = vmax.f32 %v3797_v35, 0.0  ;;  %v3782_v30 = vpop.permute.xlu1 %3781 }
 0x855   : > { %v3811_v48 = vmax.f32 %v3795_v19, 0.0  ;;  %v6782_v53 = vpop.f32.mrb[20].mxu1 }
 0x856   : > { %v3687_v5 = vmul.f32 %v6782_v53, %v3634_v61  ;;  %v3521_v16 = vpop.f32.mrb[21].mxu1  ;;  %v9687_v63 = vpack.i.bf16 %v3813_v58, %v3812_v14  ;;  %v9689_v21 = vpack.c.bf16 %v3813_v58, %v3812_v14 }
 0x857   : > { %v3685_v23 = vmul.f32 %v3624_v62, %v3521_v16  ;;  %v6783_v42 = vpop.f32.mrb[22].mxu1  ;;  %v9691_v31 = vpack.i.bf16 %v3811_v48, %v3810_v50  ;;  %v9693_v7 = vpack.c.bf16 %v3811_v48, %v3810_v50 }
 0x858   : > { %v3800_v39 = vadd.f32 %v3747_v55, %v3687_v5  ;;  %v3688_v47 = vmul.f32 %v6783_v42, %v3639_v38  ;;  %v3524_v56 = vpop.f32.mrb[23].mxu1  ;;  %7446 = vrot.lane.b32.xlu1 %v9687_v63, %s8335_s7  ;;  %v3679_v42 = vpop.permute.xlu1 %3678 }
 0x859   : > { %v3798_v61 = vadd.f32 %v3737_v51, %v3685_v23  ;;  %v3686_v18 = vmul.f32 %v3629_v49, %v3524_v56  ;;  %7441 = vrot.lane.b32.xlu0 %v9691_v31, %s8335_s7 }
 0x85a   : > { %v3801_v27 = vadd.f32 %v3752_v8, %v3688_v47  ;;  %v3816_v25 = vmax.f32 %v3800_v39, 0.0 }
 0x85b   : > { %v3799_v62 = vadd.f32 %v3742_v0, %v3686_v18  ;;  %v3814_v6 = vmax.f32 %v3798_v61, 0.0  ;;  %v3674_v0 = vpop.permute.xlu0 %3673 }
 0x85c   : > { %v3817_v3 = vmax.f32 %v3801_v27, 0.0 }
 0x85d   : > { %v3815_v35 = vmax.f32 %v3799_v62, 0.0  ;;  %v6786_v55 = vpop.f32.mrb[24].mxu1 }
 0x85e   : > { %v3691_v38 = vmul.f32 %v6786_v55, %v3654_v26  ;;  %v3537_v19 = vpop.f32.mrb[25].mxu1  ;;  %v7455_v14 = vpack.i.bf16 %v3817_v3, %v3816_v25  ;;  %v4015_v58 = vpack.c.bf16 %v3817_v3, %v3816_v25 }
 0x85f   : > { %v3689_v50 = vmul.f32 %v3644_v22, %v3537_v19  ;;  %v6787_v48 = vpop.f32.mrb[26].mxu1  ;;  %v7450_v51 = vpack.i.bf16 %v3815_v35, %v3814_v6  ;;  %v4014_v49 = vpack.c.bf16 %v3815_v35, %v3814_v6  ;;  %v3787_v25 = vpop.permute.xlu0 %3786 }
 0x860   : > { %v3804_v53 = vadd.f32 %v3767_v60, %v3691_v38  ;;  %v3692_v5 = vmul.f32 %v6787_v48, %v3659_v41  ;;  %v3540_v16 = vpop.f32.mrb[27].mxu1  ;;  %7456 = vrot.lane.b32.xlu1 %v7455_v14, %s8335_s7 }
 0x861   : > { %v3802_v8 = vadd.f32 %v9683_v20, %v3689_v50  ;;  %v3690_v23 = vmul.f32 %v9681_v40, %v3540_v16  ;;  %7451 = vrot.lane.b32.xlu0 %v7450_v51, %s8335_s7 }
 0x862   : > { %v3805_v26 = vadd.f32 %v3772_v33, %v3692_v5  ;;  %v3820_v22 = vmax.f32 %v3804_v53, 0.0 }
 0x863   : > { %v3803_v39 = vadd.f32 %v9685_v44, %v3690_v23  ;;  %v3818_v56 = vmax.f32 %v3802_v8, 0.0  ;;  %v3792_v44 = vpop.permute.xlu1 %3791 }
 0x864   : > { %v3821_v47 = vmax.f32 %v3805_v26, 0.0 }
 0x865   : > { %v3819_v61 = vmax.f32 %v3803_v39, 0.0  ;;  %v6790_v60 = vpop.f32.mrb[28].mxu1 }
 0x866   : > { %v3695_v41 = vmul.f32 %v6790_v60, %v3674_v0  ;;  %v3553_v18 = vpop.f32.mrb[29].mxu1  ;;  %v7465_v27 = vpack.i.bf16 %v3821_v47, %v3820_v22  ;;  %v4017_v62 = vpack.c.bf16 %v3821_v47, %v3820_v22 }
 0x867   : > { %v3693_v3 = vmul.f32 %v3664_v37, %v3553_v18  ;;  %v6791_v20 = vpop.f32.mrb[30].mxu1  ;;  %v7460_v6 = vpack.i.bf16 %v3819_v61, %v3818_v56  ;;  %v4016_v40 = vpack.c.bf16 %v3819_v61, %v3818_v56 }
 0x868   : > { %v3808_v35 = vadd.f32 %v3787_v25, %v3695_v41  ;;  %v3696_v55 = vmul.f32 %v6791_v20, %v3679_v42  ;;  %v3556_v33 = vpop.f32.mrb[31].mxu1  ;;  %7466 = vrot.lane.b32.xlu1 %v7465_v27, %s8335_s7 }
 0x869   : > { %v3806_v38 = vadd.f32 %v3777_v24, %v3693_v3  ;;  %v3694_v19 = vmul.f32 %v3669_v17, %v3556_v33  ;;  %7461 = vrot.lane.b32.xlu0 %v7460_v6, %s8335_s7 }
 0x86a   : > { %v3809_v50 = vadd.f32 %v3792_v44, %v3696_v55  ;;  %v3824_v53 = vmax.f32 %v3808_v35, 0.0 }
 0x86b   : > { %v3807_v48 = vadd.f32 %v3782_v30, %v3694_v19  ;;  %v3822_v16 = vmax.f32 %v3806_v38, 0.0 }
 0x86c   : > { %v3825_v5 = vmax.f32 %v3809_v50, 0.0 }
 0x86d   : > { %v3823_v0 = vmax.f32 %v3807_v48, 0.0 }
 0x86e   : > { %v7475_v37 = vpack.i.bf16 %v3825_v5, %v3824_v53  ;;  %v4019_v8 = vpack.c.bf16 %v3825_v5, %v3824_v53 }
 0x86f   : > { %v7470_v23 = vpack.i.bf16 %v3823_v0, %v3822_v16  ;;  %v4018_v26 = vpack.c.bf16 %v3823_v0, %v3822_v16 }
 0x870   : > { %7476 = vrot.lane.b32.xlu1 %v7475_v37, %s8335_s7 }
 0x871   : > { %7471 = vrot.lane.b32.xlu0 %v7470_v23, %s8335_s7 }
 0x874   : > { %7481 = vrot.lane.b32.xlu1 %v9691_v31, %s8331_s30 }
 0x875   : > { %4076 = vrot.lane.b32.xlu0 %v9693_v7, %s8332_s22 }
 0x878   : > { %7486 = vrot.lane.b32.xlu1 %v9687_v63, %s8331_s30  ;;  %v7616_v63 = vld [vmem:[#allocation14 + $0x1c0] sm:$0xff]  }
 0x879   : > { %4078 = vrot.lane.b32.xlu0 %v9689_v21, %s8332_s22  ;;  %6808 = vmatprep.mubr.bf16.mxu0 %v7616_v63 }
 0x87c   : > { %7491 = vrot.lane.b32.xlu1 %v7450_v51, %s8331_s30 }
 0x87d   : > { %4080 = vrot.lane.b32.xlu0 %v4014_v49, %s8332_s22 }
 0x880   : > { %7496 = vrot.lane.b32.xlu1 %v7455_v14, %s8331_s30 }
 0x881   : > { %4082 = vrot.lane.b32.xlu0 %v4015_v58, %s8332_s22 }
 0x884   : > { %7501 = vrot.lane.b32.xlu1 %v7460_v6, %s8331_s30 }
 0x885   : > { %4084 = vrot.lane.b32.xlu0 %v4016_v40, %s8332_s22 }
 0x888   : > { %7506 = vrot.lane.b32.xlu1 %v7465_v27, %s8331_s30 }
 0x889   : > { %4086 = vrot.lane.b32.xlu0 %v4017_v62, %s8332_s22 }
 0x88c   : > { %7511 = vrot.lane.b32.xlu1 %v7470_v23, %s8331_s30 }
 0x88d   : > { %4088 = vrot.lane.b32.xlu0 %v4018_v26, %s8332_s22 }
 0x890   : > { %7516 = vrot.lane.b32.xlu1 %v7475_v37, %s8331_s30  ;;  %s8192_s30 = sshll.u32 %s8337_s1, 4  ;;  %s8193_s30 = int_to_ptr.vmem [resolvable:$false] %s8192_s30 }
 0x891   : > { %4090 = vrot.lane.b32.xlu0 %v4019_v8, %s8332_s22  ;;  %p8195_p2 = scmp.lt.s32.totalorder %s9934_s24, %s8193_s30 }
 0x8ca   : > { %v7447_v21 = vpop.permute.xlu1 %7446 }
 0x8cb   : > { %v7449_v17 = vunpack.i.h.bf16 %v7447_v21  ;;  %v7448_v31 = vunpack.i.l.bf16 %v7447_v21  ;;  %v7442_v7 = vpop.permute.xlu0 %7441 }
 0x8cc   : > { %v7444_v24 = vunpack.i.h.bf16 %v7442_v7  ;;  %v7443_v30 = vunpack.i.l.bf16 %v7442_v7 }
 0x8cd   : > { %v3893_v14 = vsel %vm1855_vm2, 0.0, %v7449_v17  ;;  %v3892_v58 = vsel %vm1855_vm2, 0.0, %v7448_v31 }
 0x8ce   : > { %v3988_v51 = vpack.c.bf16 %v3893_v14, %v3892_v58  ;;  %v3891_v49 = vsel %vm1855_vm2, 0.0, %v7444_v24  ;;  %v3890_v42 = vsel %vm1855_vm2, 0.0, %v7443_v30 }
 0x8cf   : > { %v3987_v39 = vpack.c.bf16 %v3891_v49, %v3890_v42 }
 0x8d0   : > { %4255 = vrot.lane.b32.xlu1 %v3988_v51, %s8336_s4 }
 0x8d1   : > { %4253 = vrot.lane.b32.xlu0 %v3987_v39, %s8336_s4 }
 0x8d2   : > { %v7457_v22 = vpop.permute.xlu1 %7456 }
 0x8d3   : > { %v7459_v47 = vunpack.i.h.bf16 %v7457_v22  ;;  %v7458_v56 = vunpack.i.l.bf16 %v7457_v22  ;;  %v7452_v61 = vpop.permute.xlu0 %7451 }
 0x8d4   : > { %v7454_v60 = vunpack.i.h.bf16 %v7452_v61  ;;  %v7453_v41 = vunpack.i.l.bf16 %v7452_v61 }
 0x8d5   : > { %v3897_v18 = vsel %vm1855_vm2, 0.0, %v7459_v47  ;;  %v3896_v27 = vsel %vm1855_vm2, 0.0, %v7458_v56 }
 0x8d6   : > { %v3990_v62 = vpack.c.bf16 %v3897_v18, %v3896_v27  ;;  %v3895_v25 = vsel %vm1855_vm2, 0.0, %v7454_v60  ;;  %v3894_v3 = vsel %vm1855_vm2, 0.0, %v7453_v41 }
 0x8d7   : > { %v3989_v20 = vpack.c.bf16 %v3895_v25, %v3894_v3 }
 0x8d8   : > { %4259 = vrot.lane.b32.xlu1 %v3990_v62, %s8336_s4 }
 0x8d9   : > { %4257 = vrot.lane.b32.xlu0 %v3989_v20, %s8336_s4 }
 0x8da   : > { %v7467_v6 = vpop.permute.xlu1 %7466 }
 0x8db   : > { %v7469_v40 = vunpack.i.h.bf16 %v7467_v6  ;;  %v7468_v35 = vunpack.i.l.bf16 %v7467_v6  ;;  %v7462_v55 = vpop.permute.xlu0 %7461 }
 0x8dc   : > { %v7464_v33 = vunpack.i.h.bf16 %v7462_v55  ;;  %v7463_v44 = vunpack.i.l.bf16 %v7462_v55 }
 0x8dd   : > { %v3901_v38 = vsel %vm1855_vm2, 0.0, %v7469_v40  ;;  %v3900_v19 = vsel %vm1855_vm2, 0.0, %v7468_v35 }
 0x8de   : > { %v3992_v50 = vpack.c.bf16 %v3901_v38, %v3900_v19  ;;  %v3899_v48 = vsel %vm1855_vm2, 0.0, %v7464_v33  ;;  %v3898_v53 = vsel %vm1855_vm2, 0.0, %v7463_v44 }
 0x8df   : > { %v3991_v5 = vpack.c.bf16 %v3899_v48, %v3898_v53 }
 0x8e0   : > { %4263 = vrot.lane.b32.xlu1 %v3992_v50, %s8336_s4 }
 0x8e1   : > { %4261 = vrot.lane.b32.xlu0 %v3991_v5, %s8336_s4 }
 0x8e2   : > { %v7477_v16 = vpop.permute.xlu1 %7476 }
 0x8e3   : > { %v7479_v0 = vunpack.i.h.bf16 %v7477_v16  ;;  %v7478_v37 = vunpack.i.l.bf16 %v7477_v16  ;;  %v7472_v8 = vpop.permute.xlu0 %7471 }
 0x8e4   : > { %v7474_v23 = vunpack.i.h.bf16 %v7472_v8  ;;  %v7473_v26 = vunpack.i.l.bf16 %v7472_v8 }
 0x8e5   : > { %v3905_v63 = vsel %vm1855_vm2, 0.0, %v7479_v0  ;;  %v3904_v21 = vsel %vm1855_vm2, 0.0, %v7478_v37 }
 0x8e6   : > { %v3994_v17 = vpack.c.bf16 %v3905_v63, %v3904_v21  ;;  %v3903_v31 = vsel %vm1855_vm2, 0.0, %v7474_v23  ;;  %v3902_v7 = vsel %vm1855_vm2, 0.0, %v7473_v26  ;;  %v7482_v24 = vpop.permute.xlu1 %7481 }
 0x8e7   : > { %v3993_v30 = vpack.c.bf16 %v3903_v31, %v3902_v7  ;;  %v7484_v14 = vunpack.i.h.bf16 %v7482_v24  ;;  %v7483_v58 = vunpack.i.l.bf16 %v7482_v24  ;;  %v4077_v51 = vpop.permute.xlu0 %4076 }
 0x8e8   : > { %4267 = vrot.lane.b32.xlu1 %v3994_v17, %s8336_s4  ;;  %6792 = vmatprep.subr.bf16.mxu0 %v4077_v51 }
 0x8e9   : > { %v3955_v49 = vsel %vm1938_vm3, 0.0, %v7484_v14  ;;  %v3954_v42 = vsel %vm1938_vm3, 0.0, %v7483_v58  ;;  %6793 = vmatpush3.bf16.msra.mxu0 %v4077_v51  ;;  %4265 = vrot.lane.b32.xlu0 %v3993_v30, %s8336_s4 }
 0x8ea   : > { %v4391_v39 = vpack.c.bf16 %v3955_v49, %v3954_v42  ;;  %v7487_v22 = vpop.permute.xlu1 %7486 }
 0x8eb   : > { %v7489_v47 = vunpack.i.h.bf16 %v7487_v22  ;;  %v7488_v56 = vunpack.i.l.bf16 %v7487_v22  ;;  %v4079_v61 = vpop.permute.xlu0 %4078 }
 0x8ec   : > { %6794 = vmatprep.subr.bf16.mxu0 %v4079_v61 }
 0x8ed   : > { %v3957_v60 = vsel %vm1938_vm3, 0.0, %v7489_v47  ;;  %v3956_v41 = vsel %vm1938_vm3, 0.0, %v7488_v56  ;;  %6795 = vmatpush3.bf16.msra.mxu0 %v4079_v61  ;;  %4455 = vrot.lane.b32.xlu0 %v4391_v39, %s8336_s4 }
 0x8ee   : > { %v4392_v18 = vpack.c.bf16 %v3957_v60, %v3956_v41  ;;  %v7492_v27 = vpop.permute.xlu1 %7491  ;;  %v4593_v41 = vld [vmem:[#allocation16 + $0x100] sm:$0xff] }
 0x8ef   : > { %v7494_v62 = vunpack.i.h.bf16 %v7492_v27  ;;  %v7493_v25 = vunpack.i.l.bf16 %v7492_v27  ;;  %v4081_v3 = vpop.permute.xlu0 %4080 }
 0x8f0   : > { %4457 = vrot.lane.b32.xlu1 %v4392_v18, %s8336_s4  ;;  %6796 = vmatprep.subr.bf16.mxu0 %v4081_v3  ;;  %v7617_v18 = vld [vmem:[#allocation14 + $0x1c8] sm:$0xff]  }
 0x8f1   : > { %v3959_v20 = vsel %vm1938_vm3, 0.0, %v7494_v62  ;;  %v3958_v6 = vsel %vm1938_vm3, 0.0, %v7493_v25  ;;  %6797 = vmatpush3.bf16.msra.mxu0 %v4081_v3  ;;  %v7618_v62 = vld [vmem:[#allocation14 + $0x1d0] sm:$0xff]   ;;  %v4594_v25 = vld [vmem:[#allocation16 + $0x108] sm:$0xff]  ;;  %v4706_v3 = vld [vmem:[#allocation17 + $0x100] sm:$0xff] }
 0x8f2   : > { %v4393_v40 = vpack.c.bf16 %v3959_v20, %v3958_v6  ;;  %v7497_v35 = vpop.permute.xlu1 %7496  ;;  %v4707_v20 = vld [vmem:[#allocation17 + $0x108] sm:$0xff]  ;;  %v4595_v6 = vld [vmem:[#allocation16 + $0x110] sm:$0xff] }
 0x8f3   : > { %v7499_v55 = vunpack.i.h.bf16 %v7497_v35  ;;  %v7498_v33 = vunpack.i.l.bf16 %v7497_v35  ;;  %v4083_v44 = vpop.permute.xlu0 %4082  ;;  %v7620_v35 = vld [vmem:[#allocation14 + $0x1e0] sm:$0xff]  }
 0x8f4   : > { %6798 = vmatprep.subr.bf16.mxu0 %v4083_v44  ;;  %4459 = vrot.lane.b32.xlu0 %v4393_v40, %s8336_s4  ;;  %v7619_v40 = vld [vmem:[#allocation14 + $0x1d8] sm:$0xff]  }
 0x8f5   : > { %v3961_v38 = vsel %vm1938_vm3, 0.0, %v7499_v55  ;;  %v3960_v19 = vsel %vm1938_vm3, 0.0, %v7498_v33  ;;  %6799 = vmatpush3.bf16.msra.mxu0 %v4083_v44  ;;  %v4708_v55 = vld [vmem:[#allocation17 + $0x110] sm:$0xff]  ;;  %v4709_v33 = vld [vmem:[#allocation17 + $0x118] sm:$0xff]  ;;  %v4597_v44 = vld [vmem:[#allocation16 + $0x120] sm:$0xff] }
 0x8f6   : > { %v4394_v50 = vpack.c.bf16 %v3961_v38, %v3960_v19  ;;  %v7502_v48 = vpop.permute.xlu1 %7501  ;;  %v7621_v38 = vld [vmem:[#allocation14 + $0x1e8] sm:$0xff]   ;;  %v7622_v19 = vld [vmem:[#allocation14 + $0x1f0] sm:$0xff]  }
 0x8f7   : > { %v7504_v53 = vunpack.i.h.bf16 %v7502_v48  ;;  %v7503_v5 = vunpack.i.l.bf16 %v7502_v48  ;;  %v4085_v16 = vpop.permute.xlu0 %4084  ;;  %v4710_v48 = vld [vmem:[#allocation17 + $0x120] sm:$0xff] }
 0x8f8   : > { %4461 = vrot.lane.b32.xlu1 %v4394_v50, %s8336_s4  ;;  %6800 = vmatprep.subr.bf16.mxu0 %v4085_v16  ;;  %v4598_v50 = vld [vmem:[#allocation16 + $0x128] sm:$0xff] }
 0x8f9   : > { %v3963_v0 = vsel %vm1938_vm3, 0.0, %v7504_v53  ;;  %v3962_v37 = vsel %vm1938_vm3, 0.0, %v7503_v5  ;;  %6801 = vmatpush3.bf16.msra.mxu0 %v4085_v16  ;;  %v4711_v53 = vld [vmem:[#allocation17 + $0x128] sm:$0xff]  ;;  %v4599_v5 = vld [vmem:[#allocation16 + $0x130] sm:$0xff]  ;;  %v7623_v16 = vld [vmem:[#allocation14 + $0x1f8] sm:$0xff]  }
 0x8fa   : > { %v4395_v8 = vpack.c.bf16 %v3963_v0, %v3962_v37  ;;  %v7507_v23 = vpop.permute.xlu1 %7506  ;;  %v7624_v0 = vld [vmem:[#allocation14 + $0x180] sm:$0xff]   ;;  %v4600_v37 = vld [vmem:[#allocation16 + $0x138] sm:$0xff] }
 0x8fb   : > { %v7509_v26 = vunpack.i.h.bf16 %v7507_v23  ;;  %v7508_v63 = vunpack.i.l.bf16 %v7507_v23  ;;  %v4087_v21 = vpop.permute.xlu0 %4086  ;;  %v4713_v23 = vld [vmem:[#allocation17 + $0x138] sm:$0xff] }
 0x8fc   : > { %6802 = vmatprep.subr.bf16.mxu0 %v4087_v21  ;;  %4463 = vrot.lane.b32.xlu0 %v4395_v8, %s8336_s4  ;;  %v4712_v8 = vld [vmem:[#allocation17 + $0x130] sm:$0xff] }
 0x8fd   : > { %v3965_v17 = vsel %vm1938_vm3, 0.0, %v7509_v26  ;;  %v3964_v31 = vsel %vm1938_vm3, 0.0, %v7508_v63  ;;  %6803 = vmatpush3.bf16.msra.mxu0 %v4087_v21  ;;  %v4601_v26 = vld [vmem:[#allocation16 + $0x140] sm:$0xff]  ;;  %v4602_v63 = vld [vmem:[#allocation16 + $0x148] sm:$0xff] }
 0x8fe   : > { %v4396_v7 = vpack.c.bf16 %v3965_v17, %v3964_v31  ;;  %v7512_v24 = vpop.permute.xlu1 %7511  ;;  %v4714_v21 = vld [vmem:[#allocation17 + $0x140] sm:$0xff]  ;;  %v4715_v17 = vld [vmem:[#allocation17 + $0x148] sm:$0xff]  ;;  %v4603_v31 = vld [vmem:[#allocation16 + $0x150] sm:$0xff] }
 0x8ff   : > { %v7514_v30 = vunpack.i.h.bf16 %v7512_v24  ;;  %v7513_v14 = vunpack.i.l.bf16 %v7512_v24  ;;  %v4089_v58 = vpop.permute.xlu0 %4088  ;;  %v4716_v24 = vld [vmem:[#allocation17 + $0x150] sm:$0xff] }
 0x900   : > { %4465 = vrot.lane.b32.xlu1 %v4396_v7, %s8336_s4  ;;  %6804 = vmatprep.subr.bf16.mxu0 %v4089_v58  ;;  %v4604_v7 = vld [vmem:[#allocation16 + $0x158] sm:$0xff] }
 0x901   : > { %v3967_v51 = vsel %vm1938_vm3, 0.0, %v7514_v30  ;;  %v3966_v49 = vsel %vm1938_vm3, 0.0, %v7513_v14  ;;  %6805 = vmatpush3.bf16.msra.mxu0 %v4089_v58  ;;  %v4717_v30 = vld [vmem:[#allocation17 + $0x158] sm:$0xff]  ;;  %v4605_v14 = vld [vmem:[#allocation16 + $0x160] sm:$0xff]  ;;  %v4606_v58 = vld [vmem:[#allocation16 + $0x168] sm:$0xff] }
 0x902   : > { %v4397_v42 = vpack.c.bf16 %v3967_v51, %v3966_v49  ;;  %v7517_v39 = vpop.permute.xlu1 %7516  ;;  %v4718_v51 = vld [vmem:[#allocation17 + $0x160] sm:$0xff]  ;;  %v4719_v49 = vld [vmem:[#allocation17 + $0x168] sm:$0xff] }
 0x903   : > { %v7519_v22 = vunpack.i.h.bf16 %v7517_v39  ;;  %v7518_v47 = vunpack.i.l.bf16 %v7517_v39  ;;  %v4091_v56 = vpop.permute.xlu0 %4090  ;;  %v4608_v39 = vld [vmem:[#allocation16 + $0x178] sm:$0xff] }
 0x904   : > { %6806 = vmatprep.subr.bf16.mxu0 %v4091_v56  ;;  %4467 = vrot.lane.b32.xlu0 %v4397_v42, %s8336_s4  ;;  %v4607_v42 = vld [vmem:[#allocation16 + $0x170] sm:$0xff] }
 0x905   : > { %v3969_v61 = vsel %vm1938_vm3, 0.0, %v7519_v22  ;;  %v3968_v60 = vsel %vm1938_vm3, 0.0, %v7518_v47  ;;  %6807 = vmatpush3.bf16.msra.mxu0 %v4091_v56  ;;  %v4720_v22 = vld [vmem:[#allocation17 + $0x170] sm:$0xff]  ;;  %v4721_v56 = vld [vmem:[#allocation17 + $0x178] sm:$0xff] }
 0x906   : > { %v4398_v27 = vpack.c.bf16 %v3969_v61, %v3968_v60 }
 0x908   : > { %4469 = vrot.lane.b32.xlu1 %v4398_v27, %s8336_s4  ;;  %4611 = vperm.xlu0 %7238, %v4593_v41  }
 0x909   : > { %6809 = vmatmul.mubr.bf16.vlgmr.msra.gmra.mrb[32].mxu0 %v7617_v18 }
 0x90a   : > { %6812 = vmatprep.mubr.bf16.mxu0 %v7618_v62 }
 0x90c   : > { %4616 = vperm.xlu1 %7239, %v4594_v25   ;;  %4724 = vperm.xlu0 %7238, %v4706_v3   ;;  %v7625_v3 = vld [vmem:[#allocation14 + $0x188] sm:$0xff]  }
 0x910   : > { %4729 = vperm.xlu1 %7239, %v4707_v20   ;;  %4621 = vperm.xlu0 %7238, %v4595_v6   ;;  %v7626_v6 = vld [vmem:[#allocation14 + $0x190] sm:$0xff]  }
 0x911   : > { %6813 = vmatmul.mubr.bf16.gmra.mrb[36].mxu0 %v7619_v40 }
 0x912   : > { %6816 = vmatprep.mubr.bf16.mxu0 %v7620_v35  ;;  %v7627_v35 = vld [vmem:[#allocation14 + $0x198] sm:$0xff]  }
 0x914   : > { %4626 = vperm.xlu1 %7239, %v4596_v12   ;;  %4734 = vperm.xlu0 %7238, %v4708_v55   ;;  %v7628_v55 = vld [vmem:[#allocation14 + $0x1a0] sm:$0xff]  }
 0x918   : > { %4739 = vperm.xlu1 %7239, %v4709_v33   ;;  %4631 = vperm.xlu0 %7238, %v4597_v44   ;;  %v7629_v44 = vld [vmem:[#allocation14 + $0x1a8] sm:$0xff]  }
 0x919   : > { %6817 = vmatmul.mubr.bf16.gmra.mrb[40].mxu0 %v7621_v38 }
 0x91a   : > { %6820 = vmatprep.mubr.bf16.mxu0 %v7622_v19  ;;  %v7630_v19 = vld [vmem:[#allocation14 + $0x1b0] sm:$0xff]  }
 0x91c   : > { %4636 = vperm.xlu1 %7239, %v4598_v50   ;;  %4744 = vperm.xlu0 %7238, %v4710_v48   ;;  %v7631_v48 = vld [vmem:[#allocation14 + $0x1b8] sm:$0xff]  }
 0x920   : > { %4749 = vperm.xlu1 %7239, %v4711_v53   ;;  %4641 = vperm.xlu0 %7238, %v4599_v5   ;;  %v7632_v5 = vld [vmem:[#allocation14 + $0x200] sm:$0xff]  }
 0x921   : > { %6821 = vmatmul.mubr.bf16.gmra.mrb[44].mxu0 %v7623_v16 }
 0x922   : > { %6840 = vmatprep.mubr.bf16.mxu0 %v7624_v0  ;;  %v7633_v0 = vld [vmem:[#allocation14 + $0x208] sm:$0xff]  }
 0x924   : > { %4646 = vperm.xlu1 %7239, %v4600_v37   ;;  %4754 = vperm.xlu0 %7238, %v4712_v8   ;;  %v7634_v37 = vld [vmem:[#allocation14 + $0x210] sm:$0xff]   ;;  %v7635_v8 = vld [vmem:[#allocation14 + $0x218] sm:$0xff]  }
 0x928   : > { %4759 = vperm.xlu1 %7239, %v4713_v23   ;;  %4651 = vperm.xlu0 %7238, %v4601_v26   ;;  %v7636_v23 = vld [vmem:[#allocation14 + $0x220] sm:$0xff]   ;;  %v7637_v26 = vld [vmem:[#allocation14 + $0x228] sm:$0xff]  }
 0x92c   : > { %4656 = vperm.xlu1 %7239, %v4602_v63   ;;  %4764 = vperm.xlu0 %7238, %v4714_v21   ;;  %v7638_v63 = vld [vmem:[#allocation14 + $0x230] sm:$0xff]   ;;  %v7639_v21 = vld [vmem:[#allocation14 + $0x238] sm:$0xff]  }
 0x930   : > { %4769 = vperm.xlu1 %7239, %v4715_v17   ;;  %4661 = vperm.xlu0 %7238, %v4603_v31  }
 0x934   : > { %4666 = vperm.xlu1 %7239, %v4604_v7   ;;  %4774 = vperm.xlu0 %7238, %v4716_v24  }
 0x938   : > { %4779 = vperm.xlu1 %7239, %v4717_v30   ;;  %4671 = vperm.xlu0 %7238, %v4605_v14  }
 0x93c   : > { %4676 = vperm.xlu1 %7239, %v4606_v58   ;;  %4784 = vperm.xlu0 %7238, %v4718_v51  }
 0x940   : > { %4789 = vperm.xlu1 %7239, %v4719_v49   ;;  %4681 = vperm.xlu0 %7238, %v4607_v42  }
 0x942   : > { %v4256_v61 = vpop.permute.xlu1 %4255 }
 0x943   : > { %v4254_v47 = vpop.permute.xlu0 %4253 }
 0x944   : > { %4686 = vperm.xlu1 %7239, %v4608_v39   ;;  %4794 = vperm.xlu0 %7238, %v4720_v22  }
 0x945   : > { %6824 = vmatprep.subr.bf16.mxu0 %v4254_v47 }
 0x946   : > { %6825 = vmatpush3.bf16.msra.mxu0 %v4254_v47 }
 0x947   : > { %6826 = vmatprep.subr.bf16.mxu0 %v4256_v61 }
 0x948   : > { %4799 = vperm.xlu1 %7239, %v4721_v56  }
 0x94a   : > { %6827 = vmatpush3.bf16.msra.mxu0 %v4256_v61  ;;  %v4260_v41 = vpop.permute.xlu1 %4259 }
 0x94b   : > { %v4258_v60 = vpop.permute.xlu0 %4257 }
 0x94c   : > { %6828 = vmatprep.subr.bf16.mxu0 %v4258_v60 }
 0x94e   : > { %6829 = vmatpush3.bf16.msra.mxu0 %v4258_v60 }
 0x94f   : > { %6830 = vmatprep.subr.bf16.mxu0 %v4260_v41 }
 0x952   : > { %6831 = vmatpush3.bf16.msra.mxu0 %v4260_v41  ;;  %v4264_v27 = vpop.permute.xlu1 %4263 }
 0x953   : > { %v4262_v18 = vpop.permute.xlu0 %4261 }
 0x954   : > { %6832 = vmatprep.subr.bf16.mxu0 %v4262_v18 }
 0x956   : > { %6833 = vmatpush3.bf16.msra.mxu0 %v4262_v18 }
 0x957   : > { %6834 = vmatprep.subr.bf16.mxu0 %v4264_v27 }
 0x95a   : > { %6835 = vmatpush3.bf16.msra.mxu0 %v4264_v27  ;;  %v4268_v25 = vpop.permute.xlu1 %4267 }
 0x95b   : > { %v4266_v62 = vpop.permute.xlu0 %4265 }
 0x95c   : > { %6836 = vmatprep.subr.bf16.mxu0 %v4266_v62 }
 0x95e   : > { %6837 = vmatpush3.bf16.msra.mxu0 %v4266_v62 }
 0x95f   : > { %6838 = vmatprep.subr.bf16.mxu0 %v4268_v25  ;;  %v4456_v20 = vpop.permute.xlu0 %4455 }
 0x962   : > { %6839 = vmatpush3.bf16.msra.mxu0 %v4268_v25  ;;  %v4458_v40 = vpop.permute.xlu1 %4457 }
 0x963   : > { %6856 = vmatprep.subr.bf16.mxu0 %v4456_v20 }
 0x965   : > { %6841 = vmatmul.mubr.bf16.vlgmr.msra.gmra.mrb[32].mxu0 %v7625_v3 }
 0x966   : > { %6857 = vmatpush3.bf16.msra.mxu0 %v4456_v20  ;;  %6844 = vmatprep.mubr.bf16.mxu0 %v7626_v6  ;;  %v4460_v12 = vpop.permute.xlu0 %4459 }
 0x967   : > { %6858 = vmatprep.subr.bf16.mxu0 %v4458_v40 }
 0x96a   : > { %6859 = vmatpush3.bf16.msra.mxu0 %v4458_v40  ;;  %v4462_v33 = vpop.permute.xlu1 %4461 }
 0x96b   : > { %6860 = vmatprep.subr.bf16.mxu0 %v4460_v12 }
 0x96d   : > { %6845 = vmatmul.mubr.bf16.gmra.mrb[36].mxu0 %v7627_v35 }
 0x96e   : > { %6861 = vmatpush3.bf16.msra.mxu0 %v4460_v12  ;;  %6848 = vmatprep.mubr.bf16.mxu0 %v7628_v55  ;;  %v4464_v38 = vpop.permute.xlu0 %4463 }
 0x96f   : > { %6862 = vmatprep.subr.bf16.mxu0 %v4462_v33 }
 0x972   : > { %6863 = vmatpush3.bf16.msra.mxu0 %v4462_v33  ;;  %v4466_v50 = vpop.permute.xlu1 %4465 }
 0x973   : > { %6864 = vmatprep.subr.bf16.mxu0 %v4464_v38 }
 0x975   : > { %6849 = vmatmul.mubr.bf16.gmra.mrb[40].mxu0 %v7629_v44 }
 0x976   : > { %6865 = vmatpush3.bf16.msra.mxu0 %v4464_v38  ;;  %6852 = vmatprep.mubr.bf16.mxu0 %v7630_v19  ;;  %v4468_v53 = vpop.permute.xlu0 %4467 }
 0x977   : > { %6866 = vmatprep.subr.bf16.mxu0 %v4466_v50 }
 0x97a   : > { %6867 = vmatpush3.bf16.msra.mxu0 %v4466_v50  ;;  %v4470_v16 = vpop.permute.xlu1 %4469 }
 0x97b   : > { %6868 = vmatprep.subr.bf16.mxu0 %v4468_v53 }
 0x97d   : > { %6853 = vmatmul.mubr.bf16.gmra.mrb[44].mxu0 %v7631_v48 }
 0x97e   : > { %6869 = vmatpush3.bf16.msra.mxu0 %v4468_v53  ;;  %6872 = vmatprep.mubr.bf16.mxu0 %v7632_v5 }
 0x97f   : > { %6870 = vmatprep.subr.bf16.mxu0 %v4470_v16 }
 0x982   : > { %6871 = vmatpush3.bf16.msra.mxu0 %v4470_v16 }
 0x985   : > { %6873 = vmatmul.mubr.bf16.vlgmr.msra.gmra.mrb[32].mxu0 %v7633_v0 }
 0x986   : > { %6876 = vmatprep.mubr.bf16.mxu0 %v7634_v37 }
 0x987   : > { %v4612_v17 = vpop.permute.xlu0 %4611 }
 0x98b   : > { %v4617_v31 = vpop.permute.xlu1 %4616  ;;  %v4725_v7 = vpop.permute.xlu0 %4724 }
 0x98d   : > { %6877 = vmatmul.mubr.bf16.gmra.mrb[36].mxu0 %v7635_v8 }
 0x98e   : > { %6880 = vmatprep.mubr.bf16.mxu0 %v7636_v23 }
 0x98f   : > { %v4730_v24 = vpop.permute.xlu1 %4729  ;;  %v4622_v30 = vpop.permute.xlu0 %4621 }
 0x993   : > { %v4627_v14 = vpop.permute.xlu1 %4626  ;;  %v4735_v58 = vpop.permute.xlu0 %4734 }
 0x995   : > { %6881 = vmatmul.mubr.bf16.gmra.mrb[40].mxu0 %v7637_v26 }
 0x996   : > { %6884 = vmatprep.mubr.bf16.mxu0 %v7638_v63 }
 0x997   : > { %v4740_v51 = vpop.permute.xlu1 %4739  ;;  %v4632_v49 = vpop.permute.xlu0 %4631 }
 0x99b   : > { %v4637_v42 = vpop.permute.xlu1 %4636  ;;  %v4745_v39 = vpop.permute.xlu0 %4744 }
 0x99d   : > { %6885 = vmatmul.mubr.bf16.gmra.mrb[44].mxu0 %v7639_v21 }
 0x99f   : > { %v4750_v22 = vpop.permute.xlu1 %4749  ;;  %v4642_v47 = vpop.permute.xlu0 %4641 }
 0x9a3   : > { %v4647_v56 = vpop.permute.xlu1 %4646  ;;  %v4755_v61 = vpop.permute.xlu0 %4754 }
 0x9a7   : > { %v4760_v60 = vpop.permute.xlu1 %4759  ;;  %v4652_v41 = vpop.permute.xlu0 %4651 }
 0x9ab   : > { %v4657_v18 = vpop.permute.xlu1 %4656  ;;  %v4765_v27 = vpop.permute.xlu0 %4764 }
 0x9af   : > { %v4770_v62 = vpop.permute.xlu1 %4769  ;;  %v4662_v25 = vpop.permute.xlu0 %4661 }
 0x9b3   : > { %v4667_v3 = vpop.permute.xlu1 %4666  ;;  %v4775_v35 = vpop.permute.xlu0 %4774 }
 0x9b7   : > { %v4780_v19 = vpop.permute.xlu1 %4779  ;;  %v4672_v37 = vpop.permute.xlu0 %4671 }
 0xa58   : > { %v6874_v20 = vpop.f32.mrb[32].mxu0 }
 0xa59   : > { %v4691_v6 = vmul.f32 %v6874_v20, %v4622_v30  ;;  %v4513_v40 = vpop.f32.mrb[33].mxu0  ;;  %v4677_v20 = vpop.permute.xlu1 %4676 }
 0xa5a   : > { %v4689_v12 = vmul.f32 %v4612_v17, %v4513_v40  ;;  %v6875_v55 = vpop.f32.mrb[34].mxu0 }
 0xa5b   : > { %v4804_v33 = vadd.f32 %v4735_v58, %v4691_v6  ;;  %v4692_v44 = vmul.f32 %v6875_v55, %v4627_v14  ;;  %v4516_v38 = vpop.f32.mrb[35].mxu0 }
 0xa5c   : > { %v4802_v50 = vadd.f32 %v4725_v7, %v4689_v12  ;;  %v4690_v48 = vmul.f32 %v4617_v31, %v4516_v38 }
 0xa5d   : > { %v4805_v53 = vadd.f32 %v4740_v51, %v4692_v44  ;;  %v4820_v16 = vmax.f32 %v4804_v33, 0.0  ;;  %v4785_v51 = vpop.permute.xlu0 %4784 }
 0xa5e   : > { %v4803_v5 = vadd.f32 %v4730_v24, %v4690_v48  ;;  %v4818_v8 = vmax.f32 %v4802_v50, 0.0 }
 0xa5f   : > { %v4821_v0 = vmax.f32 %v4805_v53, 0.0 }
 0xa60   : > { %v4819_v23 = vmax.f32 %v4803_v5, 0.0  ;;  %v6878_v26 = vpop.f32.mrb[36].mxu0 }
 0xa61   : > { %v7525_v63 = vpack.i.bf16 %v4821_v0, %v4820_v16  ;;  %v4695_v21 = vmul.f32 %v6878_v26, %v4642_v47  ;;  %v4529_v30 = vpop.f32.mrb[37].mxu0  ;;  %v4790_v47 = vpop.permute.xlu1 %4789 }
 0xa62   : > { %v7520_v17 = vpack.i.bf16 %v4819_v23, %v4818_v8  ;;  %v4693_v40 = vmul.f32 %v4632_v49, %v4529_v30  ;;  %v6879_v58 = vpop.f32.mrb[38].mxu0 }
 0xa63   : > { %v4808_v14 = vadd.f32 %v4755_v61, %v4695_v21  ;;  %v4696_v6 = vmul.f32 %v6879_v58, %v4647_v56  ;;  %v4532_v55 = vpop.f32.mrb[39].mxu0  ;;  %7526 = vrot.lane.b32.xlu1 %v7525_v63, %s8332_s22 }
 0xa64   : > { %v4806_v31 = vadd.f32 %v4745_v39, %v4693_v40  ;;  %v4694_v7 = vmul.f32 %v4637_v42, %v4532_v55  ;;  %7521 = vrot.lane.b32.xlu0 %v7520_v17, %s8332_s22 }
 0xa65   : > { %v4809_v24 = vadd.f32 %v4760_v60, %v4696_v6  ;;  %v4824_v33 = vmax.f32 %v4808_v14, 0.0  ;;  %v4682_v60 = vpop.permute.xlu0 %4681  ;;  %v4687_v26 = vpop.permute.xlu1 %4686 }
 0xa66   : > { %v4807_v12 = vadd.f32 %v4750_v22, %v4694_v7  ;;  %v4822_v38 = vmax.f32 %v4806_v31, 0.0 }
 0xa67   : > { %v4825_v44 = vmax.f32 %v4809_v24, 0.0 }
 0xa68   : > { %v4823_v50 = vmax.f32 %v4807_v12, 0.0  ;;  %v6882_v48 = vpop.f32.mrb[40].mxu0 }
 0xa69   : > { %v7535_v49 = vpack.i.bf16 %v4825_v44, %v4824_v33  ;;  %v4699_v53 = vmul.f32 %v6882_v48, %v4662_v25  ;;  %v4545_v61 = vpop.f32.mrb[41].mxu0  ;;  %v7642_v48 = vld [vmem:[#allocation19 + $0x4] ss:$8 sps:$4 sm:$0xff]  }
 0xa6a   : > { %v7530_v56 = vpack.i.bf16 %v4823_v50, %v4822_v38  ;;  %v4697_v5 = vmul.f32 %v4652_v41, %v4545_v61  ;;  %v6883_v16 = vpop.f32.mrb[42].mxu0  ;;  %5042 = vmatprep.mubr.bf16.mxu1 %v7642_v48  ;;  %v5107_v61 = vld [vmem:[#allocation20] sm:$0xff] }
 0xa6b   : > { %v4812_v0 = vadd.f32 %v4775_v35, %v4699_v53  ;;  %v4700_v39 = vmul.f32 %v6883_v16, %v4667_v3  ;;  %v4548_v42 = vpop.f32.mrb[43].mxu0  ;;  %7536 = vrot.lane.b32.xlu1 %v7535_v49, %s8332_s22  ;;  %v4795_v3 = vpop.permute.xlu0 %4794  ;;  %v5108_v53 = vld [vmem:[#allocation20 + $0x8] sm:$0xff]  ;;  %v5221_v16 = vld [vmem:[#allocation22 + $0x10] sm:$0xff]  ;;  %v5524_v48 = vld [vmem:[#allocation25 + $0x40] sm:$0xff] }
 0xa6c   : > { %v4810_v8 = vadd.f32 %v4765_v27, %v4697_v5  ;;  %v4698_v22 = vmul.f32 %v4657_v18, %v4548_v42  ;;  %7531 = vrot.lane.b32.xlu0 %v7530_v56, %s8332_s22  ;;  %v5109_v56 = vld [vmem:[#allocation20 + $0x10] sm:$0xff]  ;;  %v5222_v5 = vld [vmem:[#allocation22 + $0x18] sm:$0xff]  ;;  %v5224_v42 = vld [vmem:[#allocation22 + $0x28] sm:$0xff] }
 0xa6d   : > { %v4813_v23 = vadd.f32 %v4780_v19, %v4700_v39  ;;  %v4828_v21 = vmax.f32 %v4812_v0, 0.0  ;;  %v4800_v19 = vpop.permute.xlu1 %4799  ;;  %v5112_v0 = vld [vmem:[#allocation20 + $0x28] sm:$0xff]  ;;  %v5111_v39 = vld [vmem:[#allocation20 + $0x20] sm:$0xff] }
 0xa6e   : > { %v4811_v63 = vadd.f32 %v4770_v62, %v4698_v22  ;;  %v4826_v25 = vmax.f32 %v4810_v8, 0.0  ;;  %v5114_v8 = vld [vmem:[#allocation20 + $0x38] sm:$0xff]  ;;  %v5113_v22 = vld [vmem:[#allocation20 + $0x30] sm:$0xff] }
 0xa6f   : > { %v4829_v30 = vmax.f32 %v4813_v23, 0.0  ;;  %v5226_v23 = vld [vmem:[#allocation22 + $0x38] sm:$0xff] }
 0xa70   : > { %v4827_v17 = vmax.f32 %v4811_v63, 0.0  ;;  %v6886_v40 = vpop.f32.mrb[44].mxu0  ;;  %v5116_v63 = vld [vmem:[#allocation20 + $0x48] sm:$0xff] }
 0xa71   : > { %v7545_v41 = vpack.i.bf16 %v4829_v30, %v4828_v21  ;;  %v4703_v58 = vmul.f32 %v6886_v40, %v4682_v60  ;;  %v4561_v35 = vpop.f32.mrb[45].mxu0  ;;  %v5223_v60 = vld [vmem:[#allocation22 + $0x20] sm:$0xff]  ;;  %v5228_v30 = vld [vmem:[#allocation22 + $0x48] sm:$0xff]  ;;  %v5117_v40 = vld [vmem:[#allocation20 + $0x50] sm:$0xff] }
 0xa72   : > { %v7540_v14 = vpack.i.bf16 %v4827_v17, %v4826_v25  ;;  %v4701_v6 = vmul.f32 %v4672_v37, %v4561_v35  ;;  %v6887_v55 = vpop.f32.mrb[46].mxu0  ;;  %v5115_v21 = vld [vmem:[#allocation20 + $0x40] sm:$0xff]  ;;  %v5118_v17 = vld [vmem:[#allocation20 + $0x58] sm:$0xff]  ;;  %v5120_v35 = vld [vmem:[#allocation20 + $0x68] sm:$0xff] }
 0xa73   : > { %v4816_v31 = vadd.f32 %v4795_v3, %v4703_v58  ;;  %v4704_v27 = vmul.f32 %v6887_v55, %v4687_v26  ;;  %v4564_v18 = vpop.f32.mrb[47].mxu0  ;;  %7546 = vrot.lane.b32.xlu1 %v7545_v41, %s8332_s22  ;;  %v5225_v26 = vld [vmem:[#allocation22 + $0x30] sm:$0xff]  ;;  %v5227_v25 = vld [vmem:[#allocation22 + $0x40] sm:$0xff]  ;;  %v5230_v41 = vld [vmem:[#allocation22 + $0x58] sm:$0xff] }
 0xa74   : > { %v4814_v7 = vadd.f32 %v4785_v51, %v4701_v6  ;;  %v4702_v62 = vmul.f32 %v4677_v20, %v4564_v18  ;;  %7541 = vrot.lane.b32.xlu0 %v7540_v14, %s8332_s22  ;;  %v5220_v20 = vld [vmem:[#allocation22 + $0x8] sm:$0xff]  ;;  %v5219_v51 = vld [vmem:[#allocation22] sm:$0xff]  ;;  %v5229_v58 = vld [vmem:[#allocation22 + $0x50] sm:$0xff] }
 0xa75   : > { %v4817_v24 = vadd.f32 %v4800_v19, %v4704_v27  ;;  %v4832_v33 = vmax.f32 %v4816_v31, 0.0  ;;  %v5119_v3 = vld [vmem:[#allocation20 + $0x60] sm:$0xff]  ;;  %v5232_v14 = vld [vmem:[#allocation22 + $0x68] sm:$0xff]  ;;  %v5122_v55 = vld [vmem:[#allocation20 + $0x78] sm:$0xff] }
 0xa76   : > { %v4815_v12 = vadd.f32 %v4790_v47, %v4702_v62  ;;  %v4830_v38 = vmax.f32 %v4814_v7, 0.0  ;;  %v5110_v47 = vld [vmem:[#allocation20 + $0x18] sm:$0xff]  ;;  %v5231_v6 = vld [vmem:[#allocation22 + $0x60] sm:$0xff]  ;;  %v5121_v31 = vld [vmem:[#allocation20 + $0x70] sm:$0xff] }
 0xa77   : > { %v4833_v44 = vmax.f32 %v4817_v24, 0.0  ;;  %v5234_v27 = vld [vmem:[#allocation22 + $0x78] sm:$0xff]  ;;  %v5233_v18 = vld [vmem:[#allocation22 + $0x70] sm:$0xff]  ;;  %v5517_v19 = vld [vmem:[#allocation25 + $0x8] sm:$0xff] }
 0xa78   : > { %v4831_v50 = vmax.f32 %v4815_v12, 0.0  ;;  %v5516_v7 = vld [vmem:[#allocation25] sm:$0xff]  ;;  %v5519_v62 = vld [vmem:[#allocation25 + $0x18] sm:$0xff]  ;;  %v5518_v24 = vld [vmem:[#allocation25 + $0x10] sm:$0xff] }
 0xa79   : > { %v7555_v49 = vpack.i.bf16 %v4833_v44, %v4832_v33  ;;  %v5521_v12 = vld [vmem:[#allocation25 + $0x28] sm:$0xff]  ;;  %v5520_v33 = vld [vmem:[#allocation25 + $0x20] sm:$0xff]  ;;  %v5523_v44 = vld [vmem:[#allocation25 + $0x38] sm:$0xff] }
 0xa7a   : > { %v7550_v37 = vpack.i.bf16 %v4831_v50, %v4830_v38  ;;  %v5522_v38 = vld [vmem:[#allocation25 + $0x30] sm:$0xff]  ;;  %v5525_v50 = vld [vmem:[#allocation25 + $0x48] sm:$0xff] }
 0xa7b   : > { %7556 = vrot.lane.b32.xlu1 %v7555_v49, %s8332_s22  ;;  %v5527_v49 = vld [vmem:[#allocation25 + $0x58] sm:$0xff] }
 0xa7c   : > { %7551 = vrot.lane.b32.xlu0 %v7550_v37, %s8332_s22  ;;  %v5526_v37 = vld [vmem:[#allocation25 + $0x50] sm:$0xff]  ;;  %s8194_s22 = scalar_lea.vmem %s8193_s30, 4096 }
 0xa7d   : > { %p8196_p13 = scmp.lt.s32.totalorder %s8194_s22, %s8188_s28 }
 0xa7f   : > { %5130 = vperm.xlu1 %7239, %v5108_v53   ;;  %v5529_v53 = vld [vmem:[#allocation25 + $0x68] sm:$0xff]  ;;  %p8197_p4 = por %p8196_p13, %p8195_p2 }
 0xa80   : > { %5125 = vperm.xlu0 %7238, %v5107_v61  }
 0xa81   : > { %p8198_p9 = pnand %p8197_p4, %p8191_p6 }
 0xa83   : > { %5242 = vperm.xlu1 %7239, %v5220_v20   ;;  %v5528_v20 = vld [vmem:[#allocation25 + $0x60] sm:$0xff] }
 0xa84   : > { %5237 = vperm.xlu0 %7238, %v5219_v51  }
 0xa87   : > { %5140 = vperm.xlu1 %7239, %v5110_v47  }
 0xa88   : > { %5135 = vperm.xlu0 %7238, %v5109_v56  }
 0xa8b   : > { %5252 = vperm.xlu1 %7239, %v5222_v5  }
 0xa8c   : > { %5247 = vperm.xlu0 %7238, %v5221_v16  }
 0xa8f   : > { %5150 = vperm.xlu1 %7239, %v5112_v0   ;;  %v5531_v0 = vld [vmem:[#allocation25 + $0x78] sm:$0xff] }
 0xa90   : > { %5145 = vperm.xlu0 %7238, %v5111_v39  }
 0xa93   : > { %5262 = vperm.xlu1 %7239, %v5224_v42   ;;  %v5530_v42 = vld [vmem:[#allocation25 + $0x70] sm:$0xff] }
 0xa94   : > { %5257 = vperm.xlu0 %7238, %v5223_v60  }
 0xa97   : > { %5160 = vperm.xlu1 %7239, %v5114_v8   ;;  %v10132_v8 = vpack.c.bf16 %v9111_v36, %v9094_v29  ;;  %v10134_v36 = vpack.c.bf16 %v9156_v52, %v9138_v15  ;;  %v10136_v52 = vpack.c.bf16 %v9197_v1, %v9182_v11  ;;  %v10138_v1 = vpack.c.bf16 %v9227_v57, %v9220_v45  ;;  %v7646_v45 = vld [vmem:[#allocation19 + $0x24] ss:$8 sps:$4 sm:$0xff]   ;;  %v7648_v57 = vld [vmem:[#allocation19 + $0x20] ss:$8 sps:$4 sm:$0xff]  }
 0xa98   : > { %5155 = vperm.xlu0 %7238, %v5113_v22   ;;  %v5629_v22 = vld [vmem:[#allocation26 + $0x8] sm:$0xff] }
 0xa9b   : > { %5272 = vperm.xlu1 %7239, %v5226_v23  }
 0xa9c   : > { %5267 = vperm.xlu0 %7238, %v5225_v26   ;;  %v5628_v26 = vld [vmem:[#allocation26] sm:$0xff] }
 0xa9f   : > { %5170 = vperm.xlu1 %7239, %v5116_v63  }
 0xaa0   : > { %5165 = vperm.xlu0 %7238, %v5115_v21  }
 0xaa3   : > { %5282 = vperm.xlu1 %7239, %v5228_v30  }
 0xaa4   : > { %5277 = vperm.xlu0 %7238, %v5227_v25  }
 0xaa7   : > { %5180 = vperm.xlu1 %7239, %v5118_v17  }
 0xaa8   : > { %5175 = vperm.xlu0 %7238, %v5117_v40   ;;  %v10133_v40 = vpack.c.bf16 %v9102_v59, %v9084_v4 }
 0xaab   : > { %5292 = vperm.xlu1 %7239, %v5230_v41   ;;  %v5631_v41 = vld [vmem:[#allocation26 + $0x18] sm:$0xff] }
 0xaac   : > { %5287 = vperm.xlu0 %7238, %v5229_v58  }
 0xaaf   : > { %5190 = vperm.xlu1 %7239, %v5120_v35   ;;  %v5630_v35 = vld [vmem:[#allocation26 + $0x10] sm:$0xff] }
 0xab0   : > { %5185 = vperm.xlu0 %7238, %v5119_v3   ;;  %v5633_v3 = vld [vmem:[#allocation26 + $0x28] sm:$0xff] }
 0xab3   : > { %5302 = vperm.xlu1 %7239, %v5232_v14  }
 0xab4   : > { %5297 = vperm.xlu0 %7238, %v5231_v6   ;;  %v5632_v6 = vld [vmem:[#allocation26 + $0x20] sm:$0xff] }
 0xab7   : > { %5200 = vperm.xlu1 %7239, %v5122_v55  }
 0xab8   : > { %5195 = vperm.xlu0 %7238, %v5121_v31  }
 0xabb   : > { %5312 = vperm.xlu1 %7239, %v5234_v27  }
 0xabc   : > { %5307 = vperm.xlu0 %7238, %v5233_v18   ;;  %v10135_v18 = vpack.c.bf16 %v9147_v46, %v9121_v28 }
 0xabf   : > { %5539 = vperm.xlu1 %7239, %v5517_v19   ;;  %v5635_v19 = vld [vmem:[#allocation26 + $0x38] sm:$0xff] }
 0xac0   : > { %5534 = vperm.xlu0 %7238, %v5516_v7  }
 0xac3   : > { %5549 = vperm.xlu1 %7239, %v5519_v62   ;;  %v5634_v62 = vld [vmem:[#allocation26 + $0x30] sm:$0xff] }
 0xac4   : > { %5544 = vperm.xlu0 %7238, %v5518_v24   ;;  %v5637_v24 = vld [vmem:[#allocation26 + $0x48] sm:$0xff] }
 0xac7   : > { %5559 = vperm.xlu1 %7239, %v5521_v12  }
 0xac8   : > { %5554 = vperm.xlu0 %7238, %v5520_v33   ;;  %v5636_v33 = vld [vmem:[#allocation26 + $0x40] sm:$0xff] }
 0xacb   : > { %5569 = vperm.xlu1 %7239, %v5523_v44  }
 0xacc   : > { %5564 = vperm.xlu0 %7238, %v5522_v38  }
 0xacf   : > { %5579 = vperm.xlu1 %7239, %v5525_v50  }
 0xad0   : > { %5574 = vperm.xlu0 %7238, %v5524_v48   ;;  %v10137_v48 = vpack.c.bf16 %v9185_v9, %v9166_v13  ;;  %v10139_v13 = vpack.c.bf16 %v9216_v43, %v9210_v32  ;;  %v5643_v9 = vld [vmem:[#allocation26 + $0x78] sm:$0xff]  ;;  %v7654_v32 = vld [vmem:[#allocation19 + $0x40] ss:$8 sps:$4 sm:$0xff]  }
 0xad1   : > { %v7655_v43 = vld [vmem:[#allocation19 + $0x54] ss:$8 sps:$4 sm:$0xff]  }
 0xad3   : > { %5589 = vperm.xlu1 %7239, %v5527_v49   ;;  %v5639_v49 = vld [vmem:[#allocation26 + $0x58] sm:$0xff] }
 0xad4   : > { %5584 = vperm.xlu0 %7238, %v5526_v37  }
 0xad5   : > { %v7527_v61 = vpop.permute.xlu1 %7526 }
 0xad6   : > { %v7522_v51 = vpop.permute.xlu0 %7521  ;;  %v7529_v47 = vunpack.i.h.bf16 %v7527_v61  ;;  %v7528_v56 = vunpack.i.l.bf16 %v7527_v61  ;;  %v5641_v61 = vld [vmem:[#allocation26 + $0x68] sm:$0xff] }
 0xad7   : > { %v7524_v5 = vunpack.i.h.bf16 %v7522_v51  ;;  %v7523_v16 = vunpack.i.l.bf16 %v7522_v51  ;;  %5599 = vperm.xlu1 %7239, %v5529_v53   ;;  %v5638_v53 = vld [vmem:[#allocation26 + $0x50] sm:$0xff]  ;;  %v7640_v51 = vld [vmem:[#allocation19] ss:$8 sps:$4 sm:$0xff]  }
 0xad8   : > { %5594 = vperm.xlu0 %7238, %v5528_v20   ;;  %v4907_v60 = vpack.c.bf16 %v7529_v47, %v7528_v56  ;;  %v5640_v20 = vld [vmem:[#allocation26 + $0x60] sm:$0xff]  ;;  %v7643_v47 = vld [vmem:[#allocation19 + $0x14] ss:$8 sps:$4 sm:$0xff]  }
 0xad9   : > { %v4906_v39 = vpack.c.bf16 %v7524_v5, %v7523_v16  ;;  %v5642_v56 = vld [vmem:[#allocation26 + $0x70] sm:$0xff] }
 0xada   : > { %v7645_v5 = vld [vmem:[#allocation19 + $0x10] ss:$8 sps:$4 sm:$0xff]   ;;  %v7649_v16 = vld [vmem:[#allocation19 + $0x34] ss:$8 sps:$4 sm:$0xff]  }
 0xadb   : > { %5609 = vperm.xlu1 %7239, %v5531_v0   ;;  %6456 = vmatprep.subr.bf16.mxu1 %v4906_v39  ;;  %v7651_v0 = vld [vmem:[#allocation19 + $0x30] ss:$8 sps:$4 sm:$0xff]   ;;  %v7652_v39 = vld [vmem:[#allocation19 + $0x44] ss:$8 sps:$4 sm:$0xff]  }
 0xadc   : > { %5604 = vperm.xlu0 %7238, %v5530_v42   ;;  %6457 = vmatpush3.bf16.msra.mxu1 %v10132_v8  ;;  %v7657_v42 = vld [vmem:[#allocation19 + $0x50] ss:$8 sps:$4 sm:$0xff]   ;;  %v7660_v8 = vld [vmem:[#allocation19 + $0x60] ss:$8 sps:$4 sm:$0xff]  }
 0xadd   : > { %v7537_v23 = vpop.permute.xlu1 %7536  ;;  %6458 = vmatprep.subr.bf16.mxu1 %v4907_v60  ;;  %v7658_v60 = vld [vmem:[#allocation19 + $0x64] ss:$8 sps:$4 sm:$0xff]  }
 0xade   : > { %v7532_v63 = vpop.permute.xlu0 %7531  ;;  %v7539_v21 = vunpack.i.h.bf16 %v7537_v23  ;;  %v7538_v30 = vunpack.i.l.bf16 %v7537_v23  ;;  %v7663_v23 = vld [vmem:[#allocation19 + $0x70] ss:$8 sps:$4 sm:$0xff]  }
 0xadf   : > { %v7534_v25 = vunpack.i.h.bf16 %v7532_v63  ;;  %v7533_v17 = vunpack.i.l.bf16 %v7532_v63  ;;  %5651 = vperm.xlu1 %7239, %v5629_v22   ;;  %v7661_v22 = vld [vmem:[#allocation19 + $0x74] ss:$8 sps:$4 sm:$0xff]  }
 0xae0   : > { %5646 = vperm.xlu0 %7238, %v5628_v26   ;;  %6459 = vmatpush3.bf16.msra.mxu1 %v10133_v40  ;;  %v4909_v29 = vpack.c.bf16 %v7539_v21, %v7538_v30  ;;  %v7664_v26 = vld [vmem:[#allocation23] sm:$0xff]  }
 0xae1   : > { %v4908_v58 = vpack.c.bf16 %v7534_v25, %v7533_v17 }
 0xae3   : > { %5661 = vperm.xlu1 %7239, %v5631_v41   ;;  %6460 = vmatprep.subr.bf16.mxu1 %v4908_v58 }
 0xae4   : > { %5656 = vperm.xlu0 %7238, %v5630_v35   ;;  %6461 = vmatpush3.bf16.msra.mxu1 %v10134_v36 }
 0xae5   : > { %v7547_v14 = vpop.permute.xlu1 %7546  ;;  %6462 = vmatprep.subr.bf16.mxu1 %v4909_v29 }
 0xae6   : > { %v7542_v55 = vpop.permute.xlu0 %7541  ;;  %v7549_v31 = vunpack.i.h.bf16 %v7547_v14  ;;  %v7548_v27 = vunpack.i.l.bf16 %v7547_v14 }
 0xae7   : > { %v7544_v4 = vunpack.i.h.bf16 %v7542_v55  ;;  %v7543_v59 = vunpack.i.l.bf16 %v7542_v55  ;;  %5671 = vperm.xlu1 %7239, %v5633_v3  }
 0xae8   : > { %5666 = vperm.xlu0 %7238, %v5632_v6   ;;  %6463 = vmatpush3.bf16.msra.mxu1 %v10135_v18  ;;  %v4911_v15 = vpack.c.bf16 %v7549_v31, %v7548_v27 }
 0xae9   : > { %v4910_v7 = vpack.c.bf16 %v7544_v4, %v7543_v59 }
 0xaeb   : > { %5681 = vperm.xlu1 %7239, %v5635_v19   ;;  %6464 = vmatprep.subr.bf16.mxu1 %v4910_v7 }
 0xaec   : > { %5676 = vperm.xlu0 %7238, %v5634_v62   ;;  %6465 = vmatpush3.bf16.msra.mxu1 %v10136_v52 }
 0xaed   : > { %v7557_v12 = vpop.permute.xlu1 %7556  ;;  %6466 = vmatprep.subr.bf16.mxu1 %v4911_v15 }
 0xaee   : > { %v7552_v44 = vpop.permute.xlu0 %7551  ;;  %v7559_v38 = vunpack.i.h.bf16 %v7557_v12  ;;  %v7558_v50 = vunpack.i.l.bf16 %v7557_v12 }
 0xaef   : > { %v7554_v28 = vunpack.i.h.bf16 %v7552_v44  ;;  %v7553_v46 = vunpack.i.l.bf16 %v7552_v44  ;;  %5691 = vperm.xlu1 %7239, %v5637_v24  }
 0xaf0   : > { %5686 = vperm.xlu0 %7238, %v5636_v33   ;;  %6467 = vmatpush3.bf16.msra.mxu1 %v10137_v48  ;;  %v4913_v11 = vpack.c.bf16 %v7559_v38, %v7558_v50 }
 0xaf1   : > { %v4912_v37 = vpack.c.bf16 %v7554_v28, %v7553_v46 }
 0xaf3   : > { %5701 = vperm.xlu1 %7239, %v5639_v49   ;;  %6468 = vmatprep.subr.bf16.mxu1 %v4912_v37 }
 0xaf4   : > { %5696 = vperm.xlu0 %7238, %v5638_v53   ;;  %6469 = vmatpush3.bf16.msra.mxu1 %v10138_v1 }
 0xaf5   : > { %6470 = vmatprep.subr.bf16.mxu1 %v4913_v11 }
 0xaf7   : > { %5711 = vperm.xlu1 %7239, %v5641_v61  }
 0xaf8   : > { %5706 = vperm.xlu0 %7238, %v5640_v20   ;;  %6471 = vmatpush3.bf16.msra.mxu1 %v10139_v13 }
 0xafb   : > { %5721 = vperm.xlu1 %7239, %v5643_v9   ;;  %5043 = vmatmul.mubr.bf16.vlgmr.msra.gmra.mrb[32].mxu1 %v7640_v51 }
 0xafc   : > { %5716 = vperm.xlu0 %7238, %v5642_v56   ;;  %5050 = vmatprep.mubr.bf16.mxu1 %v7643_v47 }
 0xafe   : > { %v5131_v21 = vpop.permute.xlu1 %5130 }
 0xaff   : > { %v5126_v63 = vpop.permute.xlu0 %5125 }
 0xb02   : > { %v5243_v25 = vpop.permute.xlu1 %5242 }
 0xb03   : > { %5051 = vmatmul.mubr.bf16.gmra.mrb[36].mxu1 %v7645_v5  ;;  %v5238_v30 = vpop.permute.xlu0 %5237 }
 0xb04   : > { %5058 = vmatprep.mubr.bf16.mxu1 %v7646_v45 }
 0xb06   : > { %v5141_v40 = vpop.permute.xlu1 %5140 }
 0xb07   : > { %v5136_v17 = vpop.permute.xlu0 %5135 }
 0xb0a   : > { %v5253_v58 = vpop.permute.xlu1 %5252 }
 0xb0b   : > { %5059 = vmatmul.mubr.bf16.gmra.mrb[40].mxu1 %v7648_v57  ;;  %v5248_v41 = vpop.permute.xlu0 %5247 }
 0xb0c   : > { %5066 = vmatprep.mubr.bf16.mxu1 %v7649_v16 }
 0xb0e   : > { %v5151_v29 = vpop.permute.xlu1 %5150 }
 0xb0f   : > { %v5146_v35 = vpop.permute.xlu0 %5145 }
 0xb12   : > { %v5263_v31 = vpop.permute.xlu1 %5262 }
 0xb13   : > { %5067 = vmatmul.mubr.bf16.gmra.mrb[44].mxu1 %v7651_v0  ;;  %v5258_v3 = vpop.permute.xlu0 %5257 }
 0xb14   : > { %5074 = vmatprep.mubr.bf16.mxu1 %v7652_v39 }
 0xb16   : > { %v5161_v52 = vpop.permute.xlu1 %5160 }
 0xb17   : > { %v5156_v7 = vpop.permute.xlu0 %5155 }
 0xb1a   : > { %v5273_v11 = vpop.permute.xlu1 %5272 }
 0xb1b   : > { %5075 = vmatmul.mubr.bf16.gmra.mrb[48].mxu1 %v7654_v32  ;;  %v5268_v49 = vpop.permute.xlu0 %5267 }
 0xb1c   : > { %5082 = vmatprep.mubr.bf16.mxu1 %v7655_v43 }
 0xb1e   : > { %v5171_v0 = vpop.permute.xlu1 %5170 }
 0xb1f   : > { %v5166_v56 = vpop.permute.xlu0 %5165 }
 0xb23   : > { %5083 = vmatmul.mubr.bf16.gmra.mrb[52].mxu1 %v7657_v42 }
 0xb24   : > { %5090 = vmatprep.mubr.bf16.mxu1 %v7658_v60  ;;  %v5278_v60 = vpop.permute.xlu0 %5277 }
 0xb2b   : > { %5091 = vmatmul.mubr.bf16.gmra.mrb[56].mxu1 %v7660_v8 }
 0xb2c   : > { %5098 = vmatprep.mubr.bf16.mxu1 %v7661_v22 }
 0xb33   : > { %5099 = vmatmul.mubr.bf16.gmra.mrb[60].mxu1 %v7663_v23 }
 0xb34   : > { %6904 = vmatprep.mubr.bf16.mxu1 %v7664_v26 }
 0xbce   : > { %v6472_v36 = vpop.f32.mrb[32].mxu1 }
 0xbcf   : > { %v6473_v14 = vpop.f32.mrb[33].mxu1 }
 0xbd0   : > { %v6474_v6 = vadd.f32 %v6473_v14, %v6472_v36  ;;  %v6475_v55 = vpop.f32.mrb[34].mxu1 }
 0xbd1   : > { %v6476_v27 = vpop.f32.mrb[35].mxu1 }
 0xbd2   : > { %v5203_v4 = vmul.f32 %v6474_v6, %v5126_v63  ;;  %v6477_v59 = vadd.f32 %v6476_v27, %v6475_v55 }
 0xbd4   : > { %v5315_v18 = vadd.f32 %v5238_v30, %v5203_v4  ;;  %v5204_v19 = vmul.f32 %v6477_v59, %v5131_v21  ;;  %v5283_v21 = vpop.permute.xlu1 %5282 }
 0xbd6   : > { %v5316_v62 = vadd.f32 %v5243_v25, %v5204_v19  ;;  %v6478_v15 = vpop.f32.mrb[36].mxu1  ;;  %v5331_v12 = vmax.f32 %v5315_v18, 0.0 }
 0xbd7   : > { %v6479_v24 = vpop.f32.mrb[37].mxu1 }
 0xbd8   : > { %v5332_v33 = vmax.f32 %v5316_v62, 0.0  ;;  %v6480_v44 = vadd.f32 %v6479_v24, %v6478_v15  ;;  %v6481_v38 = vpop.f32.mrb[38].mxu1 }
 0xbd9   : > { %v6482_v50 = vpop.f32.mrb[39].mxu1 }
 0xbda   : > { %v5205_v28 = vmul.f32 %v6480_v44, %v5136_v17  ;;  %v6483_v46 = vadd.f32 %v6482_v50, %v6481_v38  ;;  %v5363_v48 = vpack.c.bf16 %v5332_v33, %v5331_v12 }
 0xbdc   : > { %v5317_v37 = vadd.f32 %v5248_v41, %v5205_v28  ;;  %v5206_v53 = vmul.f32 %v6483_v46, %v5141_v40  ;;  %6888 = vmatprep.subr.bf16.mxu1 %v5363_v48 }
 0xbdd   : > { %6889 = vmatpush3.bf16.msra.mxu1 %v5363_v48 }
 0xbde   : > { %v5318_v1 = vadd.f32 %v5253_v58, %v5206_v53  ;;  %v6484_v61 = vpop.f32.mrb[40].mxu1  ;;  %v5333_v51 = vmax.f32 %v5317_v37, 0.0 }
 0xbdf   : > { %v6485_v20 = vpop.f32.mrb[41].mxu1 }
 0xbe0   : > { %v5334_v13 = vmax.f32 %v5318_v1, 0.0  ;;  %v6486_v9 = vadd.f32 %v6485_v20, %v6484_v61  ;;  %v6487_v47 = vpop.f32.mrb[42].mxu1 }
 0xbe1   : > { %v6488_v5 = vpop.f32.mrb[43].mxu1 }
 0xbe2   : > { %v5207_v45 = vmul.f32 %v6486_v9, %v5146_v35  ;;  %v6489_v57 = vadd.f32 %v6488_v5, %v6487_v47  ;;  %v5364_v16 = vpack.c.bf16 %v5334_v13, %v5333_v51  ;;  %v5176_v35 = vpop.permute.xlu0 %5175 }
 0xbe4   : > { %v5319_v39 = vadd.f32 %v5258_v3, %v5207_v45  ;;  %v5208_v32 = vmul.f32 %v6489_v57, %v5151_v29  ;;  %6890 = vmatprep.subr.bf16.mxu1 %v5364_v16  ;;  %v5181_v3 = vpop.permute.xlu1 %5180 }
 0xbe5   : > { %6891 = vmatpush3.bf16.msra.mxu1 %v5364_v16 }
 0xbe6   : > { %v5320_v43 = vadd.f32 %v5263_v31, %v5208_v32  ;;  %v6490_v42 = vpop.f32.mrb[44].mxu1  ;;  %v5335_v22 = vmax.f32 %v5319_v39, 0.0 }
 0xbe7   : > { %v6491_v8 = vpop.f32.mrb[45].mxu1 }
 0xbe8   : > { %v5336_v23 = vmax.f32 %v5320_v43, 0.0  ;;  %v6492_v26 = vadd.f32 %v6491_v8, %v6490_v42  ;;  %v6493_v63 = vpop.f32.mrb[46].mxu1 }
 0xbe9   : > { %v6494_v30 = vpop.f32.mrb[47].mxu1 }
 0xbea   : > { %v5209_v25 = vmul.f32 %v6492_v26, %v5156_v7  ;;  %v6495_v17 = vadd.f32 %v6494_v30, %v6493_v63  ;;  %v5365_v40 = vpack.c.bf16 %v5336_v23, %v5335_v22  ;;  %v5288_v7 = vpop.permute.xlu0 %5287 }
 0xbec   : > { %v5321_v41 = vadd.f32 %v5268_v49, %v5209_v25  ;;  %v5210_v58 = vmul.f32 %v6495_v17, %v5161_v52  ;;  %6892 = vmatprep.subr.bf16.mxu1 %v5365_v40  ;;  %v5293_v52 = vpop.permute.xlu1 %5292 }
 0xbed   : > { %6893 = vmatpush3.bf16.msra.mxu1 %v5365_v40 }
 0xbee   : > { %v5322_v29 = vadd.f32 %v5273_v11, %v5210_v58  ;;  %v6496_v36 = vpop.f32.mrb[48].mxu1  ;;  %v5337_v6 = vmax.f32 %v5321_v41, 0.0  ;;  %v5186_v46 = vpop.permute.xlu0 %5185 }
 0xbef   : > { %v6497_v14 = vpop.f32.mrb[49].mxu1 }
 0xbf0   : > { %v5338_v55 = vmax.f32 %v5322_v29, 0.0  ;;  %v6498_v31 = vadd.f32 %v6497_v14, %v6496_v36  ;;  %v6499_v27 = vpop.f32.mrb[50].mxu1  ;;  %v5191_v11 = vpop.permute.xlu1 %5190 }
 0xbf1   : > { %v6500_v4 = vpop.f32.mrb[51].mxu1 }
 0xbf2   : > { %v5211_v59 = vmul.f32 %v6498_v31, %v5166_v56  ;;  %v6501_v18 = vadd.f32 %v6500_v4, %v6499_v27  ;;  %v5366_v19 = vpack.c.bf16 %v5338_v55, %v5337_v6  ;;  %v5298_v13 = vpop.permute.xlu0 %5297  ;;  %v7665_v27 = vld [vmem:[#allocation23 + $0x8] sm:$0xff]   ;;  %v7666_v4 = vld [vmem:[#allocation23 + $0x10] sm:$0xff]  }
 0xbf4   : > { %v5323_v62 = vadd.f32 %v5278_v60, %v5211_v59  ;;  %v5212_v15 = vmul.f32 %v6501_v18, %v5171_v0  ;;  %6894 = vmatprep.subr.bf16.mxu1 %v5366_v19  ;;  %v5303_v57 = vpop.permute.xlu1 %5302  ;;  %v7667_v59 = vld [vmem:[#allocation23 + $0x18] sm:$0xff]   ;;  %v7668_v18 = vld [vmem:[#allocation23 + $0x20] sm:$0xff]  }
 0xbf5   : > { %6895 = vmatpush3.bf16.msra.mxu1 %v5366_v19  ;;  %v7669_v19 = vld [vmem:[#allocation23 + $0x28] sm:$0xff]  }
 0xbf6   : > { %v5324_v24 = vadd.f32 %v5283_v21, %v5212_v15  ;;  %v6502_v12 = vpop.f32.mrb[52].mxu1  ;;  %v5339_v44 = vmax.f32 %v5323_v62, 0.0  ;;  %v5196_v60 = vpop.permute.xlu0 %5195  ;;  %v7671_v62 = vld [vmem:[#allocation23 + $0x38] sm:$0xff]  }
 0xbf7   : > { %v6503_v33 = vpop.f32.mrb[53].mxu1 }
 0xbf8   : > { %v5340_v38 = vmax.f32 %v5324_v24, 0.0  ;;  %v6504_v50 = vadd.f32 %v6503_v33, %v6502_v12  ;;  %v6505_v28 = vpop.f32.mrb[54].mxu1  ;;  %v5201_v23 = vpop.permute.xlu1 %5200 }
 0xbf9   : > { %v6506_v48 = vpop.f32.mrb[55].mxu1 }
 0xbfa   : > { %v5213_v49 = vmul.f32 %v6504_v50, %v5176_v35  ;;  %v6507_v37 = vadd.f32 %v6506_v48, %v6505_v28  ;;  %v5367_v53 = vpack.c.bf16 %v5340_v38, %v5339_v44  ;;  %v5308_v35 = vpop.permute.xlu0 %5307 }
 0xbfc   : > { %v5325_v1 = vadd.f32 %v5288_v7, %v5213_v49  ;;  %v5214_v61 = vmul.f32 %v6507_v37, %v5181_v3  ;;  %6896 = vmatprep.subr.bf16.mxu1 %v5367_v53  ;;  %v5313_v3 = vpop.permute.xlu1 %5312  ;;  %v7670_v7 = vld [vmem:[#allocation23 + $0x30] sm:$0xff]  }
 0xbfd   : > { %6897 = vmatpush3.bf16.msra.mxu1 %v5367_v53 }
 0xbfe   : > { %v5326_v20 = vadd.f32 %v5293_v52, %v5214_v61  ;;  %v6508_v51 = vpop.f32.mrb[56].mxu1  ;;  %v5341_v47 = vmax.f32 %v5325_v1, 0.0  ;;  %v5535_v15 = vpop.permute.xlu0 %5534 }
 0xbff   : > { %v6509_v9 = vpop.f32.mrb[57].mxu1 }
 0xc00   : > { %v5342_v56 = vmax.f32 %v5326_v20, 0.0  ;;  %v6510_v5 = vadd.f32 %v6509_v9, %v6508_v51  ;;  %v6511_v45 = vpop.f32.mrb[58].mxu1  ;;  %v5540_v52 = vpop.permute.xlu1 %5539 }
 0xc01   : > { %v6512_v16 = vpop.f32.mrb[59].mxu1 }
 0xc02   : > { %v5215_v0 = vmul.f32 %v6510_v5, %v5186_v46  ;;  %v6513_v39 = vadd.f32 %v6512_v16, %v6511_v45  ;;  %v5368_v32 = vpack.c.bf16 %v5342_v56, %v5341_v47  ;;  %v5545_v24 = vpop.permute.xlu0 %5544 }
 0xc04   : > { %v5327_v43 = vadd.f32 %v5298_v13, %v5215_v0  ;;  %v5216_v42 = vmul.f32 %v6513_v39, %v5191_v11  ;;  %6898 = vmatprep.subr.bf16.mxu1 %v5368_v32  ;;  %v5550_v12 = vpop.permute.xlu1 %5549 }
 0xc05   : > { %6899 = vmatpush3.bf16.msra.mxu1 %v5368_v32 }
 0xc06   : > { %v5328_v8 = vadd.f32 %v5303_v57, %v5216_v42  ;;  %v6514_v22 = vpop.f32.mrb[60].mxu1  ;;  %v5343_v63 = vmax.f32 %v5327_v43, 0.0  ;;  %v5555_v33 = vpop.permute.xlu0 %5554 }
 0xc07   : > { %v6515_v26 = vpop.f32.mrb[61].mxu1 }
 0xc08   : > { %v5344_v21 = vmax.f32 %v5328_v8, 0.0  ;;  %v6516_v30 = vadd.f32 %v6515_v26, %v6514_v22  ;;  %v6517_v25 = vpop.f32.mrb[62].mxu1  ;;  %v5560_v44 = vpop.permute.xlu1 %5559 }
 0xc09   : > { %v6518_v17 = vpop.f32.mrb[63].mxu1 }
 0xc0a   : > { %v5217_v40 = vmul.f32 %v6516_v30, %v5196_v60  ;;  %v6519_v41 = vadd.f32 %v6518_v17, %v6517_v25  ;;  %v5369_v58 = vpack.c.bf16 %v5344_v21, %v5343_v63  ;;  %v5565_v38 = vpop.permute.xlu0 %5564  ;;  %v10140_v21 = vunpack.c.l.bf16 %v8971_v10 }
 0xc0c   : > { %v5329_v29 = vadd.f32 %v5308_v35, %v5217_v40  ;;  %v5218_v36 = vmul.f32 %v6519_v41, %v5201_v23  ;;  %6900 = vmatprep.subr.bf16.mxu1 %v5369_v58  ;;  %v5570_v50 = vpop.permute.xlu1 %5569  ;;  %v10141_v40 = vunpack.c.l.bf16 %v8965_v2 }
 0xc0d   : > { %6901 = vmatpush3.bf16.msra.mxu1 %v5369_v58 }
 0xc0e   : > { %v5330_v14 = vadd.f32 %v5313_v3, %v5218_v36  ;;  %v5345_v6 = vmax.f32 %v5329_v29, 0.0  ;;  %v9840_v28 = vpop.permute.xlu0 %5574  ;;  %v10142_v29 = vunpack.c.h.bf16 %v8971_v10 }
 0xc10   : > { %v5346_v55 = vmax.f32 %v5330_v14, 0.0  ;;  %v9842_v46 = vpop.permute.xlu1 %5579 }
 0xc12   : > { %v5370_v31 = vpack.c.bf16 %v5346_v55, %v5345_v6  ;;  %v9844_v48 = vpop.permute.xlu0 %5584  ;;  %v10143_v55 = vunpack.c.h.bf16 %v8965_v2 }
 0xc14   : > { %6902 = vmatprep.subr.bf16.mxu1 %v5370_v31  ;;  %v9846_v49 = vpop.permute.xlu1 %5589 }
 0xc15   : > { %6903 = vmatpush3.bf16.msra.mxu1 %v5370_v31 }
 0xc16   : > { %v9848_v37 = vpop.permute.xlu0 %5594 }
 0xc18   : > { %6905 = vmatmul.mubr.bf16.vlgmr.msra.gmra.mrb[64].mxu1 %v7665_v27  ;;  %v9850_v53 = vpop.permute.xlu1 %5599 }
 0xc19   : > { %6908 = vmatprep.mubr.bf16.mxu1 %v7666_v4 }
 0xc1a   : > { %v9852_v11 = vpop.permute.xlu0 %5604 }
 0xc1c   : > { %v9854_v1 = vpop.permute.xlu1 %5609 }
 0xc1e   : > { %v5647_v61 = vpop.permute.xlu0 %5646 }
 0xc20   : > { %6909 = vmatmul.mubr.bf16.gmra.mrb[68].mxu1 %v7667_v59  ;;  %v5652_v20 = vpop.permute.xlu1 %5651 }
 0xc21   : > { %6912 = vmatprep.mubr.bf16.mxu1 %v7668_v18 }
 0xc22   : > { %v5657_v51 = vpop.permute.xlu0 %5656 }
 0xc24   : > { %v5662_v13 = vpop.permute.xlu1 %5661 }
 0xc26   : > { %v5667_v9 = vpop.permute.xlu0 %5666 }
 0xc28   : > { %6913 = vmatmul.mubr.bf16.gmra.mrb[72].mxu1 %v7669_v19  ;;  %v5672_v47 = vpop.permute.xlu1 %5671 }
 0xc29   : > { %6916 = vmatprep.mubr.bf16.mxu1 %v7670_v7 }
 0xc2a   : > { %v5677_v57 = vpop.permute.xlu0 %5676 }
 0xc2c   : > { %v5682_v42 = vpop.permute.xlu1 %5681 }
 0xc2e   : > { %v5687_v17 = vpop.permute.xlu0 %5686 }
 0xc30   : > { %6917 = vmatmul.mubr.bf16.gmra.mrb[76].mxu1 %v7671_v62  ;;  %v5692_v6 = vpop.permute.xlu1 %5691 }
 0xceb   : > { %v6906_v56 = vpop.f32.mrb[64].mxu1 }
 0xcec   : > { %v5614_v5 = vmul.f32 %v6906_v56, %v5545_v24  ;;  %v5453_v45 = vpop.f32.mrb[65].mxu1 }
 0xced   : > { %v5612_v16 = vmul.f32 %v5535_v15, %v5453_v45  ;;  %v6907_v0 = vpop.f32.mrb[66].mxu1 }
 0xcee   : > { %v5726_v39 = vadd.f32 %v5657_v51, %v5614_v5  ;;  %v5615_v32 = vmul.f32 %v6907_v0, %v5550_v12  ;;  %v5456_v43 = vpop.f32.mrb[67].mxu1  ;;  %v10144_v12 = vunpack.c.l.bf16 %v8995_v54 }
 0xcef   : > { %v5724_v60 = vadd.f32 %v5647_v61, %v5612_v16  ;;  %v5613_v8 = vmul.f32 %v5540_v52, %v5456_v43  ;;  %v5697_v52 = vpop.permute.xlu0 %5696  ;;  %v5702_v61 = vpop.permute.xlu1 %5701 }
 0xcf0   : > { %v5742_v22 = vmax.f32 %v5726_v39, 0.0  ;;  %v5727_v23 = vadd.f32 %v5662_v13, %v5615_v32 }
 0xcf1   : > { %v5740_v26 = vmax.f32 %v5724_v60, 0.0  ;;  %v5725_v63 = vadd.f32 %v5652_v20, %v5613_v8 }
 0xcf2   : > { %v5758_v30 = vmul.f32 %v10140_v21, %v5742_v22  ;;  %v5743_v25 = vmax.f32 %v5727_v23, 0.0  ;;  %v10148_v22 = vld [vmem:[#allocation48_spill] sm:$0xff] }
 0xcf3   : > { %v5756_v41 = vmul.f32 %v10141_v40, %v5740_v26  ;;  %v5741_v58 = vmax.f32 %v5725_v63, 0.0  ;;  %v6910_v35 = vpop.f32.mrb[68].mxu1  ;;  %v5712_v60 = vpop.permute.xlu1 %5711  ;;  %v10149_v23 = vunpack.c.l.bf16 %v10148_v22 }
 0xcf4   : > { %5775 = vst.msk [vmem:[%s9861_s2 + $0x10] sm:$0xff] %vm5772_vm4, %v5758_v30  ;;  %v5759_v36 = vmul.f32 %v10142_v29, %v5743_v25  ;;  %v5618_v3 = vmul.f32 %v6910_v35, %v5565_v38  ;;  %v5469_v14 = vpop.f32.mrb[69].mxu1 }
 0xcf5   : > { %5773 = vst.msk [vmem:[%s9861_s2] sm:$0xff] %vm5772_vm4, %v5756_v41  ;;  %v5757_v31 = vmul.f32 %v10143_v55, %v5741_v58  ;;  %v5616_v27 = vmul.f32 %v5555_v33, %v5469_v14  ;;  %v6911_v4 = vpop.f32.mrb[70].mxu1 }
 0xcf6   : > { %5776 = vst.msk [vmem:[%s9861_s2 + $0x18] sm:$0xff] %vm5772_vm4, %v5759_v36  ;;  %v5730_v59 = vadd.f32 %v5677_v57, %v5618_v3  ;;  %v5619_v18 = vmul.f32 %v6911_v4, %v5570_v50  ;;  %v5472_v19 = vpop.f32.mrb[71].mxu1  ;;  %v10145_v50 = vunpack.c.l.bf16 %v8985_v34 }
 0xcf7   : > { %5774 = vst.msk [vmem:[%s9861_s2 + $0x8] sm:$0xff] %vm5772_vm4, %v5757_v31  ;;  %v5728_v10 = vadd.f32 %v5667_v9, %v5616_v27  ;;  %v5617_v7 = vmul.f32 %v5560_v44, %v5472_v19  ;;  %v10146_v44 = vunpack.c.h.bf16 %v8995_v54  ;;  %v5707_v54 = vpop.permute.xlu0 %5706 }
 0xcf8   : > { %v5746_v62 = vmax.f32 %v5730_v59, 0.0  ;;  %v5731_v15 = vadd.f32 %v5682_v42, %v5619_v18 }
 0xcf9   : > { %v5744_v24 = vmax.f32 %v5728_v10, 0.0  ;;  %v5729_v2 = vadd.f32 %v5672_v47, %v5617_v7  ;;  %v10147_v47 = vunpack.c.h.bf16 %v8985_v34  ;;  %v10155_v10 = vld [vmem:[#allocation50_spill] sm:$0xff] }
 0xcfa   : > { %v5762_v33 = vmul.f32 %v10144_v12, %v5746_v62  ;;  %v5747_v38 = vmax.f32 %v5731_v15, 0.0  ;;  %v10156_v7 = vunpack.c.l.bf16 %v10155_v10  ;;  %v10157_v15 = vld [vmem:[#allocation49_spill] sm:$0xff] }
 0xcfb   : > { %v5760_v20 = vmul.f32 %v10145_v50, %v5744_v24  ;;  %v5745_v51 = vmax.f32 %v5729_v2, 0.0  ;;  %v6914_v13 = vpop.f32.mrb[72].mxu1  ;;  %v5717_v35 = vpop.permute.xlu0 %5716 }
 0xcfc   : > { %5779 = vst.msk [vmem:[%s9861_s2 + $0x30] sm:$0xff] %vm5772_vm4, %v5762_v33  ;;  %v5763_v9 = vmul.f32 %v10146_v44, %v5747_v38  ;;  %v5622_v56 = vmul.f32 %v6914_v13, %v9844_v48  ;;  %v5485_v5 = vpop.f32.mrb[73].mxu1  ;;  %v10161_v33 = vunpack.c.h.bf16 %v10157_v15 }
 0xcfd   : > { %5777 = vst.msk [vmem:[%s9861_s2 + $0x20] sm:$0xff] %vm5772_vm4, %v5760_v20  ;;  %v5761_v45 = vmul.f32 %v10147_v47, %v5745_v51  ;;  %v5620_v57 = vmul.f32 %v9840_v28, %v5485_v5  ;;  %v6915_v16 = vpop.f32.mrb[74].mxu1 }
 0xcfe   : > { %5780 = vst.msk [vmem:[%s9861_s2 + $0x38] sm:$0xff] %vm5772_vm4, %v5763_v9  ;;  %v5734_v0 = vadd.f32 %v5697_v52, %v5622_v56  ;;  %v5623_v39 = vmul.f32 %v6915_v16, %v9846_v49  ;;  %v5488_v32 = vpop.f32.mrb[75].mxu1  ;;  %v10150_v49 = vld [vmem:[#allocation47_spill] sm:$0xff]  ;;  %v10158_v52 = vunpack.c.l.bf16 %v10157_v15 }
 0xcff   : > { %5778 = vst.msk [vmem:[%s9861_s2 + $0x28] sm:$0xff] %vm5772_vm4, %v5761_v45  ;;  %v5732_v48 = vadd.f32 %v5687_v17, %v5620_v57  ;;  %v5621_v43 = vmul.f32 %v9842_v46, %v5488_v32  ;;  %v10151_v21 = vunpack.c.l.bf16 %v10150_v49  ;;  %v10152_v46 = vunpack.c.h.bf16 %v10148_v22 }
 0xd00   : > { %v5750_v42 = vmax.f32 %v5734_v0, 0.0  ;;  %v5735_v34 = vadd.f32 %v5702_v61, %v5623_v39  ;;  %v10153_v29 = vunpack.c.h.bf16 %v10150_v49 }
 0xd01   : > { %v5748_v8 = vmax.f32 %v5732_v48, 0.0  ;;  %v5733_v28 = vadd.f32 %v5692_v6, %v5621_v43 }
 0xd02   : > { %v5766_v26 = vmul.f32 %v10149_v23, %v5750_v42  ;;  %v5751_v63 = vmax.f32 %v5735_v34, 0.0 }
 0xd03   : > { %v5764_v30 = vmul.f32 %v10151_v21, %v5748_v8  ;;  %v5749_v25 = vmax.f32 %v5733_v28, 0.0  ;;  %v6918_v40 = vpop.f32.mrb[76].mxu1 }
 0xd04   : > { %5783 = vst.msk [vmem:[%s9861_s2 + $0x50] sm:$0xff] %vm5772_vm4, %v5766_v26  ;;  %v5767_v17 = vmul.f32 %v10152_v46, %v5751_v63  ;;  %v5626_v41 = vmul.f32 %v6918_v40, %v9852_v11  ;;  %v5501_v58 = vpop.f32.mrb[77].mxu1  ;;  %v5722_v11 = vpop.permute.xlu1 %5721 }
 0xd05   : > { %5781 = vst.msk [vmem:[%s9861_s2 + $0x40] sm:$0xff] %vm5772_vm4, %v5764_v30  ;;  %v5765_v36 = vmul.f32 %v10153_v29, %v5749_v25  ;;  %v5624_v3 = vmul.f32 %v9848_v37, %v5501_v58  ;;  %v6919_v14 = vpop.f32.mrb[78].mxu1 }
 0xd06   : > { %5784 = vst.msk [vmem:[%s9861_s2 + $0x58] sm:$0xff] %vm5772_vm4, %v5767_v17  ;;  %v5738_v6 = vadd.f32 %v5717_v35, %v5626_v41  ;;  %v5627_v55 = vmul.f32 %v6919_v14, %v9854_v1  ;;  %v5504_v31 = vpop.f32.mrb[79].mxu1 }
 0xd07   : > { %5782 = vst.msk [vmem:[%s9861_s2 + $0x48] sm:$0xff] %vm5772_vm4, %v5765_v36  ;;  %v5736_v27 = vadd.f32 %v5707_v54, %v5624_v3  ;;  %v5625_v4 = vmul.f32 %v9850_v53, %v5504_v31  ;;  %v10159_v53 = vunpack.c.h.bf16 %v10155_v10 }
 0xd08   : > { %v5754_v59 = vmax.f32 %v5738_v6, 0.0  ;;  %v5739_v18 = vadd.f32 %v5722_v11, %v5627_v55 }
 0xd09   : > { %v5752_v37 = vmax.f32 %v5736_v27, 0.0  ;;  %v5737_v19 = vadd.f32 %v5712_v60, %v5625_v4 }
 0xd0a   : > { %v5770_v1 = vmul.f32 %v10156_v7, %v5754_v59  ;;  %v5755_v62 = vmax.f32 %v5739_v18, 0.0 }
 0xd0b   : > { %v5768_v24 = vmul.f32 %v10158_v52, %v5752_v37  ;;  %v5753_v2 = vmax.f32 %v5737_v19, 0.0 }
 0xd0c   : > { %5787 = vst.msk [vmem:[%s9861_s2 + $0x70] sm:$0xff] %vm5772_vm4, %v5770_v1  ;;  %v5771_v12 = vmul.f32 %v10159_v53, %v5755_v62 }
 0xd0d   : > { %5785 = vst.msk [vmem:[%s9861_s2 + $0x60] sm:$0xff] %vm5772_vm4, %v5768_v24  ;;  %v5769_v38 = vmul.f32 %v10161_v33, %v5753_v2 }
 0xd0e   : > { %5788 = vst.msk [vmem:[%s9861_s2 + $0x78] sm:$0xff] %vm5772_vm4, %v5771_v12 }
 0xd0f   : > { %5786 = vst.msk [vmem:[%s9861_s2 + $0x68] sm:$0xff] %vm5772_vm4, %v5769_v38 }
 0xd10   : > { %8201 = shalt.err (!%p8198_p9)
}
 0xd11   : > { %s8202_s25 = scalar_lea.hbm %s9928_s6, 2048  ;;  %s8206_s4 = scalar_lea.hbm %s10160_s5, 4096 }
 0xd12   : > { %p8203_p0 = scmp.ne.s32.totalorder %s9928_s6, %s8202_s25  ;;  %p8207_p1 = scmp.lt.u32.totalorder %s9928_s6, %s10160_s5 }
 0xd13   : > { %p8208_p10 = scmp.lt.u32.totalorder %s8206_s4, %s8202_s25  ;;  %p8210_p8 = scmp.lt.u32.totalorder %s8202_s25, %s9928_s6 }
 0xd14   : > { %p8204_p7 = pnand %p8203_p0, %p10162_p3 }
 0xd15   : > { %p8209_p11 = por %p8208_p10, %p8207_p1 }
 0xd16   : > { %p8205_p5 = pneg %p8204_p7 }
 0xd17   : > { %p8211_p12 = por %p8210_p8, %p8209_p11 }
 0xd19   : > { %p8212_p6 = pnand %p8211_p12, %p8205_p5 }
 0xd1b   : > { %8215 = shalt.err (!%p8212_p6)
}
 0xd1c   : > { %s8338_s10 = smov 128  }
 0xd1d   : > { %7076 = dma.vmem_to_hbm [thread:$0]  (%p10162_p3), %s9934_s24, 2048, %s9928_s6, %s5790_s17, %s8338_s10, %s8338_s10, %s8330_s9  }
 0xd1e PF: > { %s10163_s8 = sld [smem:[#allocation40_spill]]  ;;  %p10164_p2 = scmp.ne.s32.totalorder %s10096_s16, 0 }
 0xd1f   : > { %p10165_p13 = scmp.ge.s32.totalorder %s8306_s26, 2 }
 0xd21   : > { %p7129_p4 = pnand %p10165_p13, %p10164_p2 }
 0xd24   : > { %s5819_s23 = sand.u32 1, %s10163_s8  }
 0xd25   : > { %s5820_s0 = scalar_lea.sflag [#allocation4], %s5819_s23 }
 0xd26   : > { %8281 = dma.done.wait (!%p7129_p4), %s5820_s0, 2048  }
 0xd27   : > { %8283 = vsyncadd (!%p7129_p4), %s5820_s0, 4294965248  ;;  %s42_s26 = sadd.s32 1, %s8306_s26   ;;  %s10166_s3 = sld [smem:[#allocation41_spill]] }
 0xd28   : > { %p39_p9 = scmp.ge.s32.totalorder %s42_s26, 4   ;;  %s10167_s22 = sld [smem:[#allocation42_spill]] }
 0xd29   : > { %s10168_s11 = smov %s8818_s21  ;;  %s10169_s24 = sld [smem:[#allocation44_spill]] }
 0xd2a   : > { %s10171_s23 = smov %s10168_s11  ;;  %s10172_s25 = smov %s10174_s20 }
 0xd2b   :  { %41 = sbr.rel (!%p39_p9) target bundleno = 29 (0x1d), region = 210 }
 0xd2d   : > { %s10170_s21 = smov %s10166_s3 }
 0xd32   :  { %5825 = vsyncpa [#allocation3], 1 }
 0xd33   :  { %5827 = vsyncpa [#allocation3 + $0x1], 1 }
 0xd34   :  { %5828 = vsyncpa [#allocation6], 1 }
 0xd35   :  { %5830 = vsyncpa [#allocation6 + $0x1], 1 }
 0xd36   :  { %5831 = vsyncpa [#allocation9], 1 }
 0xd37   :  { %5832 = vsyncpa [#allocation12], 1 }
 0xd38   :  { %5833 = vsyncpa [#allocation15], 1 }
 0xd39   :  { %5834 = vsyncpa [#allocation18], 1 }
 0xd3a   :  { %5835 = vsyncpa [#allocation21], 1 }
 0xd3b   :  { %5836 = vsyncpa [#allocation24], 1 }
 0xd3c   :  { %5837 = vsyncpa [#allocation27], 1 }
 0xd3d   :  { %5838 = vsyncpa [#allocation4], 1 }
 0xd3e   :  { %5840 = vsyncpa [#allocation4 + $0x1], 1 }

</bundles_post_ra>
